<compile_context>
chip_gen: v6e
topology: v6e:2x2x1
jax: 0.10.0
libtpu: 0.0.40
codegen_flags: <defaults>
</compile_context>

<pallas_src>
import functools
import math

import jax
import jax.numpy as jnp
from jax.experimental import pallas as pl
from jax.experimental.pallas import tpu as pltpu

_PRECISION = jax.lax.Precision.HIGHEST


# --------------------------------- kernel ------------------------------------

def _fused_extractor_kernel(xp_ref, wb1_ref, b1_ref, wb2_ref, b2_ref,
                            wl_ref, bl_ref, out_ref, h1pad_ref,
                            *, f1c1, f2c2, hq):
    """One grid step = Bblk batch elements; both gated convs + Linear fused in VMEM."""

    def mm(a, b):
        return jnp.dot(a, b, preferred_element_type=jnp.float32,
                       precision=_PRECISION)

    def gated(acc, half):
        # acc columns = [conv | gate]  ->  relu(conv * sigmoid(gate))
        return jnp.maximum(acc[:, :half] * jax.nn.sigmoid(acc[:, half:]), 0.0)

    b1 = b1_ref[...]
    w0, w1, w2 = wb1_ref[0], wb1_ref[1], wb1_ref[2]

    # ---- layer 1 (gated conv, stride 2): 3 banded matmuls per output-row parity.
    # xp_ref[d][b*hq + u, :] = zero-padded input row (4*u + d) of batch b (lane-dense).
    acc_e = mm(xp_ref[0], w0) + mm(xp_ref[1], w1) + mm(xp_ref[2], w2) + b1
    acc_o = mm(xp_ref[2], w0) + mm(xp_ref[3], w1) + mm(xp_ref[4], w2) + b1
    h_e = gated(acc_e, f1c1)          # row (b,u) = conv1 output time-row 2u   of b
    h_o = gated(acc_o, f1c1)          # row (b,u) = conv1 output time-row 2u+1 of b

    # ---- layer-2 time tap ki=0 needs h_o shifted down by one row *within each batch*
    # (zero at u == 0).  Shift via a zero-initialized VMEM scratch + mask (no concats).
    m = h_o.shape[0]
    h1pad_ref[0:1, :] = jnp.zeros((1, f1c1), jnp.float32)
    h1pad_ref[1:m + 1, :] = h_o
    u = jax.lax.broadcasted_iota(jnp.int32, (m, 1), 0) % hq
    h_o_dn = jnp.where(u == 0, 0.0, h1pad_ref[0:m, :])

    # ---- layer 2 (gated conv, stride 2): 3 banded matmuls (time taps ki = 0, 1, 2).
    acc2 = (mm(h_o_dn, wb2_ref[0]) + mm(h_e, wb2_ref[1]) + mm(h_o, wb2_ref[2])
            + b2_ref[...])
    h2 = gated(acc2, f2c2)            # (Bblk*T', F2*c2), columns ordered (f2, c2)

    # ---- final Linear; single lane-dense 2-D store.
    out_ref[...] = (mm(h2, wl_ref[...]) + bl_ref[...]).astype(out_ref.dtype)


# --------------------------------- wrapper ------------------------------------

def conv2d_feature_extractor(x, params, config, *, block_batch=8):
    """x: (B, T, num_fbanks) -> (B, hidden_size, T//4).  Single fused pallas_call."""
    B, T, F = x.shape
    c1, c2 = config["conv_dim"]
    hidden = config["hidden_size"]

    # Fused kernel is specialized to the module's standard configuration.
    # TODO(synk): generalize to other kernel/stride/padding combos, 'gated_shared'
    # and the causal variant if they are ever used.
    assert list(config["conv_kernel"]) == [3, 3]
    assert list(config["conv_stride"]) == [2, 2]
    assert list(config["conv_padding"]) == [1, 1]
    assert T % 4 == 0 and F % 4 == 0

    hq = T // 4                      # output time steps T'
    F1, F2 = F // 2, F // 4          # frequency extent after conv1 / conv2
    Fpad = F + 2                     # zero-padded frequency width (pad=1 each side)
    f1c1, f2c2 = F1 * c1, F2 * c2

    # ---- batch blocking: Bblk batches per grid step (M = Bblk*T' rows per dot).
    need = 8 // math.gcd(hq, 8)                      # keep row blocks 8-aligned
    bblk = max(1, min(block_batch, B))
    bblk = ((bblk + need - 1) // need) * need
    bpad = ((B + bblk - 1) // bblk) * bblk
    if bpad != B:
        x = jnp.concatenate([x, jnp.zeros((bpad - B, T, F), x.dtype)], axis=0)

    # ---- lane-dense time-phase planes:  planes[d, b*hq + u, :] = xpad[b, 4u + d, :]
    xpad = jnp.pad(x, ((0, 0), (1, 1), (1, 1)))
    planes = jnp.stack([xpad[:, d:d + 4 * hq:4, :] for d in range(5)], axis=0)
    planes = planes.reshape(5, bpad * hq, Fpad)

    # ---- block-banded weights: frequency conv folded into the matmul K dimension,
    #      conv + gate fused along N.  Built once on the host (pure XLA).
    (wc1, bc1, wg1, bg1), (wc2, bc2, wg2, bg2) = params["convs"]

    def band1(ki):
        # (Fpad, 2*F1*c1): rows = padded input frequency position, cols = (f1, c1)
        w_idx = jnp.arange(Fpad)[:, None]
        f_idx = jnp.arange(F1)[None, :]
        halves = []
        for wmat in (wc1, wg1):
            b = jnp.zeros((Fpad, F1, c1), jnp.float32)
            for kj in range(3):
                msk = (w_idx == 2 * f_idx + kj).astype(jnp.float32)
                b = b + msk[:, :, None] * wmat[:, 0, ki, kj][None, None, :]
            halves.append(b.reshape(Fpad, f1c1))
        return jnp.concatenate(halves, axis=1)

    def band2(ki):
        # (F1*c1, 2*F2*c2): rows = (f1, c1) of layer-1 output, cols = (f2, c2)
        f1_idx = jnp.arange(F1)[:, None]
        f2_idx = jnp.arange(F2)[None, :]
        halves = []
        for wmat in (wc2, wg2):
            b = jnp.zeros((F1, c1, F2, c2), jnp.float32)
            for kj in range(3):
                msk = (f1_idx == 2 * f2_idx + kj - 1).astype(jnp.float32)
                b = b + msk[:, None, :, None] * wmat[:, :, ki, kj].T[None, :, None, :]
            halves.append(b.reshape(f1c1, f2c2))
        return jnp.concatenate(halves, axis=1)

    wb1 = jnp.stack([band1(ki) for ki in range(3)], axis=0)      # (3, Fpad, 2*F1*c1)
    wb2 = jnp.stack([band2(ki) for ki in range(3)], axis=0)      # (3, F1*c1, 2*F2*c2)
    b1b = jnp.concatenate([jnp.tile(bc1, F1), jnp.tile(bg1, F1)])[None, :]
    b2b = jnp.concatenate([jnp.tile(bc2, F2), jnp.tile(bg2, F2)])[None, :]

    # Linear weight rows permuted from torch's (c2, F2) flatten to the kernel's
    # (F2, c2) lane order (layout plumbing done once on the parameter).
    wlin = params["w_out"].reshape(c2, F2, hidden).transpose(1, 0, 2).reshape(f2c2, hidden)
    blin = params["b_out"][None, :]

    mblk = bblk * hq
    steps = bpad // bblk
    kernel = functools.partial(_fused_extractor_kernel, f1c1=f1c1, f2c2=f2c2, hq=hq)

    n1, n2 = 2 * f1c1, 2 * f2c2
    flops = 2 * steps * mblk * (6 * Fpad * n1 + 3 * f1c1 * n2 + f2c2 * hidden)
    transcendentals = steps * mblk * (2 * f1c1 + f2c2)
    bytes_accessed = 4 * (planes.size + wb1.size + b1b.size + wb2.size + b2b.size
                          + wlin.size + blin.size + bpad * hq * hidden)

    out = pl.pallas_call(
        kernel,
        out_shape=jax.ShapeDtypeStruct((bpad * hq, hidden), jnp.float32),
        grid=(steps,),
        in_specs=[
            pl.BlockSpec((5, mblk, Fpad), lambda i: (0, i, 0)),
            pl.BlockSpec(wb1.shape, lambda i: (0, 0, 0)),
            pl.BlockSpec(b1b.shape, lambda i: (0, 0)),
            pl.BlockSpec(wb2.shape, lambda i: (0, 0, 0)),
            pl.BlockSpec(b2b.shape, lambda i: (0, 0)),
            pl.BlockSpec(wlin.shape, lambda i: (0, 0)),
            pl.BlockSpec(blin.shape, lambda i: (0, 0)),
        ],
        out_specs=pl.BlockSpec((mblk, hidden), lambda i: (i, 0)),
        scratch_shapes=[pltpu.VMEM((mblk + 8, f1c1), jnp.float32)],
        compiler_params=pltpu.CompilerParams(dimension_semantics=("parallel",)),
        cost_estimate=pl.CostEstimate(flops=int(flops),
                                      transcendentals=int(transcendentals),
                                      bytes_accessed=int(bytes_accessed)),
    )(planes, wb1, b1b, wb2, b2b, wlin, blin)

    # (Bpad*T', hidden) -> (B, hidden, T')   (the module's final transpose)
    return out.reshape(bpad, hq, hidden)[:B].transpose(0, 2, 1)


# ------------------------- pure-JAX reference check ---------------------------

def reference_forward(x, params, config):
    h = x[:, None, :, :]
    for (wc, bc, wg, bg), k, s, p in zip(params["convs"], config["conv_kernel"],
                                         config["conv_stride"], config["conv_padding"]):
        dn = ("NCHW", "OIHW", "NCHW")
        conv = jax.lax.conv_general_dilated(h, wc, (s, s), [(p, p), (p, p)],
                                            dimension_numbers=dn,
                                            precision=_PRECISION) + bc[None, :, None, None]
        gate = jax.lax.conv_general_dilated(h, wg, (s, s), [(p, p), (p, p)],
                                            dimension_numbers=dn,
                                            precision=_PRECISION) + bg[None, :, None, None]
        h = jnp.maximum(conv * jax.nn.sigmoid(gate), 0.0)
    B, C, T, F = h.shape
    flat = h.transpose(0, 2, 1, 3).reshape(B, T, C * F)
    y = jnp.dot(flat, params["w_out"], precision=_PRECISION) + params["b_out"]
    return y.transpose(0, 2, 1)


# --------------------------------- parameters ---------------------------------

def init_params(key, config):
    convs = []
    in_ch = 1
    for out_ch, k in zip(config["conv_dim"], config["conv_kernel"]):
        key, k1, k2, k3, k4 = jax.random.split(key, 5)
        bound = 1.0 / math.sqrt(in_ch * k * k)
        wc = jax.random.uniform(k1, (out_ch, in_ch, k, k), jnp.float32, -bound, bound)
        bc = jax.random.uniform(k2, (out_ch,), jnp.float32, -bound, bound)
        wg = jax.random.uniform(k3, (out_ch, in_ch, k, k), jnp.float32, -bound, bound)
        bg = jax.random.uniform(k4, (out_ch,), jnp.float32, -bound, bound)
        convs.append((wc, bc, wg, bg))
        in_ch = out_ch

    f = config["num_fbanks"]
    for k, s, p in zip(config["conv_kernel"], config["conv_stride"], config["conv_padding"]):
        f = (f + 2 * p - k) // s + 1
    linear_in = config["conv_dim"][-1] * f

    key, k1, k2 = jax.random.split(key, 3)
    bound = 1.0 / math.sqrt(linear_in)
    w_out = jax.random.uniform(k1, (linear_in, config["hidden_size"]), jnp.float32, -bound, bound)
    b_out = jax.random.uniform(k2, (config["hidden_size"],), jnp.float32, -bound, bound)
    return {"convs": convs, "w_out": w_out, "b_out": b_out}


# ------------------------------------ main -------------------------------------

if __name__ == "__main__":
    config = dict(
        conv_dim=[8, 16],
        conv_kernel=[3, 3],
        conv_stride=[2, 2],
        conv_padding=[1, 1],
        num_fbanks=16,
        hidden_size=32,
        context_awareness_type="gated",     # ContextAwareConv2d -> GatedConv2d
        feat_extract_activation="relu",     # ACT2FN['relu']
    )

    key = jax.random.PRNGKey(0)
    key, pkey, xkey = jax.random.split(key, 3)
    params = init_params(pkey, config)

    B, T, F = 16, 16, config["num_fbanks"]
    x = jax.random.normal(xkey, (B, T, F), dtype=jnp.float32)

    fwd = jax.jit(functools.partial(conv2d_feature_extractor, config=config))
    out = jax.block_until_ready(fwd(x, params))

    # Expected output shape: (B, hidden_size, T') with T' = 16 -> 8 -> 4
    assert out.shape == (B, config["hidden_size"], T // 4), out.shape

    ref = reference_forward(x, params, config)
    err = float(jnp.max(jnp.abs(out - ref)))
    assert err < 1e-4, err

    print("KERNEL_OK")
</pallas_src>

<mosaic_0001>
module attributes {stable_mosaic.version = 11 : i64} {
  func.func @_fused_extractor_kernel(%arg0: i32, %arg1: memref<5x32x18xf32, #tpu.memory_space<vmem>>, %arg2: memref<3x18x128xf32, #tpu.memory_space<vmem>>, %arg3: memref<1x128xf32, #tpu.memory_space<vmem>>, %arg4: memref<3x64x128xf32, #tpu.memory_space<vmem>>, %arg5: memref<1x128xf32, #tpu.memory_space<vmem>>, %arg6: memref<64x32xf32, #tpu.memory_space<vmem>>, %arg7: memref<1x32xf32, #tpu.memory_space<vmem>>, %arg8: memref<32x32xf32, #tpu.memory_space<vmem>>, %arg9: memref<40x64xf32, #tpu.memory_space<vmem>>) attributes {dimension_semantics = [#tpu.dimension_semantics<parallel>], iteration_bounds = array<i64: 2>, scalar_prefetch = 0 : i64, scratch_operands = 1 : i64, tpu.core_type = #tpu.core_type<tc>, window_params = [{transform_indices = @transform_0, window_bounds = array<i64: 5, 32, 18>}, {pipeline_mode = #tpu.pipeline_mode<synchronous>, transform_indices = @transform_1, window_bounds = array<i64: 3, 18, 128>}, {pipeline_mode = #tpu.pipeline_mode<synchronous>, transform_indices = @transform_2, window_bounds = array<i64: 1, 128>}, {pipeline_mode = #tpu.pipeline_mode<synchronous>, transform_indices = @transform_3, window_bounds = array<i64: 3, 64, 128>}, {pipeline_mode = #tpu.pipeline_mode<synchronous>, transform_indices = @transform_4, window_bounds = array<i64: 1, 128>}, {pipeline_mode = #tpu.pipeline_mode<synchronous>, transform_indices = @transform_5, window_bounds = array<i64: 64, 32>}, {pipeline_mode = #tpu.pipeline_mode<synchronous>, transform_indices = @transform_6, window_bounds = array<i64: 1, 32>}, {transform_indices = @transform_7, window_bounds = array<i64: 32, 32>}]} {
    %c0 = arith.constant 0 : index
    %c0_0 = arith.constant 0 : index
    %0 = vector.load %arg3[%c0, %c0_0] : memref<1x128xf32, #tpu.memory_space<vmem>>, vector<1x128xf32>
    %c0_1 = arith.constant 0 : index
    %c0_2 = arith.constant 0 : index
    %c0_3 = arith.constant 0 : index
    %1 = vector.load %arg2[%c0_1, %c0_2, %c0_3] : memref<3x18x128xf32, #tpu.memory_space<vmem>>, vector<1x18x128xf32>
    %2 = vector.shape_cast %1 : vector<1x18x128xf32> to vector<18x128xf32>
    %c1 = arith.constant 1 : index
    %c0_4 = arith.constant 0 : index
    %c0_5 = arith.constant 0 : index
    %3 = vector.load %arg2[%c1, %c0_4, %c0_5] : memref<3x18x128xf32, #tpu.memory_space<vmem>>, vector<1x18x128xf32>
    %4 = vector.shape_cast %3 : vector<1x18x128xf32> to vector<18x128xf32>
    %c2 = arith.constant 2 : index
    %c0_6 = arith.constant 0 : index
    %c0_7 = arith.constant 0 : index
    %5 = vector.load %arg2[%c2, %c0_6, %c0_7] : memref<3x18x128xf32, #tpu.memory_space<vmem>>, vector<1x18x128xf32>
    %6 = vector.shape_cast %5 : vector<1x18x128xf32> to vector<18x128xf32>
    %c0_8 = arith.constant 0 : index
    %c0_9 = arith.constant 0 : index
    %c0_10 = arith.constant 0 : index
    %7 = vector.load %arg1[%c0_8, %c0_9, %c0_10] : memref<5x32x18xf32, #tpu.memory_space<vmem>>, vector<1x32x18xf32>
    %8 = vector.shape_cast %7 : vector<1x32x18xf32> to vector<32x18xf32>
    %cst = arith.constant dense<0.000000e+00> : vector<32x128xf32>
    %9 = tpu.matmul %8, %2, %cst {dimension_numbers = #tpu.dot_dimension_numbers<[1], [0], [0], [1], [0, 0, 1, 1], [], []>, precision = #tpu.contract_precision<fp32>} : vector<32x18xf32>, vector<18x128xf32>, vector<32x128xf32> -> vector<32x128xf32>
    %c1_11 = arith.constant 1 : index
    %c0_12 = arith.constant 0 : index
    %c0_13 = arith.constant 0 : index
    %10 = vector.load %arg1[%c1_11, %c0_12, %c0_13] : memref<5x32x18xf32, #tpu.memory_space<vmem>>, vector<1x32x18xf32>
    %11 = vector.shape_cast %10 : vector<1x32x18xf32> to vector<32x18xf32>
    %cst_14 = arith.constant dense<0.000000e+00> : vector<32x128xf32>
    %12 = tpu.matmul %11, %4, %cst_14 {dimension_numbers = #tpu.dot_dimension_numbers<[1], [0], [0], [1], [0, 0, 1, 1], [], []>, precision = #tpu.contract_precision<fp32>} : vector<32x18xf32>, vector<18x128xf32>, vector<32x128xf32> -> vector<32x128xf32>
    %13 = arith.addf %9, %12 : vector<32x128xf32>
    %c2_15 = arith.constant 2 : index
    %c0_16 = arith.constant 0 : index
    %c0_17 = arith.constant 0 : index
    %14 = vector.load %arg1[%c2_15, %c0_16, %c0_17] : memref<5x32x18xf32, #tpu.memory_space<vmem>>, vector<1x32x18xf32>
    %15 = vector.shape_cast %14 : vector<1x32x18xf32> to vector<32x18xf32>
    %cst_18 = arith.constant dense<0.000000e+00> : vector<32x128xf32>
    %16 = tpu.matmul %15, %6, %cst_18 {dimension_numbers = #tpu.dot_dimension_numbers<[1], [0], [0], [1], [0, 0, 1, 1], [], []>, precision = #tpu.contract_precision<fp32>} : vector<32x18xf32>, vector<18x128xf32>, vector<32x128xf32> -> vector<32x128xf32>
    %17 = arith.addf %13, %16 : vector<32x128xf32>
    %18 = vector.broadcast %0 : vector<1x128xf32> to vector<32x128xf32>
    %19 = arith.addf %17, %18 : vector<32x128xf32>
    %c2_19 = arith.constant 2 : index
    %c0_20 = arith.constant 0 : index
    %c0_21 = arith.constant 0 : index
    %20 = vector.load %arg1[%c2_19, %c0_20, %c0_21] : memref<5x32x18xf32, #tpu.memory_space<vmem>>, vector<1x32x18xf32>
    %21 = vector.shape_cast %20 : vector<1x32x18xf32> to vector<32x18xf32>
    %cst_22 = arith.constant dense<0.000000e+00> : vector<32x128xf32>
    %22 = tpu.matmul %21, %2, %cst_22 {dimension_numbers = #tpu.dot_dimension_numbers<[1], [0], [0], [1], [0, 0, 1, 1], [], []>, precision = #tpu.contract_precision<fp32>} : vector<32x18xf32>, vector<18x128xf32>, vector<32x128xf32> -> vector<32x128xf32>
    %c3 = arith.constant 3 : index
    %c0_23 = arith.constant 0 : index
    %c0_24 = arith.constant 0 : index
    %23 = vector.load %arg1[%c3, %c0_23, %c0_24] : memref<5x32x18xf32, #tpu.memory_space<vmem>>, vector<1x32x18xf32>
    %24 = vector.shape_cast %23 : vector<1x32x18xf32> to vector<32x18xf32>
    %cst_25 = arith.constant dense<0.000000e+00> : vector<32x128xf32>
    %25 = tpu.matmul %24, %4, %cst_25 {dimension_numbers = #tpu.dot_dimension_numbers<[1], [0], [0], [1], [0, 0, 1, 1], [], []>, precision = #tpu.contract_precision<fp32>} : vector<32x18xf32>, vector<18x128xf32>, vector<32x128xf32> -> vector<32x128xf32>
    %26 = arith.addf %22, %25 : vector<32x128xf32>
    %c4 = arith.constant 4 : index
    %c0_26 = arith.constant 0 : index
    %c0_27 = arith.constant 0 : index
    %27 = vector.load %arg1[%c4, %c0_26, %c0_27] : memref<5x32x18xf32, #tpu.memory_space<vmem>>, vector<1x32x18xf32>
    %28 = vector.shape_cast %27 : vector<1x32x18xf32> to vector<32x18xf32>
    %cst_28 = arith.constant dense<0.000000e+00> : vector<32x128xf32>
    %29 = tpu.matmul %28, %6, %cst_28 {dimension_numbers = #tpu.dot_dimension_numbers<[1], [0], [0], [1], [0, 0, 1, 1], [], []>, precision = #tpu.contract_precision<fp32>} : vector<32x18xf32>, vector<18x128xf32>, vector<32x128xf32> -> vector<32x128xf32>
    %30 = arith.addf %26, %29 : vector<32x128xf32>
    %31 = vector.broadcast %0 : vector<1x128xf32> to vector<32x128xf32>
    %32 = arith.addf %30, %31 : vector<32x128xf32>
    %33 = vector.extract_strided_slice %19 {offsets = [0, 0], sizes = [32, 64], strides = [1, 1]} : vector<32x128xf32> to vector<32x64xf32>
    %34 = vector.extract_strided_slice %19 {offsets = [0, 64], sizes = [32, 64], strides = [1, 1]} : vector<32x128xf32> to vector<32x64xf32>
    %35 = arith.negf %34 : vector<32x64xf32>
    %36 = math.exp %35 : vector<32x64xf32>
    %cst_29 = arith.constant 1.000000e+00 : f32
    %37 = vector.broadcast %cst_29 : f32 to vector<32x64xf32>
    %38 = arith.addf %37, %36 : vector<32x64xf32>
    %39 = arith.divf %37, %38 : vector<32x64xf32>
    %40 = arith.mulf %33, %39 : vector<32x64xf32>
    %cst_30 = arith.constant 0.000000e+00 : f32
    %41 = vector.broadcast %cst_30 : f32 to vector<32x64xf32>
    %42 = arith.maximumf %40, %41 : vector<32x64xf32>
    %43 = vector.extract_strided_slice %32 {offsets = [0, 0], sizes = [32, 64], strides = [1, 1]} : vector<32x128xf32> to vector<32x64xf32>
    %44 = vector.extract_strided_slice %32 {offsets = [0, 64], sizes = [32, 64], strides = [1, 1]} : vector<32x128xf32> to vector<32x64xf32>
    %45 = arith.negf %44 : vector<32x64xf32>
    %46 = math.exp %45 : vector<32x64xf32>
    %cst_31 = arith.constant 1.000000e+00 : f32
    %47 = vector.broadcast %cst_31 : f32 to vector<32x64xf32>
    %48 = arith.addf %47, %46 : vector<32x64xf32>
    %49 = arith.divf %47, %48 : vector<32x64xf32>
    %50 = arith.mulf %43, %49 : vector<32x64xf32>
    %cst_32 = arith.constant 0.000000e+00 : f32
    %51 = vector.broadcast %cst_32 : f32 to vector<32x64xf32>
    %52 = arith.maximumf %50, %51 : vector<32x64xf32>
    %cst_33 = arith.constant 0.000000e+00 : f32
    %53 = vector.broadcast %cst_33 : f32 to vector<1x64xf32>
    %c0_34 = arith.constant 0 : index
    %c0_35 = arith.constant 0 : index
    %54 = vector.load %arg9[%c0_34, %c0_35] : memref<40x64xf32, #tpu.memory_space<vmem>>, vector<1x64xf32>
    tpu.vector_store %arg9[%c0_34, %c0_35], %53 {strides = array<i32>} : memref<40x64xf32, #tpu.memory_space<vmem>>, vector<1x64xf32>,
    %c1_36 = arith.constant 1 : index
    %c0_37 = arith.constant 0 : index
    %55 = vector.load %arg9[%c1_36, %c0_37] : memref<40x64xf32, #tpu.memory_space<vmem>>, vector<32x64xf32>
    tpu.vector_store %arg9[%c1_36, %c0_37], %52 {strides = array<i32>} : memref<40x64xf32, #tpu.memory_space<vmem>>, vector<32x64xf32>,
    %56 = tpu.iota {dimensions = array<i32: 0>} : vector<32x1xi32>
    %c4_i32 = arith.constant 4 : i32
    %c0_i32 = arith.constant 0 : i32
    %57 = arith.cmpi eq, %c4_i32, %c0_i32 : i32
    %c1_i32 = arith.constant 1 : i32
    %58 = arith.select %57, %c1_i32, %c4_i32 : i32
    %59 = vector.broadcast %58 : i32 to vector<32x1xi32>
    %60 = arith.remsi %56, %59 : vector<32x1xi32>
    %c0_i32_38 = arith.constant 0 : i32
    %61 = vector.broadcast %c0_i32_38 : i32 to vector<32x1xi32>
    %62 = arith.cmpi ne, %60, %61 : vector<32x1xi32>
    %c0_i32_39 = arith.constant 0 : i32
    %63 = vector.broadcast %c0_i32_39 : i32 to vector<32x1xi32>
    %64 = arith.cmpi slt, %60, %63 : vector<32x1xi32>
    %c0_i32_40 = arith.constant 0 : i32
    %65 = arith.cmpi slt, %58, %c0_i32_40 : i32
    %66 = vector.broadcast %65 : i1 to vector<32x1xi1>
    %67 = vector.broadcast %66 : vector<32x1xi1> to vector<32x1xi1>
    %68 = arith.xori %64, %67 : vector<32x1xi1>
    %69 = arith.andi %68, %62 : vector<32x1xi1>
    %70 = vector.broadcast %58 : i32 to vector<32x1xi32>
    %71 = arith.addi %60, %70 : vector<32x1xi32>
    %72 = arith.select %69, %71, %60 : vector<32x1xi1>, vector<32x1xi32>
    %c0_i32_41 = arith.constant 0 : i32
    %73 = vector.broadcast %c0_i32_41 : i32 to vector<32x1xi32>
    %74 = arith.cmpi eq, %72, %73 : vector<32x1xi32>
    %c0_42 = arith.constant 0 : index
    %c0_43 = arith.constant 0 : index
    %75 = vector.load %arg9[%c0_42, %c0_43] : memref<40x64xf32, #tpu.memory_space<vmem>>, vector<32x64xf32>
    %cst_44 = arith.constant 0.000000e+00 : f32
    %76 = vector.shape_cast %74 : vector<32x1xi1> to vector<32x1xi1>
    %77 = vector.broadcast %76 : vector<32x1xi1> to vector<32x64xi1>
    %78 = vector.broadcast %cst_44 : f32 to vector<32x64xf32>
    %79 = arith.select %77, %78, %75 : vector<32x64xi1>, vector<32x64xf32>
    %c0_45 = arith.constant 0 : index
    %c0_46 = arith.constant 0 : index
    %c0_47 = arith.constant 0 : index
    %80 = vector.load %arg4[%c0_45, %c0_46, %c0_47] : memref<3x64x128xf32, #tpu.memory_space<vmem>>, vector<1x64x128xf32>
    %81 = vector.shape_cast %80 : vector<1x64x128xf32> to vector<64x128xf32>
    %cst_48 = arith.constant dense<0.000000e+00> : vector<32x128xf32>
    %82 = tpu.matmul %79, %81, %cst_48 {dimension_numbers = #tpu.dot_dimension_numbers<[1], [0], [0], [1], [0, 0, 1, 1], [], []>, precision = #tpu.contract_precision<fp32>} : vector<32x64xf32>, vector<64x128xf32>, vector<32x128xf32> -> vector<32x128xf32>
    %c1_49 = arith.constant 1 : index
    %c0_50 = arith.constant 0 : index
    %c0_51 = arith.constant 0 : index
    %83 = vector.load %arg4[%c1_49, %c0_50, %c0_51] : memref<3x64x128xf32, #tpu.memory_space<vmem>>, vector<1x64x128xf32>
    %84 = vector.shape_cast %83 : vector<1x64x128xf32> to vector<64x128xf32>
    %cst_52 = arith.constant dense<0.000000e+00> : vector<32x128xf32>
    %85 = tpu.matmul %42, %84, %cst_52 {dimension_numbers = #tpu.dot_dimension_numbers<[1], [0], [0], [1], [0, 0, 1, 1], [], []>, precision = #tpu.contract_precision<fp32>} : vector<32x64xf32>, vector<64x128xf32>, vector<32x128xf32> -> vector<32x128xf32>
    %86 = arith.addf %82, %85 : vector<32x128xf32>
    %c2_53 = arith.constant 2 : index
    %c0_54 = arith.constant 0 : index
    %c0_55 = arith.constant 0 : index
    %87 = vector.load %arg4[%c2_53, %c0_54, %c0_55] : memref<3x64x128xf32, #tpu.memory_space<vmem>>, vector<1x64x128xf32>
    %88 = vector.shape_cast %87 : vector<1x64x128xf32> to vector<64x128xf32>
    %cst_56 = arith.constant dense<0.000000e+00> : vector<32x128xf32>
    %89 = tpu.matmul %52, %88, %cst_56 {dimension_numbers = #tpu.dot_dimension_numbers<[1], [0], [0], [1], [0, 0, 1, 1], [], []>, precision = #tpu.contract_precision<fp32>} : vector<32x64xf32>, vector<64x128xf32>, vector<32x128xf32> -> vector<32x128xf32>
    %90 = arith.addf %86, %89 : vector<32x128xf32>
    %c0_57 = arith.constant 0 : index
    %c0_58 = arith.constant 0 : index
    %91 = vector.load %arg5[%c0_57, %c0_58] : memref<1x128xf32, #tpu.memory_space<vmem>>, vector<1x128xf32>
    %92 = vector.broadcast %91 : vector<1x128xf32> to vector<32x128xf32>
    %93 = arith.addf %90, %92 : vector<32x128xf32>
    %94 = vector.extract_strided_slice %93 {offsets = [0, 0], sizes = [32, 64], strides = [1, 1]} : vector<32x128xf32> to vector<32x64xf32>
    %95 = vector.extract_strided_slice %93 {offsets = [0, 64], sizes = [32, 64], strides = [1, 1]} : vector<32x128xf32> to vector<32x64xf32>
    %96 = arith.negf %95 : vector<32x64xf32>
    %97 = math.exp %96 : vector<32x64xf32>
    %cst_59 = arith.constant 1.000000e+00 : f32
    %98 = vector.broadcast %cst_59 : f32 to vector<32x64xf32>
    %99 = arith.addf %98, %97 : vector<32x64xf32>
    %100 = arith.divf %98, %99 : vector<32x64xf32>
    %101 = arith.mulf %94, %100 : vector<32x64xf32>
    %cst_60 = arith.constant 0.000000e+00 : f32
    %102 = vector.broadcast %cst_60 : f32 to vector<32x64xf32>
    %103 = arith.maximumf %101, %102 : vector<32x64xf32>
    %c0_61 = arith.constant 0 : index
    %c0_62 = arith.constant 0 : index
    %104 = vector.load %arg6[%c0_61, %c0_62] : memref<64x32xf32, #tpu.memory_space<vmem>>, vector<64x32xf32>
    %cst_63 = arith.constant dense<0.000000e+00> : vector<32x32xf32>
    %105 = tpu.matmul %103, %104, %cst_63 {dimension_numbers = #tpu.dot_dimension_numbers<[1], [0], [0], [1], [0, 0, 1, 1], [], []>, precision = #tpu.contract_precision<fp32>} : vector<32x64xf32>, vector<64x32xf32>, vector<32x32xf32> -> vector<32x32xf32>
    %c0_64 = arith.constant 0 : index
    %c0_65 = arith.constant 0 : index
    %106 = vector.load %arg7[%c0_64, %c0_65] : memref<1x32xf32, #tpu.memory_space<vmem>>, vector<1x32xf32>
    %107 = vector.broadcast %106 : vector<1x32xf32> to vector<32x32xf32>
    %108 = arith.addf %105, %107 : vector<32x32xf32>
    %c0_66 = arith.constant 0 : index
    %c0_67 = arith.constant 0 : index
    %109 = vector.load %arg8[%c0_66, %c0_67] : memref<32x32xf32, #tpu.memory_space<vmem>>, vector<32x32xf32>
    tpu.vector_store %arg8[%c0_66, %c0_67], %108 {strides = array<i32>} : memref<32x32xf32, #tpu.memory_space<vmem>>, vector<32x32xf32>,
    return
  }
  func.func @transform_0(%arg0: i32) -> (i32, i32, i32) {
    %c0_i32 = arith.constant 0 : i32
    %c0_i32_0 = arith.constant 0 : i32
    %c0_i32_1 = arith.constant 0 : i32
    return %c0_i32, %arg0, %c0_i32_0 : i32, i32, i32
  }
  func.func @transform_1(%arg0: i32) -> (i32, i32, i32) {
    %c0_i32 = arith.constant 0 : i32
    %c0_i32_0 = arith.constant 0 : i32
    %c0_i32_1 = arith.constant 0 : i32
    %c0_i32_2 = arith.constant 0 : i32
    return %c0_i32, %c0_i32_0, %c0_i32_1 : i32, i32, i32
  }
  func.func @transform_2(%arg0: i32) -> (i32, i32) {
    %c0_i32 = arith.constant 0 : i32
    %c0_i32_0 = arith.constant 0 : i32
    %c0_i32_1 = arith.constant 0 : i32
    return %c0_i32, %c0_i32_0 : i32, i32
  }
  func.func @transform_3(%arg0: i32) -> (i32, i32, i32) {
    %c0_i32 = arith.constant 0 : i32
    %c0_i32_0 = arith.constant 0 : i32
    %c0_i32_1 = arith.constant 0 : i32
    %c0_i32_2 = arith.constant 0 : i32
    return %c0_i32, %c0_i32_0, %c0_i32_1 : i32, i32, i32
  }
  func.func @transform_4(%arg0: i32) -> (i32, i32) {
    %c0_i32 = arith.constant 0 : i32
    %c0_i32_0 = arith.constant 0 : i32
    %c0_i32_1 = arith.constant 0 : i32
    return %c0_i32, %c0_i32_0 : i32, i32
  }
  func.func @transform_5(%arg0: i32) -> (i32, i32) {
    %c0_i32 = arith.constant 0 : i32
    %c0_i32_0 = arith.constant 0 : i32
    %c0_i32_1 = arith.constant 0 : i32
    return %c0_i32, %c0_i32_0 : i32, i32
  }
  func.func @transform_6(%arg0: i32) -> (i32, i32) {
    %c0_i32 = arith.constant 0 : i32
    %c0_i32_0 = arith.constant 0 : i32
    %c0_i32_1 = arith.constant 0 : i32
    return %c0_i32, %c0_i32_0 : i32, i32
  }
  func.func @transform_7(%arg0: i32) -> (i32, i32) {
    %c0_i32 = arith.constant 0 : i32
    %c0_i32_0 = arith.constant 0 : i32
    return %arg0, %c0_i32 : i32, i32
  }
}

</mosaic_0001>

<bundles_post_ra>
// kernel: tile.33
= control target key start
LH: loop header
LB: loop body
LE: loop exit
PB: predicated region body
PF: predicated region fallthrough
CT: control target
= control target key end

     0   :  { %s22_s0 = inlined_call_operand.vmem [shape: f32[16], index: 0, kind: input, shape index: {}]   ;;  %s23_s1 = inlined_call_operand.vmem [shape: f32[4,16], index: 1, kind: output, shape index: {}]  }
   0x1   :  { %v4_v0 = vld [vmem:[%s22_s0] ss:$0 sm:$0xff] }
   0x2   :  { %5 = vst [vmem:[%s23_s1] sm:$0xf] %v4_v0 }

// kernel: tile.34
= control target key start
LH: loop header
LB: loop body
LE: loop exit
PB: predicated region body
PF: predicated region fallthrough
CT: control target
= control target key end

     0   :  { %vm8_vm0 = vcmask 130048   ;;  %s40_s8 = smov 16   ;;  %s41_s9 = smov 32   ;;  %vm14_vm1 = vcmask 523648   ;;  %vm20_vm2 = vcmask 392448   ;;  %vm26_vm3 = vcmask 261248   ;;  %s58_s0 = inlined_call_operand.vmem [shape: f32[4,16], index: 0, kind: input, shape index: {}]   ;;  %s59_s1 = inlined_call_operand.vmem [shape: f32[64], index: 1, kind: output, shape index: {}]  }
   0x1   :  { %v5_v0 = vld [vmem:[%s58_s0] sm:$0xf]  ;;  %s39_s0 = smov 48  }
   0x2   :  { %6 = vst [vmem:[#allocation1] sm:$0xf] %v5_v0 }
   0x9   :  { %v11_v1 = vld [vmem:[#allocation1 + $0x3] sm:$0x1]   ;;  %v23_v2 = vld [vmem:[#allocation1 + $0x1] sm:$0x1]   ;;  %v7_v3 = vld [vmem:[#allocation1] sm:$0x1]  }
   0xa   :  { %12 = vrot.lane.b32.xlu0 %v11_v1, %s39_s0  ;;  %24 = vrot.lane.b32.xlu1 %v23_v2, %s40_s8  ;;  %v17_v4 = vld [vmem:[#allocation1 + $0x2] sm:$0x1]   ;;  %9 = vst.msk [vmem:[#allocation0] sm:$0x1] %vm8_vm0, %v7_v3  }
   0xe   :  { %18 = vrot.lane.b32.xlu0 %v17_v4, %s41_s9 }
  0x7c   :  { %v13_v5 = vpop.permute.xlu0 %12   ;;  %v25_v6 = vpop.permute.xlu1 %24  }
  0x7d   :  { %15 = vst.msk [vmem:[#allocation0] sm:$0x1] %vm14_vm1, %v13_v5  }
  0x80   :  { %v19_v7 = vpop.permute.xlu0 %18  }
  0x81   :  { %21 = vst.msk [vmem:[#allocation0] sm:$0x1] %vm20_vm2, %v19_v7  }
  0x82   :  { %27 = vst.msk [vmem:[#allocation0] sm:$0x1] %vm26_vm3, %v25_v6  }
  0x89   :  { %v32_v8 = vld [vmem:[#allocation0] sm:$0x1] }
  0x8a   :  { %35 = vst [vmem:[%s59_s1] sm:$0x1] %v32_v8 }

// kernel: conv2d_feature_extractor.1
= control target key start
LH: loop header
LB: loop body
LE: loop exit
PB: predicated region body
PF: predicated region fallthrough
CT: control target
= control target key end

     0   :  { %12 = vsyncpa [#allocation5], 0  ;;  %s11185_s0 = inlined_call_operand.vmem [shape: f32[5,64,18], index: 0, kind: input, shape index: {}]   ;;  %s11186_s1 = inlined_call_operand.vmem [shape: f32[3,18,128], index: 1, kind: input, shape index: {}]   ;;  %s11187_s2 = inlined_call_operand.vmem [shape: f32[1,128], index: 2, kind: input, shape index: {}]   ;;  %s11188_s3 = inlined_call_operand.vmem [shape: f32[3,64,128], index: 3, kind: input, shape index: {}]   ;;  %s11189_s4 = inlined_call_operand.vmem [shape: f32[1,128], index: 4, kind: input, shape index: {}]   ;;  %s11190_s5 = inlined_call_operand.vmem [shape: f32[64,32], index: 5, kind: input, shape index: {}]   ;;  %s11191_s6 = inlined_call_operand.vmem [shape: f32[1,32], index: 6, kind: input, shape index: {}]   ;;  %s11192_s7 = inlined_call_operand.hbm [shape: f32[64,32], index: 7, kind: output, shape index: {}]  }
   0x1   :  { %14 = vsyncpa [#allocation5 + $0x1], 0  ;;  %s8972_s24 = smov 0   ;;  %s8974_s25 = smov 0  }
   0x2   :  { %s8976_s26 = smov 0   ;;  %s8978_s27 = smov 0  }
   0x3 LB: > { %s7204_s28 = sadd.s32 4294967295, %s8925_s27   ;;  %s7205_s29 = sadd.s32 4294967294, %s8925_s27   ;;  %s8925_s27 = sphi %s8978_s27, %s11338_s27   ;;  %s8921_s26 = sphi %s8976_s26, %s11337_s26   ;;  %s8917_s25 = sphi %s8974_s25, %s11336_s25   ;;  %s8913_s24 = sphi %s8972_s24, %s11335_s24  }
   0x4   : > { %s8995_s30 = sadd.s32 1, %s8925_s27   ;;  %s27_s8 = sadd.s32 1, %s8921_s26 }
   0x5   : > { %s24_s9 = ssub.s32 %s8925_s27, %s8995_s30  ;;  %p34_p0 = scmp.ne.s32.totalorder %s8921_s26, %s8917_s25 }
   0x6   : > { %p25_p1 = scmp.eq.s32.totalorder %s24_s9, 0  ;;  %p35_p2 = scmp.eq.s32.totalorder %s8925_s27, 0 }
   0x7   : > { %p190_p3 = scmp.eq.s32.totalorder %s7204_s28, 1  ;;  %p195_p4 = scmp.ne.s32.totalorder %s8917_s25, %s8913_s24 }
   0x8   : > { %s9008_s10 = scalar_select %p25_p1, %s8921_s26, %s27_s8  }
   0x9   : > { %p36_p5 = por %p35_p2, %p34_p0  ;;  %p9010_p6 = por %p190_p3, %p34_p0 }
   0xa   : > { %p196_p7 = scmp.eq.s32.totalorder %s7205_s29, 1  ;;  %p7207_p9 = scmp.ge.s32.totalorder %s8925_s27, 2 }
   0xc   : > { %p9014_p8 = por %p196_p7, %p195_p4  ;;  %230 = sbr.rel (%p7207_p9) target bundleno = 32 (0x20), region = 40 }
  0x11   : > { %233 = sbr.rel (!%p36_p5) target bundleno = 32 (0x20), region = 44  ;;  %s235_s13 = sand.u32 (%p36_p5), 1, %s8921_s26  }
  0x12   : > { %s7270_s14 = sshll.u32 (%p36_p5), %s8925_s27, 5  ;;  %s8772_s15 = smul.u32 (%p36_p5), 160, %s235_s13 }
  0x13   : > { %s9026_s18 = scalar_lea.vmem (%p36_p5), %s11185_s0, %s7270_s14 }
  0x14   : > { %v307_v0 = vld [vmem:[%s9026_s18] sm:$0xff] (%p36_p5)  ;;  %v309_v1 = vld [vmem:[%s9026_s18 + $0x8] sm:$0xff] (%p36_p5)  ;;  %v311_v2 = vld [vmem:[%s9026_s18 + $0x10] sm:$0xff] (%p36_p5)  ;;  %s9034_s19 = scalar_lea.vmem (%p36_p5), [#allocation3], %s8772_s15 }
  0x15   : > { %v313_v3 = vld [vmem:[%s9026_s18 + $0x18] sm:$0xff] (%p36_p5)  ;;  %v315_v4 = vld [vmem:[%s9026_s18 + $0x40] sm:$0xff] (%p36_p5)  ;;  %v317_v5 = vld [vmem:[%s9026_s18 + $0x48] sm:$0xff] (%p36_p5)  ;;  %308 = vst [vmem:[%s9034_s19] sm:$0xff] (%p36_p5), %v307_v0 }
  0x16   : > { %310 = vst [vmem:[%s9034_s19 + $0x8] sm:$0xff] %v309_v1  ;;  %312 = vst [vmem:[%s9034_s19 + $0x10] sm:$0xff] %v311_v2  ;;  %v319_v6 = vld [vmem:[%s9026_s18 + $0x50] sm:$0xff]  ;;  %v321_v7 = vld [vmem:[%s9026_s18 + $0x58] sm:$0xff] }
  0x17   : > { %314 = vst [vmem:[%s9034_s19 + $0x18] sm:$0xff] %v313_v3  ;;  %316 = vst [vmem:[%s9034_s19 + $0x20] sm:$0xff] %v315_v4  ;;  %v323_v8 = vld [vmem:[%s9026_s18 + $0x80] sm:$0xff]  ;;  %v325_v9 = vld [vmem:[%s9026_s18 + $0x88] sm:$0xff] }
  0x18   : > { %318 = vst [vmem:[%s9034_s19 + $0x28] sm:$0xff] %v317_v5  ;;  %320 = vst [vmem:[%s9034_s19 + $0x30] sm:$0xff] %v319_v6  ;;  %v327_v10 = vld [vmem:[%s9026_s18 + $0x90] sm:$0xff]  ;;  %v329_v11 = vld [vmem:[%s9026_s18 + $0x98] sm:$0xff] }
  0x19   : > { %322 = vst [vmem:[%s9034_s19 + $0x38] sm:$0xff] %v321_v7  ;;  %324 = vst [vmem:[%s9034_s19 + $0x40] sm:$0xff] %v323_v8  ;;  %v331_v12 = vld [vmem:[%s9026_s18 + $0xc0] sm:$0xff]  ;;  %v333_v13 = vld [vmem:[%s9026_s18 + $0xc8] sm:$0xff] }
  0x1a   : > { %326 = vst [vmem:[%s9034_s19 + $0x48] sm:$0xff] %v325_v9  ;;  %328 = vst [vmem:[%s9034_s19 + $0x50] sm:$0xff] %v327_v10  ;;  %v335_v14 = vld [vmem:[%s9026_s18 + $0xd0] sm:$0xff]  ;;  %v337_v15 = vld [vmem:[%s9026_s18 + $0xd8] sm:$0xff] }
  0x1b   : > { %330 = vst [vmem:[%s9034_s19 + $0x58] sm:$0xff] %v329_v11  ;;  %332 = vst [vmem:[%s9034_s19 + $0x60] sm:$0xff] %v331_v12  ;;  %v339_v16 = vld [vmem:[%s9026_s18 + $0x100] sm:$0xff]  ;;  %v341_v17 = vld [vmem:[%s9026_s18 + $0x108] sm:$0xff] }
  0x1c   : > { %334 = vst [vmem:[%s9034_s19 + $0x68] sm:$0xff] %v333_v13  ;;  %336 = vst [vmem:[%s9034_s19 + $0x70] sm:$0xff] %v335_v14  ;;  %v343_v18 = vld [vmem:[%s9026_s18 + $0x110] sm:$0xff]  ;;  %v345_v19 = vld [vmem:[%s9026_s18 + $0x118] sm:$0xff] }
  0x1d   : > { %338 = vst [vmem:[%s9034_s19 + $0x78] sm:$0xff] %v337_v15  ;;  %340 = vst [vmem:[%s9034_s19 + $0x80] sm:$0xff] %v339_v16 }
  0x1e   : > { %342 = vst [vmem:[%s9034_s19 + $0x88] sm:$0xff] %v341_v17  ;;  %344 = vst [vmem:[%s9034_s19 + $0x90] sm:$0xff] %v343_v18 }
  0x1f   : > { %346 = vst [vmem:[%s9034_s19 + $0x98] sm:$0xff] %v345_v19 }
  0x20 PF: > { %p7210_p10 = scmp.ge.s32.totalorder %s8925_s27, 1  ;;  %p351_p11 = scmp.lt.s32.totalorder %s8925_s27, 3 }
  0x22   : > { %p352_p12 = pnand %p7210_p10, %p351_p11 }
  0x24   : > { %355 = sbr.rel (%p352_p12) target bundleno = 1319 (0x527), region = 82 }
  0x29   : > { %v7214_v20 = vld [vmem:[%s11186_s1 + $0x28] sm:$0x3]  ;;  %vm425_vm0 = vcmask 1041408   ;;  %v7213_v21 = vld [vmem:[%s11186_s1 + $0x20] sm:$0xff]  ;;  %v7212_v22 = vld [vmem:[%s11186_s1 + $0x18] sm:$0xff]  ;;  %s9082_s9 = sand.u32 1, %s8917_s25  }
  0x2a   : > { %v427_v23 = vsel %vm425_vm0, %v7214_v20, 0  ;;  %v9085_v24 = vand.u32 4294901760, %v7213_v21  ;;  %v9087_v25 = vand.u32 4294901760, %v7212_v22  ;;  %s8773_s13 = smul.u32 160, %s9082_s9  ;;  %vm412_vm1 = vcmask 146432   ;;  %v393_v4 = vld [vmem:[%s11186_s1 + $0x8] sm:$0xff] }
  0x2b   : > { %v9090_v26 = vand.u32 4294901760, %v427_v23  ;;  %v394_v62 = vld [vmem:[%s11186_s1 + $0x10] sm:$0x3]  ;;  %v9197_v8 = vand.u32 4294901760, %v393_v4  ;;  %v392_v10 = vld [vmem:[%s11186_s1] sm:$0xff]  ;;  %s8927_s15 = smov 64  }
  0x2c   : > { %v9093_v27 = vsub.f32 %v7213_v21, %v9085_v24  ;;  %v9096_v28 = vsub.f32 %v7212_v22, %v9087_v25  ;;  %s9102_s14 = scalar_lea.vmem [#allocation3], %s8773_s13  ;;  %v1043_v3 = vsel %vm425_vm0, %v394_v62, 0  ;;  %v9218_v15 = vand.u32 4294901760, %v392_v10  ;;  %s7211_s23 = sshll.u32 %s9082_s9, 5 }
  0x2d   : > { %7812 = vmatprep.subr.mxu0 %v9090_v26  ;;  %v9100_v29 = vsub.f32 %v427_v23, %v9090_v26  ;;  %v7218_v30 = vld [vmem:[%s9102_s14 + $0x20] sm:$0xff]  ;;  %v7219_v31 = vld [vmem:[%s9102_s14 + $0x28] sm:$0xff]  ;;  %v7220_v32 = vld [vmem:[%s9102_s14 + $0x30] sm:$0xff]  ;;  %v9193_v6 = vand.u32 4294901760, %v1043_v3  ;;  %v9216_v14 = vsub.f32 %v393_v4, %v9197_v8  ;;  %vm4222_vm2 = vcmask 516096   ;;  %s388_s29 = scalar_lea.vmem [#allocation4], %s7211_s23 }
  0x2e   : > { %7813 = vmatpush3.msra.mxu0 %v9090_v26  ;;  %v9109_v33 = vand.u32 4294901760, %v9093_v27  ;;  %v414_v34 = vsel %vm412_vm1, %v7218_v30, 0  ;;  %v9113_v35 = vand.u32 4294901760, %v9096_v28  ;;  %v417_v36 = vsel %vm412_vm1, %v7219_v31, 0  ;;  %v7221_v37 = vld [vmem:[%s9102_s14 + $0x38] sm:$0xff]  ;;  %v403_v7 = vld [vmem:[%s9102_s14] sm:$0xff] }
  0x2f   : > { %7814 = vmatprep.subr.mxu0 %v9085_v24  ;;  %v9119_v38 = vand.u32 4294901760, %v9100_v29  ;;  %v9121_v39 = vand.u32 4294901760, %v414_v34  ;;  %v9123_v40 = vand.u32 4294901760, %v417_v36  ;;  %v420_v41 = vsel %vm412_vm1, %v7220_v32, 0  ;;  %v404_v9 = vld [vmem:[%s9102_s14 + $0x8] sm:$0xff]  ;;  %v405_v16 = vld [vmem:[%s9102_s14 + $0x10] sm:$0xff] }
  0x30   : > { %7815 = vmatpush3.msra.mxu0 %v9085_v24  ;;  %v574_v42 = vsub.f32 %v9093_v27, %v9109_v33  ;;  %v581_v43 = vsub.f32 %v9096_v28, %v9113_v35  ;;  %v9131_v44 = vand.u32 4294901760, %v420_v41  ;;  %v423_v45 = vsel %vm412_vm1, %v7221_v37, 0  ;;  %v7224_v17 = vld [vmem:[%s9102_s14 + $0x50] sm:$0xff]  ;;  %v7225_v18 = vld [vmem:[%s9102_s14 + $0x58] sm:$0xff]  ;;  %v7227_v20 = vld [vmem:[%s9102_s14 + $0x60] sm:$0xff]  ;;  %s7137_s8 = sshll.u32 %s388_s29, 4  ;;  %s11140_s8 = int_to_ptr.vmem [resolvable:$true] %s7137_s8 }
  0x31   : > { %v567_v46 = vsub.f32 %v9100_v29, %v9119_v38  ;;  %7816 = vmatprep.subr.mxu0 %v9087_v25  ;;  %v9138_v47 = vsub.f32 %v414_v34, %v9121_v39  ;;  %v9141_v48 = vsub.f32 %v417_v36, %v9123_v40  ;;  %7830 = vmatprep.mubr.f32.mxu1 %v9121_v39  ;;  %v9144_v49 = vand.u32 4294901760, %v423_v45  ;;  %v406_v22 = vld [vmem:[%s9102_s14 + $0x18] sm:$0xff]  ;;  %v7228_v23 = vld [vmem:[%s9102_s14 + $0x68] sm:$0xff]  ;;  %v7229_v30 = vld [vmem:[%s9102_s14 + $0x70] sm:$0xff]  ;;  %s7271_s13 = sshll.u32 %s7204_s28, 9  ;;  %s7124_s28 = scalar_lea.sflag [#allocation5], %s9082_s9 }
  0x32   : > { %v9146_v50 = vand.u32 4294901760, %v574_v42  ;;  %7817 = vmatpush3.msra.mxu0 %v9087_v25  ;;  %v9150_v51 = vsub.f32 %v420_v41, %v9131_v44  ;;  %v9165_v58 = vand.u32 4294901760, %v581_v43  ;;  %v1031_v11 = vsel %vm412_vm1, %v403_v7, 0  ;;  %v7230_v43 = vld [vmem:[%s9102_s14 + $0x78] sm:$0xff]  ;;  %v7233_v4 = vld [vmem:[%s9102_s14 + $0x90] sm:$0xff]  ;;  %s11138_s17 = scalar_lea.hbm %s11192_s7, %s7271_s13  ;;  %s8865_s18 = scalar_lea.vmem %s11140_s8, 512 }
  0x33   : > { %v9152_v52 = vand.u32 4294901760, %v567_v46  ;;  %v499_v53 = vand.u32 4294901760, %v9138_v47  ;;  %7836 = vmatprep.subr.mxu0 %v9100_v29  ;;  %v509_v54 = vand.u32 4294901760, %v9141_v48  ;;  %v9158_v55 = vsub.f32 %v423_v45, %v9144_v49  ;;  %p8866_p13 = scmp.ne.s32.totalorder %s11140_s8, %s8865_s18  ;;  %s8929_s19 = smov [#allocation4]  }
  0x34   : > { %v519_v56 = vand.u32 4294901760, %v9150_v51  ;;  %v9210_v12 = vsub.f32 %v1043_v3, %v9193_v6  ;;  %v1034_v13 = vsel %vm412_vm1, %v404_v9, 0  ;;  %v9225_v19 = vand.u32 4294901760, %v1031_v11  ;;  %s8869_s20 = sshll.u32 %s8929_s19, 4  ;;  %s8870_s20 = int_to_ptr.vmem [resolvable:$false] %s8869_s20 }
  0x35   : > { %7824 = vmatprep.subr.mxu1 %v9152_v52  ;;  %v500_v57 = vsub.f32 %v9138_v47, %v499_v53  ;;  %v510_v59 = vsub.f32 %v9141_v48, %v509_v54  ;;  %v529_v60 = vand.u32 4294901760, %v9158_v55  ;;  %v9230_v21 = vand.u32 4294901760, %v1034_v13  ;;  %p8867_p0 = pnand %p8866_p13, %p9010_p6  ;;  %s8871_s21 = scalar_lea.vmem %s8870_s20, 1024 }
  0x36   : > { %7825 = vmatpush3.msra.mxu1 %v9152_v52  ;;  %v520_v61 = vsub.f32 %v9150_v51, %v519_v56  ;;  %v9239_v31 = vand.u32 4294901760, %v9210_v12  ;;  %v1037_v32 = vsel %vm412_vm1, %v405_v16, 0  ;;  %v9243_v34 = vsel %vm412_vm1, %v7224_v17, 0  ;;  %p8872_p2 = scmp.lt.s32.totalorder %s11140_s8, %s8870_s20  ;;  %p8873_p3 = scmp.lt.s32.totalorder %s8871_s21, %s8865_s18 }
  0x37   : > { %7826 = vmatprep.subr.mxu1 %v9146_v50  ;;  %v501_v63 = vand.u32 4294901760, %v500_v57  ;;  %v511_v0 = vand.u32 4294901760, %v510_v59  ;;  %v530_v1 = vsub.f32 %v9158_v55, %v529_v60  ;;  %v9246_v36 = vsel %vm412_vm1, %v7225_v18, 0  ;;  %v7231_v57 = vld [vmem:[%s9102_s14 + $0x80] sm:$0xff]  ;;  %p8868_p1 = pneg %p8867_p0 }
  0x38   : > { %7827 = vmatpush3.msra.mxu1 %v9146_v50  ;;  %v521_v2 = vand.u32 4294901760, %v520_v61  ;;  %v9252_v37 = vand.u32 4294901760, %v9216_v14  ;;  %v9255_v41 = vsub.f32 %v392_v10, %v9218_v15  ;;  %v9258_v42 = vsel %vm412_vm1, %v7227_v20, 0  ;;  %p8874_p4 = por %p8873_p3, %p8872_p2 }
  0x39   : > { %7818 = vmatprep.mubr.f32.mxu0 %v501_v63  ;;  %7828 = vmatprep.subr.mxu1 %v9165_v58  ;;  %v531_v5 = vand.u32 4294901760, %v530_v1  ;;  %v9264_v45 = vsub.f32 %v1031_v11, %v9225_v19  ;;  %v1040_v46 = vsel %vm412_vm1, %v406_v22, 0  ;;  %v1183_v59 = vsub.f32 %v9210_v12, %v9239_v31  ;;  %v7232_v63 = vld [vmem:[%s9102_s14 + $0x88] sm:$0xff] }
  0x3a   : > { %7819 = vmatmul.mubr.f32.vlgmr.msra.gmra.mxu0 %v511_v0  ;;  %7829 = vmatpush3.msra.mxu1 %v9165_v58  ;;  %v9287_v61 = vsel %vm412_vm1, %v7230_v43, 0  ;;  %v9291_v62 = vand.u32 4294901760, %v1040_v46  ;;  %v9301_v0 = vand.u32 4294901760, %v9255_v41  ;;  %v9304_v1 = vsel %vm412_vm1, %v7231_v57, 0  ;;  %v7216_v57 = vld [vmem:[%s11186_s1 + $0x38] sm:$0xff]  ;;  %p8875_p5 = pnand %p8874_p4, %p8868_p1 }
  0x3b   : > { %7837 = vmatpush3.msra.mxu0 %v9100_v29  ;;  %7831 = vmatmul.mubr.f32.vlgmr.msra.gmra.mxu1 %v9123_v40  ;;  %v9317_v3 = vsel %vm412_vm1, %v7232_v63, 0  ;;  %v7223_v63 = vld [vmem:[%s9102_s14 + $0x48] sm:$0xff]  ;;  %vm4224_vm3 = vcmask 523264   ;;  %vm7118_vm8 = vcmask 261120  }
  0x3c   : > { %7848 = vmatprep.subr.mxu1 %v9090_v26  ;;  %7838 = vmatprep.subr.mxu0 %v9093_v27  ;;  %v9324_v7 = vsub.f32 %v1040_v46, %v9291_v62  ;;  %v1197_v11 = vsub.f32 %v9255_v41, %v9301_v0 }
  0x3d   : > { %7849 = vmatpush3.msra.mxu1 %v9090_v26  ;;  %7821 = vmatprep.mubr.f32.mxu0 %v521_v2  ;;  %v9314_v2 = vand.u32 4294901760, %v1183_v59  ;;  %v7222_v59 = vld [vmem:[%s9102_s14 + $0x40] sm:$0xff] }
  0x3e   : > { %7839 = vmatpush3.msra.mxu0 %v9093_v27  ;;  %7833 = vmatprep.mubr.f32.mxu1 %v9131_v44  ;;  %v9354_v20 = vand.u32 4294901760, %v1197_v11  ;;  %v1655_v11 = vsel %vm412_vm1, %v7223_v63, 0 }
  0x3f   : > { %7822 = vmatmul.mubr.f32.gmra.mxu0 %v531_v5  ;;  %7850 = vmatprep.subr.mxu1 %v9085_v24  ;;  %v7234_v5 = vld [vmem:[%s9102_s14 + $0x98] sm:$0xff] }
  0x40   : > { %7834 = vmatmul.mubr.f32.gmra.mxu1 %v9144_v49  ;;  %7840 = vmatprep.subr.mxu0 %v9096_v28  ;;  %v9345_v17 = vsel %vm412_vm1, %v7234_v5, 0  ;;  %v1652_v5 = vsel %vm412_vm1, %v7222_v59, 0 }
  0x41   : > { %7851 = vmatpush3.msra.mxu1 %v9085_v24  ;;  %7841 = vmatpush3.msra.mxu0 %v9096_v28 }
  0x42   : > { %7842 = vmatprep.mubr.f32.mxu0 %v9138_v47  ;;  %7852 = vmatprep.subr.mxu1 %v9087_v25  ;;  %v9268_v47 = vsel %vm412_vm1, %v7228_v23, 0 }
  0x43   : > { %7860 = vmatprep.subr.mxu0 %v9119_v38  ;;  %7843 = vmatmul.mubr.f32.vlgmr.msra.gmra.mxu0 %v9141_v48  ;;  %v9271_v48 = vsel %vm412_vm1, %v7229_v30, 0 }
  0x44   : > { %7853 = vmatpush3.msra.mxu1 %v9087_v25  ;;  %7854 = vmatprep.mubr.f32.mxu1 %v499_v53  ;;  %v9276_v53 = vsub.f32 %v1034_v13, %v9230_v21 }
  0x45   : > { %7861 = vmatpush3.msra.mxu0 %v9119_v38  ;;  %7855 = vmatmul.mubr.f32.vlgmr.msra.gmra.mxu1 %v509_v54  ;;  %v9278_v54 = vand.u32 4294901760, %v1037_v32 }
  0x46   : > { %7872 = vmatprep.subr.mxu1 %v9090_v26  ;;  %7862 = vmatprep.subr.mxu0 %v9109_v33 }
  0x47   : > { %7873 = vmatpush3.msra.mxu1 %v9090_v26  ;;  %7845 = vmatprep.mubr.f32.mxu0 %v9150_v51  ;;  %v1190_v51 = vsub.f32 %v9216_v14, %v9252_v37 }
  0x48   : > { %7863 = vmatpush3.msra.mxu0 %v9109_v33  ;;  %7857 = vmatprep.mubr.f32.mxu1 %v519_v56  ;;  %v1115_v56 = vand.u32 4294901760, %v9264_v45 }
  0x49   : > { %7846 = vmatmul.mubr.f32.gmra.mxu0 %v9158_v55  ;;  %7874 = vmatprep.subr.mxu1 %v9085_v24  ;;  %v1125_v55 = vand.u32 4294901760, %v9276_v53  ;;  %v9328_v9 = vand.u32 4294901760, %v1190_v51  ;;  %v9391_v51 = vand.u32 4294901760, %v7216_v57 }
  0x4a   : > { %7858 = vmatmul.mubr.f32.gmra.mxu1 %v529_v60  ;;  %7864 = vmatprep.subr.mxu0 %v9113_v35  ;;  %v9310_v60 = vsub.f32 %v1037_v32, %v9278_v54  ;;  %v1116_v10 = vsub.f32 %v9264_v45, %v1115_v56 }
  0x4b   : > { %7875 = vmatpush3.msra.mxu1 %v9085_v24  ;;  %7865 = vmatpush3.msra.mxu0 %v9113_v35  ;;  %v1126_v13 = vsub.f32 %v9276_v53, %v1125_v55 }
  0x4c   : > { %7866 = vmatprep.mubr.f32.mxu0 %v9121_v39  ;;  %7876 = vmatprep.subr.mxu1 %v9087_v25  ;;  %v1135_v16 = vand.u32 4294901760, %v9310_v60  ;;  %v1117_v18 = vand.u32 4294901760, %v1116_v10 }
  0x4d   : > { %7884 = vmatprep.subr.mxu0 %v9193_v6  ;;  %7867 = vmatmul.mubr.f32.vlgmr.msra.gmra.mxu0 %v9123_v40  ;;  %v1127_v22 = vand.u32 4294901760, %v1126_v13 }
  0x4e   : > { %7877 = vmatpush3.msra.mxu1 %v9087_v25  ;;  %7878 = vmatprep.mubr.f32.mxu1 %v9121_v39  ;;  %v9342_v39 = vsel %vm412_vm1, %v7233_v4, 0  ;;  %v1136_v23 = vsub.f32 %v9310_v60, %v1135_v16  ;;  %v7215_v4 = vld [vmem:[%s11186_s1 + $0x30] sm:$0xff] }
  0x4f   : > { %7885 = vmatpush3.msra.mxu0 %v9193_v6  ;;  %7879 = vmatmul.mubr.f32.vlgmr.msra.gmra.mxu1 %v9123_v40  ;;  %v1145_v40 = vand.u32 4294901760, %v9324_v7  ;;  %v9407_v13 = vand.u32 4294901760, %v7215_v4 }
  0x50   : > { %7896 = vmatprep.subr.mxu1 %v9314_v2  ;;  %7886 = vmatprep.subr.mxu0 %v9197_v8 }
  0x51   : > { %7897 = vmatpush3.msra.mxu1 %v9314_v2  ;;  %7869 = vmatprep.mubr.f32.mxu0 %v9131_v44  ;;  %v1146_v30 = vsub.f32 %v9324_v7, %v1145_v40  ;;  %11266 = vst [vmem:[#allocation8_spill] sm:$0xff] %v9407_v13 }
  0x52   : > { %7887 = vmatpush3.msra.mxu0 %v9197_v8  ;;  %7881 = vmatprep.mubr.f32.mxu1 %v9131_v44  ;;  %v7217_v44 = vld [vmem:[%s11186_s1 + $0x40] sm:$0x3] }
  0x53   : > { %7870 = vmatmul.mubr.f32.gmra.mxu0 %v9144_v49  ;;  %7898 = vmatprep.subr.mxu1 %v9328_v9  ;;  %v1664_v32 = vsel %vm425_vm0, %v7217_v44, 0  ;;  %v1147_v43 = vand.u32 4294901760, %v1146_v30 }
  0x54   : > { %7882 = vmatmul.mubr.f32.gmra.mxu1 %v9144_v49  ;;  %7888 = vmatprep.subr.mxu0 %v9218_v15  ;;  %v1137_v49 = vand.u32 4294901760, %v1136_v23  ;;  %v9380_v46 = vand.u32 4294901760, %v1664_v32  ;;  %v9416_v23 = vand.u32 4294901760, %v1655_v11 }
  0x55   : > { %7899 = vmatpush3.msra.mxu1 %v9328_v9  ;;  %7889 = vmatpush3.msra.mxu0 %v9218_v15 }
  0x56   : > { %7890 = vmatprep.mubr.f32.mxu0 %v1117_v18  ;;  %7900 = vmatprep.subr.mxu1 %v9354_v20  ;;  %v9400_v10 = vsub.f32 %v1664_v32, %v9380_v46  ;;  %v9409_v18 = vand.u32 4294901760, %v1652_v5  ;;  %v9454_v32 = vand.u32 4294901760, %v9246_v36 }
  0x57   : > { %7908 = vmatprep.subr.mxu0 %v9210_v12  ;;  %7891 = vmatmul.mubr.f32.vlgmr.msra.gmra.mxu0 %v1127_v22  ;;  %v9414_v22 = vsub.f32 %v7216_v57, %v9391_v51 }
  0x58   : > { %7901 = vmatpush3.msra.mxu1 %v9354_v20  ;;  %7902 = vmatprep.mubr.f32.mxu1 %v9225_v19  ;;  %11265 = vst [vmem:[#allocation7_spill] sm:$0xff] %v9400_v10  ;;  %v9422_v44 = vand.u32 4294901760, %v9400_v10  ;;  %v9430_v30 = vsub.f32 %v1652_v5, %v9409_v18  ;;  %v9484_v59 = vsub.f32 %v9246_v36, %v9454_v32 }
  0x59   : > { %7909 = vmatpush3.msra.mxu0 %v9210_v12  ;;  %7903 = vmatmul.mubr.f32.vlgmr.msra.gmra.mxu1 %v9230_v21  ;;  %11267 = vst [vmem:[#allocation9_spill] sm:$0xff] %v9414_v22 }
  0x5a   : > { %7920 = vmatprep.subr.mxu1 %v9193_v6  ;;  %7910 = vmatprep.subr.mxu0 %v9216_v14  ;;  %11268 = vst [vmem:[#allocation10_spill] sm:$0xff] %v9422_v44 }
  0x5b   : > { %7921 = vmatpush3.msra.mxu1 %v9193_v6  ;;  %7893 = vmatprep.mubr.f32.mxu0 %v1137_v49  ;;  %v9433_v49 = vsub.f32 %v7215_v4, %v9407_v13 }
  0x5c   : > { %7911 = vmatpush3.msra.mxu0 %v9216_v14  ;;  %7905 = vmatprep.mubr.f32.mxu1 %v9278_v54 }
  0x5d   : > { %7894 = vmatmul.mubr.f32.gmra.mxu0 %v1147_v43  ;;  %7922 = vmatprep.subr.mxu1 %v9197_v8  ;;  %11269 = vst [vmem:[#allocation11_spill] sm:$0xff] %v9433_v49  ;;  %v9460_v43 = vand.u32 4294901760, %v9430_v30 }
  0x5e   : > { %7906 = vmatmul.mubr.f32.gmra.mxu1 %v9291_v62  ;;  %7912 = vmatprep.subr.mxu0 %v9255_v41 }
  0x5f   : > { %7923 = vmatpush3.msra.mxu1 %v9197_v8  ;;  %7913 = vmatpush3.msra.mxu0 %v9255_v41 }
  0x60   : > { %7914 = vmatprep.mubr.f32.mxu0 %v9264_v45  ;;  %7924 = vmatprep.subr.mxu1 %v9218_v15  ;;  %v9438_v45 = vand.u32 4294901760, %v9414_v22 }
  0x61   : > { %7932 = vmatprep.subr.mxu0 %v9239_v31  ;;  %7915 = vmatmul.mubr.f32.vlgmr.msra.gmra.mxu0 %v9276_v53  ;;  %v9441_v53 = vsub.f32 %v1655_v11, %v9416_v23 }
  0x62   : > { %7925 = vmatpush3.msra.mxu1 %v9218_v15  ;;  %7926 = vmatprep.mubr.f32.mxu1 %v1115_v56  ;;  %11270 = vst [vmem:[#allocation12_spill] sm:$0xff] %v9438_v45  ;;  %v9444_v56 = vand.u32 4294901760, %v9243_v34 }
  0x63   : > { %7933 = vmatpush3.msra.mxu0 %v9239_v31  ;;  %7927 = vmatmul.mubr.f32.vlgmr.msra.gmra.mxu1 %v1125_v55  ;;  %v1804_v55 = vsub.f32 %v9400_v10, %v9422_v44  ;;  %v9470_v57 = vand.u32 4294901760, %v9441_v53 }
  0x64   : > { %7944 = vmatprep.subr.mxu1 %v9193_v6  ;;  %7934 = vmatprep.subr.mxu0 %v9252_v37 }
  0x65   : > { %7945 = vmatpush3.msra.mxu1 %v9193_v6  ;;  %7917 = vmatprep.mubr.f32.mxu0 %v9310_v60  ;;  %v9463_v60 = vand.u32 4294901760, %v9433_v49  ;;  %v1747_v36 = vsub.f32 %v9441_v53, %v9470_v57 }
  0x66   : > { %7935 = vmatpush3.msra.mxu0 %v9252_v37  ;;  %7929 = vmatprep.mubr.f32.mxu1 %v1135_v16  ;;  %v1811_v16 = vsub.f32 %v9414_v22, %v9438_v45 }
  0x67   : > { %7918 = vmatmul.mubr.f32.gmra.mxu0 %v9324_v7  ;;  %7946 = vmatprep.subr.mxu1 %v9197_v8  ;;  %11271 = vst [vmem:[#allocation13_spill] sm:$0xff] %v9463_v60  ;;  %v9474_v7 = vsub.f32 %v9243_v34, %v9444_v56  ;;  %v1737_v34 = vsub.f32 %v9430_v30, %v9460_v43 }
  0x68   : > { %7930 = vmatmul.mubr.f32.gmra.mxu1 %v1145_v40  ;;  %7936 = vmatprep.subr.mxu0 %v9301_v0  ;;  %v9478_v40 = vand.u32 4294901760, %v1804_v55  ;;  %v1818_v63 = vsub.f32 %v9433_v49, %v9463_v60  ;;  %v9494_v4 = vand.u32 4294901760, %v1811_v16  ;;  %v9516_v55 = vand.u32 4294901760, %v1747_v36 }
  0x69   : > { %7947 = vmatpush3.msra.mxu1 %v9197_v8  ;;  %7937 = vmatpush3.msra.mxu0 %v9301_v0  ;;  %v9499_v5 = vand.u32 4294901760, %v9474_v7  ;;  %v9558_v36 = vand.u32 4294901760, %v9268_v47 }
  0x6a   : > { %7938 = vmatprep.mubr.f32.mxu0 %v9225_v19  ;;  %7948 = vmatprep.subr.mxu1 %v9218_v15  ;;  %11272 = vst [vmem:[#allocation14_spill] sm:$0xff] %v9494_v4  ;;  %v9512_v11 = vand.u32 4294901760, %v1818_v63  ;;  %v9553_v63 = vand.u32 4294901760, %v9258_v42 }
  0x6b   : > { %7956 = vmatprep.subr.mxu0 %v9380_v46  ;;  %7939 = vmatmul.mubr.f32.vlgmr.msra.gmra.mxu0 %v9230_v21  ;;  %v1757_v16 = vsub.f32 %v9474_v7, %v9499_v5 }
  0x6c   : > { %7949 = vmatpush3.msra.mxu1 %v9218_v15  ;;  %7950 = vmatprep.mubr.f32.mxu1 %v9225_v19  ;;  %v9506_v19 = vand.u32 4294901760, %v9484_v59  ;;  %11273 = vst [vmem:[#allocation15_spill] sm:$0xff] %v9512_v11 }
  0x6d   : > { %7957 = vmatpush3.msra.mxu0 %v9380_v46  ;;  %7951 = vmatmul.mubr.f32.vlgmr.msra.gmra.mxu1 %v9230_v21  ;;  %v9510_v21 = vand.u32 4294901760, %v1737_v34  ;;  %v9530_v34 = vand.u32 4294901760, %v1757_v16  ;;  %v9568_v16 = vsub.f32 %v9258_v42, %v9553_v63  ;;  %v9584_v42 = vand.u32 4294901760, %v9287_v61 }
  0x6e   : > { %7968 = vmatprep.subr.mxu1 %v9478_v40  ;;  %7958 = vmatprep.subr.mxu0 %v9391_v51 }
  0x6f   : > { %7969 = vmatpush3.msra.mxu1 %v9478_v40  ;;  %7941 = vmatprep.mubr.f32.mxu0 %v9278_v54 }
  0x70   : > { %7959 = vmatpush3.msra.mxu0 %v9391_v51  ;;  %7953 = vmatprep.mubr.f32.mxu1 %v9278_v54  ;;  %v1767_v54 = vsub.f32 %v9484_v59, %v9506_v19 }
  0x71   : > { %7942 = vmatmul.mubr.f32.gmra.mxu0 %v9291_v62  ;;  %7970 = vmatprep.subr.mxu1 %v9494_v4 }
  0x72   : > { %7954 = vmatmul.mubr.f32.gmra.mxu1 %v9291_v62  ;;  %7960 = vmatprep.subr.mxu0 %v9407_v13  ;;  %v9536_v62 = vand.u32 4294901760, %v1767_v54  ;;  %v9574_v54 = vsub.f32 %v9268_v47, %v9558_v36  ;;  %v2368_v47 = vand.u32 4294901760, %v9568_v16 }
  0x73   : > { %7971 = vmatpush3.msra.mxu1 %v9494_v4  ;;  %7961 = vmatpush3.msra.mxu0 %v9407_v13 }
  0x74   : > { %7962 = vmatprep.mubr.f32.mxu0 %v9510_v21  ;;  %7972 = vmatprep.subr.mxu1 %v9512_v11 }
  0x75   : > { %7980 = vmatprep.subr.mxu0 %v9400_v10  ;;  %7963 = vmatmul.mubr.f32.vlgmr.msra.gmra.mxu0 %v9516_v55 }
  0x76   : > { %7973 = vmatpush3.msra.mxu1 %v9512_v11  ;;  %7974 = vmatprep.mubr.f32.mxu1 %v9409_v18 }
  0x77   : > { %7981 = vmatpush3.msra.mxu0 %v9400_v10  ;;  %7975 = vmatmul.mubr.f32.vlgmr.msra.gmra.mxu1 %v9416_v23 }
  0x78   : > { %7992 = vmatprep.subr.mxu1 %v9380_v46  ;;  %7982 = vmatprep.subr.mxu0 %v9414_v22 }
  0x79   : > { %7993 = vmatpush3.msra.mxu1 %v9380_v46  ;;  %7965 = vmatprep.mubr.f32.mxu0 %v9530_v34 }
  0x7a   : > { %7983 = vmatpush3.msra.mxu0 %v9414_v22  ;;  %7977 = vmatprep.mubr.f32.mxu1 %v9444_v56  ;;  %v9602_v22 = vsub.f32 %v9287_v61, %v9584_v42 }
  0x7b   : > { %7966 = vmatmul.mubr.f32.gmra.mxu0 %v9536_v62  ;;  %7994 = vmatprep.subr.mxu1 %v9391_v51 }
  0x7c   : > { %7978 = vmatmul.mubr.f32.gmra.mxu1 %v9454_v32  ;;  %7984 = vmatprep.subr.mxu0 %v9433_v49  ;;  %v2398_v61 = vand.u32 4294901760, %v9602_v22 }
  0x7d   : > { %7995 = vmatpush3.msra.mxu1 %v9391_v51  ;;  %7985 = vmatpush3.msra.mxu0 %v9433_v49 }
  0x7e   : > { %7986 = vmatprep.mubr.f32.mxu0 %v9430_v30  ;;  %7996 = vmatprep.subr.mxu1 %v9407_v13 }
  0x7f   : > { %8004 = vmatprep.subr.mxu0 %v9422_v44  ;;  %7987 = vmatmul.mubr.f32.vlgmr.msra.gmra.mxu0 %v9441_v53 }
  0x80   : > { %7997 = vmatpush3.msra.mxu1 %v9407_v13  ;;  %7998 = vmatprep.mubr.f32.mxu1 %v9460_v43 }
  0x81   : > { %8005 = vmatpush3.msra.mxu0 %v9422_v44  ;;  %7999 = vmatmul.mubr.f32.vlgmr.msra.gmra.mxu1 %v9470_v57  ;;  %v9577_v44 = vand.u32 4294901760, %v9271_v48 }
  0x82   : > { %8016 = vmatprep.subr.mxu1 %v9380_v46  ;;  %8006 = vmatprep.subr.mxu0 %v9438_v45 }
  0x83   : > { %8017 = vmatpush3.msra.mxu1 %v9380_v46  ;;  %7989 = vmatprep.mubr.f32.mxu0 %v9474_v7  ;;  %v9594_v49 = vsub.f32 %v9271_v48, %v9577_v44 }
  0x84   : > { %8007 = vmatpush3.msra.mxu0 %v9438_v45  ;;  %8001 = vmatprep.mubr.f32.mxu1 %v9499_v5  ;;  %v2378_v45 = vand.u32 4294901760, %v9574_v54 }
  0x85   : > { %7990 = vmatmul.mubr.f32.gmra.mxu0 %v9484_v59  ;;  %8018 = vmatprep.subr.mxu1 %v9391_v51  ;;  %v2388_v10 = vand.u32 4294901760, %v9594_v49 }
  0x86   : > { %8002 = vmatmul.mubr.f32.gmra.mxu1 %v9506_v19  ;;  %8008 = vmatprep.subr.mxu0 %v9463_v60  ;;  %v2379_v48 = vsub.f32 %v9574_v54, %v2378_v45 }
  0x87   : > { %8019 = vmatpush3.msra.mxu1 %v9391_v51  ;;  %8009 = vmatpush3.msra.mxu0 %v9463_v60  ;;  %v2369_v60 = vsub.f32 %v9568_v16, %v2368_v47  ;;  %v2389_v4 = vsub.f32 %v9594_v49, %v2388_v10 }
  0x88   : > { %8010 = vmatprep.mubr.f32.mxu0 %v9409_v18  ;;  %8020 = vmatprep.subr.mxu1 %v9407_v13 }
  0x89   : > { %8028 = vmatprep.subr.mxu0 %v9090_v26  ;;  %8011 = vmatmul.mubr.f32.vlgmr.msra.gmra.mxu0 %v9416_v23  ;;  %v2370_v11 = vand.u32 4294901760, %v2369_v60  ;;  %v2390_v60 = vand.u32 4294901760, %v2389_v4 }
  0x8a   : > { %8021 = vmatpush3.msra.mxu1 %v9407_v13  ;;  %8022 = vmatprep.mubr.f32.mxu1 %v9409_v18  ;;  %v2380_v13 = vand.u32 4294901760, %v2379_v48 }
  0x8b   : > { %8029 = vmatpush3.msra.mxu0 %v9090_v26  ;;  %8023 = vmatmul.mubr.f32.vlgmr.msra.gmra.mxu1 %v9416_v23 }
  0x8c   : > { %8040 = vmatprep.subr.mxu1 %v9152_v52  ;;  %8030 = vmatprep.subr.mxu0 %v9085_v24 }
  0x8d   : > { %8041 = vmatpush3.msra.mxu1 %v9152_v52  ;;  %8013 = vmatprep.mubr.f32.mxu0 %v9444_v56  ;;  %v2399_v52 = vsub.f32 %v9602_v22, %v2398_v61 }
  0x8e   : > { %8031 = vmatpush3.msra.mxu0 %v9085_v24  ;;  %8025 = vmatprep.mubr.f32.mxu1 %v9444_v56 }
  0x8f   : > { %8014 = vmatmul.mubr.f32.gmra.mxu0 %v9454_v32  ;;  %8042 = vmatprep.subr.mxu1 %v9146_v50 }
  0x90   : > { %8026 = vmatmul.mubr.f32.gmra.mxu1 %v9454_v32  ;;  %8032 = vmatprep.subr.mxu0 %v9087_v25 }
  0x91   : > { %8043 = vmatpush3.msra.mxu1 %v9146_v50  ;;  %8033 = vmatpush3.msra.mxu0 %v9087_v25  ;;  %v2400_v50 = vand.u32 4294901760, %v2399_v52 }
  0x92   : > { %8034 = vmatprep.mubr.f32.mxu0 %v2370_v11  ;;  %8044 = vmatprep.subr.mxu1 %v9165_v58 }
  0x93   : > { %8052 = vmatprep.subr.mxu0 %v9100_v29  ;;  %8035 = vmatmul.mubr.f32.vlgmr.msra.gmra.mxu0 %v2380_v13  ;;  %v11281_v13 = vld [vmem:[#allocation12_spill] sm:$0xff] }
  0x94   : > { %8045 = vmatpush3.msra.mxu1 %v9165_v58  ;;  %8046 = vmatprep.mubr.f32.mxu1 %v9553_v63 }
  0x95   : > { %8053 = vmatpush3.msra.mxu0 %v9100_v29  ;;  %8047 = vmatmul.mubr.f32.vlgmr.msra.gmra.mxu1 %v9558_v36  ;;  %v9732_v29 = vand.u32 4294901760, %v9345_v17 }
  0x96   : > { %8064 = vmatprep.subr.mxu1 %v9090_v26  ;;  %8054 = vmatprep.subr.mxu0 %v9093_v27 }
  0x97   : > { %8065 = vmatpush3.msra.mxu1 %v9090_v26  ;;  %8037 = vmatprep.mubr.f32.mxu0 %v2390_v60  ;;  %v9750_v58 = vsub.f32 %v9345_v17, %v9732_v29  ;;  %v11278_v17 = vld [vmem:[#allocation9_spill] sm:$0xff] }
  0x98   : > { %8055 = vmatpush3.msra.mxu0 %v9093_v27  ;;  %8049 = vmatprep.mubr.f32.mxu1 %v9577_v44 }
  0x99   : > { %8038 = vmatmul.mubr.f32.gmra.mxu0 %v2400_v50  ;;  %8066 = vmatprep.subr.mxu1 %v9085_v24 }
  0x9a   : > { %8050 = vmatmul.mubr.f32.gmra.mxu1 %v9584_v42  ;;  %8056 = vmatprep.subr.mxu0 %v9096_v28 }
  0x9b   : > { %8067 = vmatpush3.msra.mxu1 %v9085_v24  ;;  %8057 = vmatpush3.msra.mxu0 %v9096_v28  ;;  %v9725_v28 = vand.u32 4294901760, %v9342_v39 }
  0x9c   : > { %8058 = vmatprep.mubr.f32.mxu0 %v9568_v16  ;;  %8068 = vmatprep.subr.mxu1 %v9087_v25 }
  0x9d   : > { %8076 = vmatprep.subr.mxu0 %v9119_v38  ;;  %8059 = vmatmul.mubr.f32.vlgmr.msra.gmra.mxu0 %v9574_v54 }
  0x9e   : > { %8069 = vmatpush3.msra.mxu1 %v9087_v25  ;;  %8070 = vmatprep.mubr.f32.mxu1 %v2368_v47 }
  0x9f   : > { %8077 = vmatpush3.msra.mxu0 %v9119_v38  ;;  %8071 = vmatmul.mubr.f32.vlgmr.msra.gmra.mxu1 %v2378_v45  ;;  %v9742_v38 = vsub.f32 %v9342_v39, %v9725_v28 }
  0xa0   : > { %8088 = vmatprep.subr.mxu1 %v9090_v26  ;;  %8078 = vmatprep.subr.mxu0 %v9109_v33 }
  0xa1   : > { %8089 = vmatpush3.msra.mxu1 %v9090_v26  ;;  %8061 = vmatprep.mubr.f32.mxu0 %v9594_v49 }
  0xa2   : > { %8079 = vmatpush3.msra.mxu0 %v9109_v33  ;;  %8073 = vmatprep.mubr.f32.mxu1 %v2388_v10  ;;  %v11280_v10 = vld [vmem:[#allocation10_spill] sm:$0xff] }
  0xa3   : > { %8062 = vmatmul.mubr.f32.gmra.mxu0 %v9602_v22  ;;  %8090 = vmatprep.subr.mxu1 %v9085_v24 }
  0xa4   : > { %8074 = vmatmul.mubr.f32.gmra.mxu1 %v2398_v61  ;;  %8080 = vmatprep.subr.mxu0 %v9113_v35 }
  0xa5   : > { %8091 = vmatpush3.msra.mxu1 %v9085_v24  ;;  %8081 = vmatpush3.msra.mxu0 %v9113_v35  ;;  %v9701_v24 = vand.u32 4294901760, %v9304_v1 }
  0xa6   : > { %8082 = vmatprep.mubr.f32.mxu0 %v9553_v63  ;;  %8092 = vmatprep.subr.mxu1 %v9087_v25 }
  0xa7   : > { %8100 = vmatprep.subr.mxu0 %v9193_v6  ;;  %8083 = vmatmul.mubr.f32.vlgmr.msra.gmra.mxu0 %v9558_v36  ;;  %v9716_v26 = vsub.f32 %v9304_v1, %v9701_v24 }
  0xa8   : > { %8093 = vmatpush3.msra.mxu1 %v9087_v25  ;;  %8094 = vmatprep.mubr.f32.mxu1 %v9553_v63  ;;  %v9706_v25 = vand.u32 4294901760, %v9317_v3 }
  0xa9   : > { %8101 = vmatpush3.msra.mxu0 %v9193_v6  ;;  %8095 = vmatmul.mubr.f32.vlgmr.msra.gmra.mxu1 %v9558_v36  ;;  %v3587_v33 = vand.u32 4294901760, %v9716_v26 }
  0xaa   : > { %8112 = vmatprep.subr.mxu1 %v9314_v2  ;;  %8102 = vmatprep.subr.mxu0 %v9197_v8  ;;  %v9722_v27 = vsub.f32 %v9317_v3, %v9706_v25  ;;  %v11277_v3 = vld [vmem:[#allocation7_spill] sm:$0xff] }
  0xab   : > { %8113 = vmatpush3.msra.mxu1 %v9314_v2  ;;  %8085 = vmatprep.mubr.f32.mxu0 %v9577_v44  ;;  %v11276_v2 = vld [vmem:[#allocation15_spill] sm:$0xff] }
  0xac   : > { %8103 = vmatpush3.msra.mxu0 %v9197_v8  ;;  %8097 = vmatprep.mubr.f32.mxu1 %v9577_v44  ;;  %v3597_v35 = vand.u32 4294901760, %v9722_v27 }
  0xad   : > { %8086 = vmatmul.mubr.f32.gmra.mxu0 %v9584_v42  ;;  %8114 = vmatprep.subr.mxu1 %v9328_v9 }
  0xae   : > { %8098 = vmatmul.mubr.f32.gmra.mxu1 %v9584_v42  ;;  %8104 = vmatprep.subr.mxu0 %v9218_v15 }
  0xaf   : > { %8115 = vmatpush3.msra.mxu1 %v9328_v9  ;;  %8105 = vmatpush3.msra.mxu0 %v9218_v15 }
  0xb0   : > { %8106 = vmatprep.mubr.f32.mxu0 %v9510_v21  ;;  %8116 = vmatprep.subr.mxu1 %v9354_v20 }
  0xb1   : > { %8124 = vmatprep.subr.mxu0 %v9210_v12  ;;  %8107 = vmatmul.mubr.f32.vlgmr.msra.gmra.mxu0 %v9516_v55 }
  0xb2   : > { %8117 = vmatpush3.msra.mxu1 %v9354_v20  ;;  %8118 = vmatprep.mubr.f32.mxu1 %v9409_v18  ;;  %v11279_v20 = vld [vmem:[#allocation11_spill] sm:$0xff] }
  0xb3   : > { %8125 = vmatpush3.msra.mxu0 %v9210_v12  ;;  %8119 = vmatmul.mubr.f32.vlgmr.msra.gmra.mxu1 %v9416_v23  ;;  %v3607_v12 = vand.u32 4294901760, %v9742_v38 }
  0xb4   : > { %8136 = vmatprep.subr.mxu1 %v9193_v6  ;;  %8126 = vmatprep.subr.mxu0 %v9216_v14 }
  0xb5   : > { %8137 = vmatpush3.msra.mxu1 %v9193_v6  ;;  %8109 = vmatprep.mubr.f32.mxu0 %v9530_v34 }
  0xb6   : > { %8127 = vmatpush3.msra.mxu0 %v9216_v14  ;;  %8121 = vmatprep.mubr.f32.mxu1 %v9444_v56  ;;  %v3617_v14 = vand.u32 4294901760, %v9750_v58 }
  0xb7   : > { %8110 = vmatmul.mubr.f32.gmra.mxu0 %v9536_v62  ;;  %8138 = vmatprep.subr.mxu1 %v9197_v8 }
  0xb8   : > { %8122 = vmatmul.mubr.f32.gmra.mxu1 %v9454_v32  ;;  %8128 = vmatprep.subr.mxu0 %v9255_v41  ;;  %v3618_v1 = vsub.f32 %v9750_v58, %v3617_v14 }
  0xb9   : > { %8139 = vmatpush3.msra.mxu1 %v9197_v8  ;;  %8129 = vmatpush3.msra.mxu0 %v9255_v41  ;;  %v3608_v41 = vsub.f32 %v9742_v38, %v3607_v12 }
  0xba   : > { %8130 = vmatprep.mubr.f32.mxu0 %v9430_v30  ;;  %8140 = vmatprep.subr.mxu1 %v9218_v15  ;;  %v3619_v39 = vand.u32 4294901760, %v3618_v1 }
  0xbb   : > { %8148 = vmatprep.subr.mxu0 %v9239_v31  ;;  %8131 = vmatmul.mubr.f32.vlgmr.msra.gmra.mxu0 %v9441_v53  ;;  %v3609_v9 = vand.u32 4294901760, %v3608_v41 }
  0xbc   : > { %8141 = vmatpush3.msra.mxu1 %v9218_v15  ;;  %8142 = vmatprep.mubr.f32.mxu1 %v9460_v43 }
  0xbd   : > { %8149 = vmatpush3.msra.mxu0 %v9239_v31  ;;  %8143 = vmatmul.mubr.f32.vlgmr.msra.gmra.mxu1 %v9470_v57  ;;  %v11274_v31 = vld [vmem:[#allocation14_spill] sm:$0xff] }
  0xbe   : > { %8160 = vmatprep.subr.mxu1 %v9193_v6  ;;  %8150 = vmatprep.subr.mxu0 %v9252_v37 }
  0xbf   : > { %8161 = vmatpush3.msra.mxu1 %v9193_v6  ;;  %8133 = vmatprep.mubr.f32.mxu0 %v9474_v7  ;;  %v3588_v6 = vsub.f32 %v9716_v26, %v3587_v33 }
  0xc0   : > { %8151 = vmatpush3.msra.mxu0 %v9252_v37  ;;  %8145 = vmatprep.mubr.f32.mxu1 %v9499_v5 }
  0xc1   : > { %8134 = vmatmul.mubr.f32.gmra.mxu0 %v9484_v59  ;;  %8162 = vmatprep.subr.mxu1 %v9197_v8 }
  0xc2   : > { %8146 = vmatmul.mubr.f32.gmra.mxu1 %v9506_v19  ;;  %8152 = vmatprep.subr.mxu0 %v9301_v0 }
  0xc3   : > { %8163 = vmatpush3.msra.mxu1 %v9197_v8  ;;  %8153 = vmatpush3.msra.mxu0 %v9301_v0  ;;  %v3598_v8 = vsub.f32 %v9722_v27, %v3597_v35  ;;  %v11275_v0 = vld [vmem:[#allocation8_spill] sm:$0xff] }
  0xc4   : > { %8154 = vmatprep.mubr.f32.mxu0 %v9409_v18  ;;  %8164 = vmatprep.subr.mxu1 %v9218_v15 }
  0xc5   : > { %8172 = vmatprep.subr.mxu0 %v9380_v46  ;;  %8155 = vmatmul.mubr.f32.vlgmr.msra.gmra.mxu0 %v9416_v23  ;;  %v3599_v37 = vand.u32 4294901760, %v3598_v8 }
  0xc6   : > { %8165 = vmatpush3.msra.mxu1 %v9218_v15  ;;  %8166 = vmatprep.mubr.f32.mxu1 %v9409_v18  ;;  %v3589_v15 = vand.u32 4294901760, %v3588_v6  ;;  %v11282_v18 = vld [vmem:[#allocation13_spill] sm:$0xff] }
  0xc7   : > { %8173 = vmatpush3.msra.mxu0 %v9380_v46  ;;  %8167 = vmatmul.mubr.f32.vlgmr.msra.gmra.mxu1 %v9416_v23 }
  0xc8   : > { %8184 = vmatprep.subr.mxu1 %v9478_v40  ;;  %8174 = vmatprep.subr.mxu0 %v9391_v51 }
  0xc9   : > { %8185 = vmatpush3.msra.mxu1 %v9478_v40  ;;  %8157 = vmatprep.mubr.f32.mxu0 %v9444_v56 }
  0xca   : > { %8175 = vmatpush3.msra.mxu0 %v9391_v51  ;;  %8169 = vmatprep.mubr.f32.mxu1 %v9444_v56 }
  0xcb   : > { %8158 = vmatmul.mubr.f32.gmra.mxu0 %v9454_v32  ;;  %8186 = vmatprep.subr.mxu1 %v11274_v31 }
  0xcc   : > { %8170 = vmatmul.mubr.f32.gmra.mxu1 %v9454_v32  ;;  %8176 = vmatprep.subr.mxu0 %v11275_v0 }
  0xcd   : > { %8187 = vmatpush3.msra.mxu1 %v11274_v31  ;;  %8177 = vmatpush3.msra.mxu0 %v11275_v0 }
  0xce   : > { %8178 = vmatprep.mubr.f32.mxu0 %v3589_v15  ;;  %8188 = vmatprep.subr.mxu1 %v11276_v2 }
  0xcf   : > { %8196 = vmatprep.subr.mxu0 %v11277_v3  ;;  %8179 = vmatmul.mubr.f32.vlgmr.msra.gmra.mxu0 %v3599_v37 }
  0xd0   : > { %8189 = vmatpush3.msra.mxu1 %v11276_v2  ;;  %8190 = vmatprep.mubr.f32.mxu1 %v9701_v24 }
  0xd1   : > { %8197 = vmatpush3.msra.mxu0 %v11277_v3  ;;  %8191 = vmatmul.mubr.f32.vlgmr.msra.gmra.mxu1 %v9706_v25 }
  0xd2   : > { %8208 = vmatprep.subr.mxu1 %v9380_v46  ;;  %8198 = vmatprep.subr.mxu0 %v11278_v17 }
  0xd3   : > { %8209 = vmatpush3.msra.mxu1 %v9380_v46  ;;  %8181 = vmatprep.mubr.f32.mxu0 %v3609_v9 }
  0xd4   : > { %8199 = vmatpush3.msra.mxu0 %v11278_v17  ;;  %8193 = vmatprep.mubr.f32.mxu1 %v9725_v28 }
  0xd5   : > { %8182 = vmatmul.mubr.f32.gmra.mxu0 %v3619_v39  ;;  %8210 = vmatprep.subr.mxu1 %v9391_v51 }
  0xd6   : > { %8194 = vmatmul.mubr.f32.gmra.mxu1 %v9732_v29  ;;  %8200 = vmatprep.subr.mxu0 %v11279_v20 }
  0xd7   : > { %8211 = vmatpush3.msra.mxu1 %v9391_v51  ;;  %8201 = vmatpush3.msra.mxu0 %v11279_v20 }
  0xd8   : > { %8202 = vmatprep.mubr.f32.mxu0 %v9716_v26  ;;  %8212 = vmatprep.subr.mxu1 %v11275_v0 }
  0xd9   : > { %8220 = vmatprep.subr.mxu0 %v11280_v10  ;;  %8203 = vmatmul.mubr.f32.vlgmr.msra.gmra.mxu0 %v9722_v27 }
  0xda   : > { %8213 = vmatpush3.msra.mxu1 %v11275_v0  ;;  %8214 = vmatprep.mubr.f32.mxu1 %v3587_v33 }
  0xdb   : > { %8221 = vmatpush3.msra.mxu0 %v11280_v10  ;;  %8215 = vmatmul.mubr.f32.vlgmr.msra.gmra.mxu1 %v3597_v35 }
  0xdc   : > { %8232 = vmatprep.subr.mxu1 %v9380_v46  ;;  %8222 = vmatprep.subr.mxu0 %v11281_v13 }
  0xdd   : > { %8233 = vmatpush3.msra.mxu1 %v9380_v46  ;;  %8205 = vmatprep.mubr.f32.mxu0 %v9742_v38 }
  0xde   : > { %8223 = vmatpush3.msra.mxu0 %v11281_v13  ;;  %8217 = vmatprep.mubr.f32.mxu1 %v3607_v12 }
  0xdf   : > { %8206 = vmatmul.mubr.f32.gmra.mxu0 %v9750_v58  ;;  %8234 = vmatprep.subr.mxu1 %v9391_v51 }
  0xe0   : > { %8218 = vmatmul.mubr.f32.gmra.mxu1 %v3617_v14  ;;  %8224 = vmatprep.subr.mxu0 %v11282_v18 }
  0xe1   : > { %8235 = vmatpush3.msra.mxu1 %v9391_v51  ;;  %8225 = vmatpush3.msra.mxu0 %v11282_v18 }
  0xe2   : > { %8226 = vmatprep.mubr.f32.mxu0 %v9701_v24  ;;  %8236 = vmatprep.subr.mxu1 %v11275_v0 }
  0xe3   : > { %8227 = vmatmul.mubr.f32.vlgmr.msra.gmra.mxu0 %v9706_v25  ;;  %8237 = vmatpush3.msra.mxu1 %v11275_v0 }
  0xe4   : > { %8238 = vmatprep.mubr.f32.mxu1 %v9701_v24  ;;  %8229 = vmatprep.mubr.f32.mxu0 %v9725_v28 }
  0xe5   : > { %8239 = vmatmul.mubr.f32.vlgmr.msra.gmra.mxu1 %v9706_v25 }
  0xe6   : > { %8241 = vmatprep.mubr.f32.mxu1 %v9725_v28 }
  0xe7   : > { %8230 = vmatmul.mubr.f32.gmra.mxu0 %v9732_v29 }
  0xe9   : > { %8242 = vmatmul.mubr.f32.gmra.mxu1 %v9732_v29 }
  0xfa   : > { %v7820_v46 = vpop.f32.mrf.mxu0 }
  0xfb   : > { %v7832_v51 = vpop.f32.mrf.mxu1 }
  0xfc   : > { %v503_v22 = vpop.f32.mrf.mxu0  ;;  %v626_v38 = vadd.f32 %v7832_v51, %v7820_v46 }
  0xfd   : > { %v619_v23 = vpop.f32.mrf.mxu1 }
  0xfe   : > { %v620_v58 = vadd.f32 %v619_v23, %v503_v22 }
  0xff   : > { %v7823_v44 = vpop.f32.mrf.mxu0 }
 0x100   : > { %v7835_v30 = vpop.f32.mrf.mxu1 }
 0x101   : > { %v523_v49 = vpop.f32.mrf.mxu0  ;;  %v638_v31 = vadd.f32 %v7835_v30, %v7823_v44 }
 0x102   : > { %v631_v45 = vpop.f32.mrf.mxu1 }
 0x103   : > { %v7844_v53 = vpop.f32.mrf.mxu0  ;;  %v632_v1 = vadd.f32 %v631_v45, %v523_v49 }
 0x104   : > { %v723_v8 = vadd.f32 %v7844_v53, %v626_v38 }
 0x105   : > { %v7856_v56 = vpop.f32.mrf.mxu1  ;;  %v715_v32 = vpop.f32.mrf.mxu0 }
 0x106   : > { %v716_v12 = vadd.f32 %v715_v32, %v620_v58  ;;  %v821_v41 = vadd.f32 %v7856_v56, %v723_v8 }
 0x107   : > { %v812_v43 = vpop.f32.mrf.mxu1 }
 0x108   : > { %v813_v2 = vadd.f32 %v812_v43, %v716_v12 }
 0x109   : > { %v7847_v57 = vpop.f32.mrf.mxu0 }
 0x10a   : > { %v7859_v7 = vpop.f32.mrf.mxu1  ;;  %v737_v3 = vadd.f32 %v7847_v57, %v638_v31 }
 0x10b   : > { %v729_v40 = vpop.f32.mrf.mxu0 }
 0x10c   : > { %v828_v59 = vpop.f32.mrf.mxu1  ;;  %v730_v17 = vadd.f32 %v729_v40, %v632_v1  ;;  %v837_v18 = vadd.f32 %v7859_v7, %v737_v3 }
 0x10d   : > { %v7868_v4 = vpop.f32.mrf.mxu0 }
 0x10e   : > { %v923_v39 = vadd.f32 %v7868_v4, %v821_v41  ;;  %v829_v22 = vadd.f32 %v828_v59, %v730_v17 }
 0x10f   : > { %v7880_v5 = vpop.f32.mrf.mxu1  ;;  %v916_v19 = vpop.f32.mrf.mxu0 }
 0x110   : > { %v917_v20 = vadd.f32 %v916_v19, %v813_v2  ;;  %v1015_v51 = vadd.f32 %v7880_v5, %v923_v39 }
 0x111   : > { %v1008_v21 = vpop.f32.mrf.mxu1 }
 0x112   : > { %v1009_v23 = vadd.f32 %v1008_v21, %v917_v20 }
 0x113   : > { %v7871_v11 = vpop.f32.mrf.mxu0 }
 0x114   : > { %v7883_v55 = vpop.f32.mrf.mxu1  ;;  %v935_v44 = vadd.f32 %v7871_v11, %v837_v18 }
 0x115   : > { %v928_v34 = vpop.f32.mrf.mxu0 }
 0x116   : > { %v1020_v62 = vpop.f32.mrf.mxu1  ;;  %v929_v32 = vadd.f32 %v928_v34, %v829_v22  ;;  %v1027_v43 = vadd.f32 %v7883_v55, %v935_v44 }
 0x117   : > { %v7892_v63 = vpop.f32.mrf.mxu0 }
 0x118   : > { %v1130_v53 = vadd.f32 %v7892_v63, %v1015_v51  ;;  %v1021_v40 = vadd.f32 %v1020_v62, %v929_v32 }
 0x119   : > { %v7904_v36 = vpop.f32.mrf.mxu1  ;;  %v1119_v16 = vpop.f32.mrf.mxu0 }
 0x11a   : > { %v1120_v38 = vadd.f32 %v1119_v16, %v1009_v23  ;;  %v1242_v4 = vadd.f32 %v7904_v36, %v1130_v53 }
 0x11b   : > { %v1235_v54 = vpop.f32.mrf.mxu1 }
 0x11c   : > { %v1236_v19 = vadd.f32 %v1235_v54, %v1120_v38 }
 0x11d   : > { %v7895_v42 = vpop.f32.mrf.mxu0 }
 0x11e   : > { %v7907_v47 = vpop.f32.mrf.mxu1  ;;  %v1150_v58 = vadd.f32 %v7895_v42, %v1027_v43 }
 0x11f   : > { %v1139_v48 = vpop.f32.mrf.mxu0 }
 0x120   : > { %v9816_v61 = vpop.f32.mrf.mxu1  ;;  %v1140_v59 = vadd.f32 %v1139_v48, %v1021_v40  ;;  %v1254_v41 = vadd.f32 %v7907_v47, %v1150_v58  ;;  %v7249_v40 = vld [vmem:[%s11188_s3 + $0x70] sm:$0xff] }
 0x121   : > { %v7916_v52 = vpop.f32.mrf.mxu0 }
 0x122   : > { %v1339_v12 = vadd.f32 %v7916_v52, %v1242_v4  ;;  %v1248_v55 = vadd.f32 %v9816_v61, %v1140_v59 }
 0x123   : > { %v7928_v60 = vpop.f32.mrf.mxu1  ;;  %v1331_v50 = vpop.f32.mrf.mxu0 }
 0x124   : > { %v1332_v21 = vadd.f32 %v1331_v50, %v1236_v19  ;;  %v1437_v16 = vadd.f32 %v7928_v60, %v1339_v12 }
 0x125   : > { %v1428_v24 = vpop.f32.mrf.mxu1 }
 0x126   : > { %v1429_v36 = vadd.f32 %v1428_v24, %v1332_v21 }
 0x127   : > { %v7919_v25 = vpop.f32.mrf.mxu0 }
 0x128   : > { %v9818_v26 = vpop.f32.mrf.mxu1  ;;  %v1353_v62 = vadd.f32 %v7919_v25, %v1254_v41 }
 0x129   : > { %v9820_v27 = vpop.f32.mrf.mxu0 }
 0x12a   : > { %v9822_v28 = vpop.f32.mrf.mxu1  ;;  %v1346_v48 = vadd.f32 %v9820_v27, %v1248_v55 }
 0x12b   : > { %v7940_v29 = vpop.f32.mrf.mxu0 }
 0x12c   : > { %v1539_v42 = vadd.f32 %v7940_v29, %v1437_v16 }
 0x12d   : > { %v9824_v33 = vpop.f32.mrf.mxu1  ;;  %v9826_v35 = vpop.f32.mrf.mxu0 }
 0x12e   : > { %v1533_v50 = vadd.f32 %v9826_v35, %v1429_v36  ;;  %v1631_v24 = vadd.f32 %v9824_v33, %v1539_v42  ;;  %v9848_v35 = vld [vmem:[%s11187_s2] ss:$0 sm:$0xff] }
 0x12f   : > { %v9828_v6 = vpop.f32.mrf.mxu1 }
 0x130   : > { %v1625_v22 = vadd.f32 %v9828_v6, %v1533_v50 }
 0x131   : > { %v9830_v14 = vpop.f32.mrf.mxu0 }
 0x132   : > { %v9832_v15 = vpop.f32.mrf.mxu1 }
 0x133   : > { %v9834_v37 = vpop.f32.mrf.mxu0 }
 0x134   : > { %v9836_v0 = vpop.f32.mrf.mxu1 }
 0x135   : > { %v7964_v9 = vpop.f32.mrf.mxu0 }
 0x137   : > { %v7976_v10 = vpop.f32.mrf.mxu1  ;;  %v1740_v13 = vpop.f32.mrf.mxu0 }
 0x138   : > { %v1863_v5 = vadd.f32 %v7976_v10, %v7964_v9  ;;  %v1453_v10 = vadd.f32 %v9818_v26, %v1353_v62 }
 0x139   : > { %v1856_v46 = vpop.f32.mrf.mxu1 }
 0x13a   : > { %v1857_v31 = vadd.f32 %v1856_v46, %v1740_v13  ;;  %v1445_v46 = vadd.f32 %v9822_v28, %v1346_v48  ;;  %v1551_v27 = vadd.f32 %v9830_v14, %v1453_v10 }
 0x13b   : > { %v7967_v30 = vpop.f32.mrf.mxu0 }
 0x13c   : > { %v7979_v56 = vpop.f32.mrf.mxu1  ;;  %v1545_v33 = vadd.f32 %v9834_v37, %v1445_v46  ;;  %v1643_v38 = vadd.f32 %v9832_v15, %v1551_v27  ;;  %v7250_v37 = vld [vmem:[%s11188_s3 + $0x78] sm:$0xff]  ;;  %v7248_v15 = vld [vmem:[%s11188_s3 + $0x68] sm:$0xff] }
 0x13d   : > { %v1760_v49 = vpop.f32.mrf.mxu0  ;;  %v1875_v3 = vadd.f32 %v7979_v56, %v7967_v30  ;;  %v9871_v58 = vand.u32 4294901760, %v7250_v37 }
 0x13e   : > { %v1868_v45 = vpop.f32.mrf.mxu1  ;;  %v1637_v12 = vadd.f32 %v9836_v0, %v1545_v33 }
 0x13f   : > { %v7988_v57 = vpop.f32.mrf.mxu0  ;;  %v1869_v17 = vadd.f32 %v1868_v45, %v1760_v49  ;;  %8244 = vmatprep.subr.mxu0 %v9871_v58 }
 0x140   : > { %v1960_v63 = vadd.f32 %v7988_v57, %v1863_v5  ;;  %8245 = vmatpush3.msra.mxu0 %v9871_v58 }
 0x141   : > { %v8000_v8 = vpop.f32.mrf.mxu1  ;;  %v1952_v7 = vpop.f32.mrf.mxu0 }
 0x142   : > { %v1953_v1 = vadd.f32 %v1952_v7, %v1857_v31  ;;  %v2058_v39 = vadd.f32 %v8000_v8, %v1960_v63  ;;  %v9873_v8 = vand.u32 4294901760, %v7249_v40  ;;  %v9875_v7 = vand.u32 4294901760, %v7248_v15 }
 0x143   : > { %v2049_v11 = vpop.f32.mrf.mxu1  ;;  %v9884_v63 = vsub.f32 %v7250_v37, %v9871_v58 }
 0x144   : > { %v2050_v47 = vadd.f32 %v2049_v11, %v1953_v1  ;;  %v9887_v41 = vsub.f32 %v7249_v40, %v9873_v8  ;;  %8246 = vmatprep.subr.mxu0 %v9873_v8 }
 0x145   : > { %v7991_v34 = vpop.f32.mrf.mxu0  ;;  %8247 = vmatpush3.msra.mxu0 %v9873_v8 }
 0x146   : > { %v8003_v2 = vpop.f32.mrf.mxu1  ;;  %v1974_v20 = vadd.f32 %v7991_v34, %v1875_v3  ;;  %v9890_v34 = vsub.f32 %v7248_v15, %v9875_v7  ;;  %v9903_v55 = vand.u32 4294901760, %v9887_v41  ;;  %8248 = vmatprep.subr.mxu0 %v9875_v7 }
 0x147   : > { %v1966_v54 = vpop.f32.mrf.mxu0  ;;  %8249 = vmatpush3.msra.mxu0 %v9875_v7 }
 0x148   : > { %v2065_v52 = vpop.f32.mrf.mxu1  ;;  %v1967_v25 = vadd.f32 %v1966_v54, %v1869_v17  ;;  %v2074_v26 = vadd.f32 %v8003_v2, %v1974_v20  ;;  %11283 = vst [vmem:[#allocation14_spill] sm:$0xff] %v9890_v34  ;;  %v9900_v2 = vand.u32 4294901760, %v9884_v63  ;;  %11285 = vst [vmem:[#allocation15_spill] sm:$0xff] %v9903_v55  ;;  %v9906_v36 = vand.u32 4294901760, %v9890_v34 }
 0x149   : > { %v8012_v9 = vpop.f32.mrf.mxu0 }
 0x14a   : > { %v2160_v60 = vadd.f32 %v8012_v9, %v2058_v39  ;;  %v2066_v53 = vadd.f32 %v2065_v52, %v1967_v25  ;;  %11284 = vst [vmem:[#allocation8_spill] sm:$0xff] %v9900_v2  ;;  %11286 = vst [vmem:[#allocation7_spill] sm:$0xff] %v9906_v36  ;;  %v4464_v3 = vsub.f32 %v9884_v63, %v9900_v2 }
 0x14b   : > { %v8024_v13 = vpop.f32.mrf.mxu1  ;;  %v2153_v61 = vpop.f32.mrf.mxu0  ;;  %v4471_v39 = vsub.f32 %v9887_v41, %v9903_v55  ;;  %v4478_v52 = vsub.f32 %v9890_v34, %v9906_v36 }
 0x14c   : > { %v2252_v29 = vadd.f32 %v8024_v13, %v2160_v60  ;;  %v2154_v18 = vadd.f32 %v2153_v61, %v2050_v47  ;;  %v4465_v17 = vand.u32 4294901760, %v4464_v3 }
 0x14d   : > { %v2245_v51 = vpop.f32.mrf.mxu1  ;;  %v4472_v47 = vand.u32 4294901760, %v4471_v39  ;;  %v4479_v10 = vand.u32 4294901760, %v4478_v52  ;;  %v7245_v39 = vld [vmem:[%s11188_s3 + $0x50] sm:$0xff] }
 0x14e   : > { %v2268_v23 = vadd.f32 %v2252_v29, %v1631_v24  ;;  %v2246_v44 = vadd.f32 %v2245_v51, %v2154_v18  ;;  %8266 = vmatprep.subr.mxu1 %v4465_v17  ;;  %v9998_v52 = vand.u32 4294901760, %v7245_v39 }
 0x14f   : > { %v8015_v30 = vpop.f32.mrf.mxu0  ;;  %8267 = vmatpush3.msra.mxu1 %v4465_v17 }
 0x150   : > { %v9853_v56 = vadd.f32 %v9848_v35, %v2268_v23  ;;  %v2267_v28 = vadd.f32 %v2246_v44, %v1625_v22  ;;  %v2172_v14 = vadd.f32 %v8015_v30, %v2074_v26  ;;  %v8027_v32 = vpop.f32.mrf.mxu1  ;;  %8268 = vmatprep.subr.mxu1 %v4472_v47  ;;  %11291 = vst [vmem:[#allocation13_spill] sm:$0xff] %v9998_v52 }
 0x151   : > { %v2165_v49 = vpop.f32.mrf.mxu0  ;;  %8269 = vmatpush3.msra.mxu1 %v4472_v47 }
 0x152   : > { %v7236_v45 = vmul.f32 -1.442695, %v9853_v56  ;;  %v9858_v6 = vadd.f32 %v9848_v35, %v2267_v28  ;;  %v2264_v43 = vadd.f32 %v8027_v32, %v2172_v14  ;;  %v2166_v57 = vadd.f32 %v2165_v49, %v2066_v53  ;;  %v2257_v4 = vpop.f32.mrf.mxu1  ;;  %8270 = vmatprep.subr.mxu1 %v4479_v10 }
 0x153   : > { %v9869_v19 = vpop.f32.mrf.mxu0  ;;  %8271 = vmatpush3.msra.mxu1 %v4479_v10  ;;  %v7244_v10 = vld [vmem:[%s11188_s3 + $0x48] sm:$0xff] }
 0x154   : > { %v7235_v5 = vmul.f32 -1.442695, %v9858_v6  ;;  %v2270_v59 = vadd.f32 %v2264_v43, %v1643_v38  ;;  %v2258_v21 = vadd.f32 %v2257_v4, %v2166_v57  ;;  %8817 = vpow2.f32 %v7236_v45  ;;  %v7247_v45 = vld [vmem:[%s11188_s3 + $0x60] sm:$0xff]  ;;  %v7246_v43 = vld [vmem:[%s11188_s3 + $0x58] sm:$0xff] }
 0x155   : > { %v9879_v11 = vpop.f32.mrf.mxu1  ;;  %v9881_v31 = vpop.f32.mrf.mxu0  ;;  %v9967_v4 = vand.u32 4294901760, %v7247_v45  ;;  %v9969_v37 = vand.u32 4294901760, %v7246_v43 }
 0x156   : > { %8819 = vpow2.f32 %v7235_v5  ;;  %v9894_v0 = vadd.f32 %v9848_v35, %v2270_v59  ;;  %v2269_v16 = vadd.f32 %v2258_v21, %v1637_v12 }
 0x157   : > { %v9897_v1 = vpop.f32.mrf.mxu1  ;;  %v9976_v12 = vsub.f32 %v7247_v45, %v9967_v4  ;;  %v9979_v5 = vsub.f32 %v7246_v43, %v9969_v37  ;;  %8250 = vmatprep.subr.mxu0 %v9967_v4 }
 0x158   : > { %v7238_v62 = vmul.f32 -1.442695, %v9894_v0  ;;  %v9911_v54 = vadd.f32 %v9848_v35, %v2269_v16  ;;  %8251 = vmatpush3.msra.mxu0 %v9967_v4 }
 0x159   : > { %v9914_v42 = vpop.f32.mrf.mxu0  ;;  %11287 = vst [vmem:[#allocation9_spill] sm:$0xff] %v9976_v12  ;;  %11288 = vst [vmem:[#allocation11_spill] sm:$0xff] %v9979_v5  ;;  %v9991_v3 = vand.u32 4294901760, %v9979_v5  ;;  %8252 = vmatprep.subr.mxu0 %v9969_v37 }
 0x15a   : > { %v7237_v48 = vmul.f32 -1.442695, %v9911_v54  ;;  %v9924_v50 = vpop.f32.mrf.mxu1  ;;  %8821 = vpow2.f32 %v7238_v62  ;;  %v9988_v62 = vand.u32 4294901760, %v9976_v12  ;;  %8253 = vmatpush3.msra.mxu0 %v9969_v37 }
 0x15b   : > { %v9927_v9 = vpop.f32.mrf.mxu0  ;;  %11290 = vst [vmem:[#allocation12_spill] sm:$0xff] %v9991_v3  ;;  %v4492_v47 = vsub.f32 %v9979_v5, %v9991_v3  ;;  %8254 = vmatprep.subr.mxu0 %v9998_v52 }
 0x15c   : > { %8823 = vpow2.f32 %v7237_v48  ;;  %v9929_v20 = vpop.f32.mrf.mxu1  ;;  %11289 = vst [vmem:[#allocation10_spill] sm:$0xff] %v9988_v62  ;;  %v4485_v17 = vsub.f32 %v9976_v12, %v9988_v62  ;;  %8255 = vmatpush3.msra.mxu0 %v9998_v52 }
 0x15d   : > { %v9931_v60 = vpop.f32.mrf.mxu0 }
 0x15f   : > { %v9933_v13 = vpop.f32.mrf.mxu1  ;;  %v9935_v61 = vpop.f32.mrf.mxu0 }
 0x161   : > { %v9937_v24 = vpop.f32.mrf.mxu1  ;;  %v8818_v25 = vpop.eup %8817 }
 0x162   : > { %v4139_v22 = vadd.f32 1.0, %v8818_v25  ;;  %v10011_v25 = vsub.f32 %v7245_v39, %v9998_v52  ;;  %v2501_v52 = vadd.f32 %v9929_v20, %v9927_v9 }
 0x163   : > { %v8820_v29 = vpop.eup %8819  ;;  %v9939_v18 = vpop.f32.mrf.mxu0 }
 0x164   : > { %v4138_v46 = vadd.f32 1.0, %v8820_v29  ;;  %v9941_v27 = vpop.f32.mrf.mxu1  ;;  %11292 = vst [vmem:[#allocation16_spill] sm:$0xff] %v10011_v25  ;;  %v10013_v29 = vand.u32 4294901760, %v7244_v10  ;;  %v10026_v45 = vand.u32 4294901760, %v10011_v25 }
 0x165   : > { %v9943_v51 = vpop.f32.mrf.mxu0 }
 0x166   : > { %8825 = vrcp.f32 %v4138_v46  ;;  %v9945_v26 = vpop.f32.mrf.mxu1  ;;  %11293 = vst [vmem:[#allocation17_spill] sm:$0xff] %v10013_v29  ;;  %11294 = vst [vmem:[#allocation18_spill] sm:$0xff] %v10026_v45  ;;  %v10029_v43 = vsub.f32 %v7244_v10, %v10013_v29  ;;  %8256 = vmatprep.subr.mxu0 %v10013_v29 }
 0x167   : > { %v9947_v23 = vpop.f32.mrf.mxu0  ;;  %v8822_v44 = vpop.eup %8821  ;;  %8827 = vrcp.f32 %v4139_v22  ;;  %8257 = vmatpush3.msra.mxu0 %v10013_v29 }
 0x168   : > { %v4141_v32 = vadd.f32 1.0, %v8822_v44  ;;  %v4486_v44 = vand.u32 4294901760, %v4485_v17  ;;  %11295 = vst [vmem:[#allocation19_spill] sm:$0xff] %v10029_v43  ;;  %v10043_v10 = vand.u32 4294901760, %v10029_v43 }
 0x169   : > { %v8824_v33 = vpop.eup %8823  ;;  %v9949_v30 = vpop.f32.mrf.mxu1 }
 0x16a   : > { %v9951_v53 = vpop.f32.mrf.mxu0  ;;  %v4140_v28 = vadd.f32 1.0, %v8824_v33  ;;  %v4493_v33 = vand.u32 4294901760, %v4492_v47  ;;  %8272 = vmatprep.subr.mxu1 %v4486_v44  ;;  %11297 = vst [vmem:[#allocation21_spill] sm:$0xff] %v10043_v10 }
 0x16b   : > { %v9953_v14 = vpop.f32.mrf.mxu1  ;;  %8273 = vmatpush3.msra.mxu1 %v4486_v44 }
 0x16c   : > { %8829 = vrcp.f32 %v4140_v28  ;;  %v7243_v28 = vld [vmem:[%s11188_s3 + $0x40] sm:$0xff]  ;;  %8274 = vmatprep.subr.mxu1 %v4493_v33 }
 0x16d   : > { %v9955_v38 = vpop.f32.mrf.mxu0  ;;  %8831 = vrcp.f32 %v4141_v32  ;;  %8275 = vmatpush3.msra.mxu1 %v4493_v33 }
 0x16e   : > { %v9957_v49 = vpop.f32.mrf.mxu1 }
 0x16f   : > { %v9965_v57 = vpop.f32.mrf.mxu0 }
 0x170   : > { %v9971_v40 = vpop.f32.mrf.mxu1 }
 0x171   : > { %v9973_v15 = vpop.f32.mrf.mxu0 }
 0x173   : > { %v8826_v59 = vpop.eup %8825  ;;  %v9983_v21 = vpop.f32.mrf.mxu1 }
 0x174   : > { %v9985_v16 = vpop.f32.mrf.mxu0  ;;  %4154 = vrot.lane.b32.xlu0 %v8826_v59, %s8927_s15  ;;  %v8828_v46 = vpop.eup %8827  ;;  %v10031_v59 = vand.u32 4294901760, %v7243_v28 }
 0x175   : > { %v10001_v48 = vpop.f32.mrf.mxu1 }
 0x176   : > { %11296 = vst [vmem:[#allocation20_spill] sm:$0xff] %v10031_v59  ;;  %v10048_v62 = vsub.f32 %v7243_v28, %v10031_v59  ;;  %8258 = vmatprep.subr.mxu0 %v10031_v59 }
 0x177   : > { %v10016_v22 = vpop.f32.mrf.mxu0  ;;  %8259 = vmatpush3.msra.mxu0 %v10031_v59 }
 0x178   : > { %v10022_v32 = vpop.f32.mrf.mxu1  ;;  %4156 = vrot.lane.b32.xlu0 %v8828_v46, %s8927_s15  ;;  %v4499_v46 = vsub.f32 %v10011_v25, %v10026_v45  ;;  %11298 = vst [vmem:[#allocation22_spill] sm:$0xff] %v10048_v62  ;;  %v10059_v2 = vand.u32 4294901760, %v10048_v62  ;;  %8288 = vmatprep.subr.mxu0 %v9884_v63 }
 0x179   : > { %v8830_v39 = vpop.eup %8829  ;;  %v10034_v17 = vpop.f32.mrf.mxu0 }
 0x17a   : > { %v10037_v47 = vpop.f32.mrf.mxu1  ;;  %4158 = vrot.lane.b32.xlu1 %v8830_v39, %s8927_s15  ;;  %v4500_v36 = vand.u32 4294901760, %v4499_v46  ;;  %v4506_v39 = vsub.f32 %v10029_v43, %v10043_v10  ;;  %v8832_v44 = vpop.eup %8831  ;;  %11299 = vst [vmem:[#allocation23_spill] sm:$0xff] %v10059_v2  ;;  %v4513_v46 = vsub.f32 %v10048_v62, %v10059_v2 }
 0x17b   : > { %v10045_v3 = vpop.f32.mrf.mxu0 }
 0x17c   : > { %8276 = vmatprep.subr.mxu1 %v4500_v36  ;;  %v4507_v33 = vand.u32 4294901760, %v4506_v39  ;;  %v4514_v43 = vand.u32 4294901760, %v4513_v46  ;;  %v2489_v46 = vadd.f32 %v9897_v1, %v9881_v31 }
 0x17d   : > { %v10054_v45 = vpop.f32.mrf.mxu1  ;;  %v10056_v55 = vpop.f32.mrf.mxu0  ;;  %8277 = vmatpush3.msra.mxu1 %v4500_v36 }
 0x17e   : > { %4160 = vrot.lane.b32.xlu1 %v8832_v44, %s8927_s15  ;;  %8278 = vmatprep.subr.mxu1 %v4507_v33  ;;  %v2585_v12 = vadd.f32 %v9935_v61, %v2489_v46 }
 0x17f   : > { %v10063_v28 = vpop.f32.mrf.mxu1  ;;  %8279 = vmatpush3.msra.mxu1 %v4507_v33  ;;  %v2495_v33 = vadd.f32 %v9879_v11, %v9869_v19 }
 0x180   : > { %8280 = vmatprep.subr.mxu1 %v4514_v43 }
 0x181   : > { %v8135_v10 = vpop.f32.mrf.mxu0  ;;  %8281 = vmatpush3.msra.mxu1 %v4514_v43  ;;  %v2592_v62 = vadd.f32 %v9931_v60, %v2495_v33  ;;  %v2507_v43 = vadd.f32 %v9924_v50, %v9914_v42  ;;  %v2682_v60 = vadd.f32 %v9937_v24, %v2585_v12  ;;  %v2599_v42 = vadd.f32 %v9943_v51, %v2501_v52 }
 0x182   : > { %v10067_v25 = vpop.f32.mrf.mxu1  ;;  %8310 = vmatprep.subr.mxu1 %v9871_v58 }
 0x183   : > { %v10069_v5 = vpop.f32.mrf.mxu0  ;;  %v2606_v19 = vadd.f32 %v9939_v18, %v2507_v43  ;;  %v2690_v31 = vadd.f32 %v9933_v13, %v2592_v62  ;;  %v2786_v46 = vadd.f32 %v9951_v53, %v2682_v60  ;;  %v2698_v18 = vadd.f32 %v9945_v26, %v2599_v42 }
 0x184   : > { %v10071_v59 = vpop.f32.mrf.mxu1 }
 0x185   : > { %v10073_v44 = vpop.f32.mrf.mxu0  ;;  %v2792_v61 = vadd.f32 %v9947_v23, %v2690_v31  ;;  %v2706_v33 = vadd.f32 %v9941_v27, %v2606_v19  ;;  %v2878_v24 = vadd.f32 %v9953_v14, %v2786_v46  ;;  %v2798_v51 = vadd.f32 %v9965_v57, %v2698_v18 }
 0x187   : > { %v10076_v36 = vpop.f32.mrf.mxu1  ;;  %v10078_v39 = vpop.f32.mrf.mxu0  ;;  %v2804_v43 = vadd.f32 %v9955_v38, %v2706_v33  ;;  %v2884_v62 = vadd.f32 %v9949_v30, %v2792_v61  ;;  %v2974_v53 = vadd.f32 %v9985_v16, %v2878_v24  ;;  %v2890_v26 = vadd.f32 %v9971_v40, %v2798_v51 }
 0x189   : > { %v10084_v2 = vpop.f32.mrf.mxu1  ;;  %v2984_v23 = vadd.f32 %v9973_v15, %v2884_v62  ;;  %v2896_v27 = vadd.f32 %v9957_v49, %v2804_v43  ;;  %v3090_v14 = vadd.f32 %v10001_v48, %v2974_v53  ;;  %v2994_v57 = vadd.f32 %v10034_v17, %v2890_v26 }
 0x18b   : > { %v10090_v29 = vpop.f32.mrf.mxu0  ;;  %v3004_v38 = vadd.f32 %v10016_v22, %v2896_v27  ;;  %v3096_v30 = vadd.f32 %v9983_v21, %v2984_v23  ;;  %v3186_v33 = vadd.f32 %v10056_v55, %v3090_v14  ;;  %v3102_v22 = vadd.f32 %v10037_v47, %v2994_v57 }
 0x18c   : > { %v10092_v34 = vpop.f32.mrf.mxu1 }
 0x18d   : > { %v10097_v11 = vpop.f32.mrf.mxu0  ;;  %v3193_v61 = vadd.f32 %v10045_v3, %v3096_v30  ;;  %v3108_v16 = vadd.f32 %v10022_v32, %v3004_v38  ;;  %v3283_v51 = vadd.f32 %v10063_v28, %v3186_v33  ;;  %v3200_v3 = vadd.f32 %v10069_v5, %v3102_v22 }
 0x18e   : > { %v10100_v1 = vpop.f32.mrf.mxu1 }
 0x18f   : > { %v8180_v50 = vpop.f32.mrf.mxu0  ;;  %v3207_v43 = vadd.f32 %v8135_v10, %v3108_v16  ;;  %v3291_v48 = vadd.f32 %v10054_v45, %v3193_v61  ;;  %v3387_v10 = vadd.f32 %v10078_v39, %v3283_v51  ;;  %v3299_v27 = vadd.f32 %v10071_v59, %v3200_v3 }
 0x191   : > { %v8192_v9 = vpop.f32.mrf.mxu1  ;;  %v3591_v20 = vpop.f32.mrf.mxu0  ;;  %v3393_v32 = vadd.f32 %v10073_v44, %v3291_v48  ;;  %v3307_v47 = vadd.f32 %v10067_v25, %v3207_v43  ;;  %v3479_v38 = vadd.f32 %v10084_v2, %v3387_v10  ;;  %v3399_v25 = vadd.f32 %v10097_v11, %v3299_v27 }
 0x192   : > { %v3714_v49 = vadd.f32 %v8192_v9, %v8180_v50 }
 0x193   : > { %v3707_v13 = vpop.f32.mrf.mxu1  ;;  %v3405_v28 = vadd.f32 %v10090_v29, %v3307_v47  ;;  %v3485_v44 = vadd.f32 %v10076_v36, %v3393_v32  ;;  %v3491_v2 = vadd.f32 %v10100_v1, %v3399_v25 }
 0x194   : > { %v3708_v40 = vadd.f32 %v3707_v13, %v3591_v20 }
 0x195   : > { %v8183_v12 = vpop.f32.mrf.mxu0  ;;  %v3497_v59 = vadd.f32 %v10092_v34, %v3405_v28 }
 0x196   : > { %v8195_v52 = vpop.f32.mrf.mxu1 }
 0x197   : > { %v3611_v19 = vpop.f32.mrf.mxu0  ;;  %v3726_v62 = vadd.f32 %v8195_v52, %v8183_v12 }
 0x198   : > { %v3719_v31 = vpop.f32.mrf.mxu1 }
 0x199   : > { %v8204_v60 = vpop.f32.mrf.mxu0  ;;  %v3720_v55 = vadd.f32 %v3719_v31, %v3611_v19 }
 0x19a   : > { %v3811_v18 = vadd.f32 %v8204_v60, %v3714_v49 }
 0x19b   : > { %v8216_v42 = vpop.f32.mrf.mxu1  ;;  %v3803_v15 = vpop.f32.mrf.mxu0 }
 0x19c   : > { %v3804_v17 = vadd.f32 %v3803_v15, %v3708_v40  ;;  %v3909_v9 = vadd.f32 %v8216_v42, %v3811_v18 }
 0x19d   : > { %v3900_v46 = vpop.f32.mrf.mxu1 }
 0x19e   : > { %v3901_v45 = vadd.f32 %v3900_v46, %v3804_v17 }
 0x19f   : > { %v8207_v21 = vpop.f32.mrf.mxu0 }
 0x1a0   : > { %v8219_v24 = vpop.f32.mrf.mxu1  ;;  %v3825_v20 = vadd.f32 %v8207_v21, %v3726_v62 }
 0x1a1   : > { %v3817_v50 = vpop.f32.mrf.mxu0 }
 0x1a2   : > { %v3916_v13 = vpop.f32.mrf.mxu1  ;;  %v3818_v12 = vadd.f32 %v3817_v50, %v3720_v55  ;;  %v3925_v19 = vadd.f32 %v8219_v24, %v3825_v20 }
 0x1a3   : > { %v8228_v23 = vpop.f32.mrf.mxu0 }
 0x1a4   : > { %v4011_v52 = vadd.f32 %v8228_v23, %v3909_v9  ;;  %v3917_v30 = vadd.f32 %v3916_v13, %v3818_v12  ;;  %v8928_v9 = vmov 0.0  }
 0x1a5   : > { %v8240_v5 = vpop.f32.mrf.mxu1  ;;  %v4004_v53 = vpop.f32.mrf.mxu0  ;;  %4223 = vst.msk [vmem:[#allocation2] sm:$0x1] %vm4222_vm2, %v8928_v9 }
 0x1a6   : > { %v4103_v31 = vadd.f32 %v8240_v5, %v4011_v52  ;;  %v4005_v26 = vadd.f32 %v4004_v53, %v3901_v45 }
 0x1a7   : > { %v4096_v39 = vpop.f32.mrf.mxu1  ;;  %v8231_v60 = vpop.f32.mrf.mxu0 }
 0x1a8   : > { %v4119_v14 = vadd.f32 %v4103_v31, %v3485_v44  ;;  %v4097_v57 = vadd.f32 %v4096_v39, %v4005_v26  ;;  %v4023_v42 = vadd.f32 %v8231_v60, %v3925_v19 }
 0x1a9   : > { %v4016_v29 = vpop.f32.mrf.mxu0  ;;  %v8243_v15 = vpop.f32.mrf.mxu1 }
 0x1aa   : > { %v10137_v61 = vadd.f32 %v9848_v35, %v4119_v14  ;;  %v4118_v36 = vadd.f32 %v4097_v57, %v3479_v38  ;;  %v4017_v49 = vadd.f32 %v4016_v29, %v3917_v30  ;;  %v4115_v16 = vadd.f32 %v8243_v15, %v4023_v42 }
 0x1ab   : > { %v4108_v33 = vpop.f32.mrf.mxu1 }
 0x1ac   : > { %v7240_v11 = vmul.f32 -1.442695, %v10137_v61  ;;  %v10142_v46 = vadd.f32 %v9848_v35, %v4118_v36  ;;  %v4121_v40 = vadd.f32 %v4115_v16, %v3497_v59  ;;  %v4109_v18 = vadd.f32 %v4108_v33, %v4017_v49 }
 0x1ae   : > { %8833 = vpow2.f32 %v7240_v11  ;;  %v7239_v34 = vmul.f32 -1.442695, %v10142_v46  ;;  %v10146_v22 = vadd.f32 %v9848_v35, %v4121_v40  ;;  %v4120_v43 = vadd.f32 %v4109_v18, %v3491_v2  ;;  %v11300_v18 = vld [vmem:[#allocation13_spill] sm:$0xff] }
 0x1b0   : > { %8835 = vpow2.f32 %v7239_v34  ;;  %v7242_v21 = vmul.f32 -1.442695, %v10146_v22  ;;  %v10150_v1 = vadd.f32 %v9848_v35, %v4120_v43  ;;  %v11301_v34 = vld [vmem:[#allocation14_spill] sm:$0xff] }
 0x1b2   : > { %8837 = vpow2.f32 %v7242_v21  ;;  %v7241_v48 = vmul.f32 -1.442695, %v10150_v1  ;;  %v11302_v21 = vld [vmem:[#allocation17_spill] sm:$0xff] }
 0x1b4   : > { %8839 = vpow2.f32 %v7241_v48  ;;  %v11304_v48 = vld [vmem:[#allocation20_spill] sm:$0xff] }
 0x1bb   : > { %v8834_v62 = vpop.eup %8833 }
 0x1bc   : > { %v4187_v17 = vadd.f32 1.0, %v8834_v62  ;;  %v4309_v62 = vld [vmem:[%s11188_s3 + $0x38] sm:$0xff] }
 0x1bd   : > { %v8836_v24 = vpop.eup %8835 }
 0x1be   : > { %8841 = vrcp.f32 %v4187_v17  ;;  %v4186_v51 = vadd.f32 1.0, %v8836_v24  ;;  %v11306_v17 = vld [vmem:[#allocation16_spill] sm:$0xff]  ;;  %v10223_v24 = vand.u32 4294901760, %v4309_v62 }
 0x1bf   : > { %v8838_v3 = vpop.eup %8837 }
 0x1c0   : > { %8843 = vrcp.f32 %v4186_v51  ;;  %v4189_v50 = vadd.f32 1.0, %v8838_v3  ;;  %v4308_v51 = vld [vmem:[%s11188_s3 + $0x30] sm:$0xff]  ;;  %v11307_v3 = vld [vmem:[#allocation19_spill] sm:$0xff] }
 0x1c1   : > { %v8840_v32 = vpop.eup %8839 }
 0x1c2   : > { %8845 = vrcp.f32 %v4189_v50  ;;  %v4188_v55 = vadd.f32 1.0, %v8840_v32  ;;  %v10236_v50 = vand.u32 4294901760, %v4308_v51  ;;  %v10241_v32 = vsub.f32 %v4309_v62, %v10223_v24 }
 0x1c4   : > { %8847 = vrcp.f32 %v4188_v55  ;;  %v11308_v55 = vld [vmem:[#allocation22_spill] sm:$0xff] }
 0x1cb   : > { %v8842_v35 = vpop.eup %8841 }
 0x1cc   : > { %4204 = vrot.lane.b32.xlu1 %v8842_v35, %s8927_s15  ;;  %v10258_v35 = vsub.f32 %v4308_v51, %v10236_v50 }
 0x1cd   : > { %v8844_v20 = vpop.eup %8843 }
 0x1ce   : > { %4202 = vrot.lane.b32.xlu0 %v8844_v20, %s8927_s15 }
 0x1cf   : > { %v8846_v13 = vpop.eup %8845 }
 0x1d0   : > { %4208 = vrot.lane.b32.xlu1 %v8846_v13, %s8927_s15  ;;  %v11309_v13 = vld [vmem:[#allocation8_spill] sm:$0xff] }
 0x1d1   : > { %v8848_v47 = vpop.eup %8847 }
 0x1d2   : > { %4206 = vrot.lane.b32.xlu0 %v8848_v47, %s8927_s15  ;;  %v10265_v47 = vand.u32 4294901760, %v10241_v32 }
 0x1e6   : > { %v4155_v10 = vpop.permute.xlu0 %4154 }
 0x1e7   : > { %v4166_v23 = vmul.f32 %v4155_v10, %v9858_v6  ;;  %v4304_v10 = vld [vmem:[%s11188_s3 + $0x10] sm:$0xff] }
 0x1e9   : > { %v4170_v45 = vmax.f32 %v4166_v23, 0.0 }
 0x1ea   : > { %v4157_v12 = vpop.permute.xlu0 %4156 }
 0x1eb   : > { %v4320_v52 = vsel %vm4224_vm3, %v4170_v45, 0  ;;  %v4167_v27 = vmul.f32 %v4157_v12, %v9853_v56  ;;  %v11310_v45 = vld [vmem:[#allocation15_spill] sm:$0xff] }
 0x1ec   : > { %v10160_v28 = vand.u32 4294901760, %v4320_v52  ;;  %v4159_v5 = vpop.permute.xlu1 %4158  ;;  %v4303_v12 = vld [vmem:[%s11188_s3 + $0x8] sm:$0xff] }
 0x1ed   : > { %v4168_v53 = vmul.f32 %v4159_v5, %v9911_v54  ;;  %v4171_v44 = vmax.f32 %v4167_v27, 0.0  ;;  %v10290_v5 = vand.u32 4294901760, %v4304_v10 }
 0x1ee   : > { %v4405_v19 = vsub.f32 %v4320_v52, %v10160_v28  ;;  %8282 = vmatprep.mubr.f32.mxu1 %v10160_v28  ;;  %v10285_v52 = vand.u32 4294901760, %v10258_v35 }
 0x1ef   : > { %v4172_v31 = vmax.f32 %v4168_v53, 0.0  ;;  %v4323_v6 = vsel %vm4224_vm3, %v4171_v44, 0  ;;  %v4302_v53 = vld [vmem:[%s11188_s3] sm:$0xff]  ;;  %v11311_v44 = vld [vmem:[#allocation7_spill] sm:$0xff] }
 0x1f0   : > { %v10166_v26 = vand.u32 4294901760, %v4323_v6  ;;  %v4161_v38 = vpop.permute.xlu1 %4160  ;;  %v4406_v25 = vand.u32 4294901760, %v4405_v19 }
 0x1f1   : > { %v4326_v39 = vsel %vm4224_vm3, %v4172_v31, 0  ;;  %v4169_v56 = vmul.f32 %v4161_v38, %v9894_v0  ;;  %v11312_v38 = vld [vmem:[#allocation10_spill] sm:$0xff] }
 0x1f2   : > { %v10170_v60 = vand.u32 4294901760, %v4326_v39  ;;  %v10173_v54 = vsub.f32 %v4323_v6, %v10166_v26  ;;  %8283 = vmatmul.mubr.f32.vlgmr.msra.gmra.mxu1 %v10166_v26  ;;  %v4407_v30 = vsub.f32 %v4405_v19, %v4406_v25  ;;  %v10307_v6 = vand.u32 4294901760, %v4303_v12 }
 0x1f3   : > { %v4173_v14 = vmax.f32 %v4169_v56, 0.0  ;;  %8311 = vmatpush3.msra.mxu1 %v9871_v58  ;;  %v10319_v56 = vsub.f32 %v4304_v10, %v10290_v5 }
 0x1f4   : > { %v10178_v57 = vsub.f32 %v4326_v39, %v10170_v60  ;;  %v4416_v42 = vand.u32 4294901760, %v10173_v54  ;;  %8285 = vmatprep.mubr.f32.mxu1 %v10170_v60  ;;  %8312 = vmatprep.subr.mxu1 %v9873_v8  ;;  %v4408_v0 = vand.u32 4294901760, %v4407_v30  ;;  %v11313_v30 = vld [vmem:[#allocation12_spill] sm:$0xff] }
 0x1f5   : > { %v4329_v59 = vsel %vm4224_vm3, %v4173_v14, 0  ;;  %8313 = vmatpush3.msra.mxu1 %v9873_v8 }
 0x1f6   : > { %v4417_v29 = vsub.f32 %v10173_v54, %v4416_v42  ;;  %v10186_v15 = vand.u32 4294901760, %v4329_v59  ;;  %8314 = vmatprep.subr.mxu1 %v9875_v7  ;;  %8260 = vmatprep.mubr.f32.mxu0 %v4408_v0  ;;  %v4426_v36 = vand.u32 4294901760, %v10178_v57  ;;  %v11314_v0 = vld [vmem:[#allocation18_spill] sm:$0xff] }
 0x1f7   : > { %8315 = vmatpush3.msra.mxu1 %v9875_v7 }
 0x1f8   : > { %v4418_v49 = vand.u32 4294901760, %v4417_v29  ;;  %v10192_v16 = vsub.f32 %v4329_v59, %v10186_v15  ;;  %8286 = vmatmul.mubr.f32.gmra.mxu1 %v10186_v15  ;;  %8316 = vmatprep.subr.mxu1 %v9967_v4  ;;  %v4427_v2 = vsub.f32 %v10178_v57, %v4426_v36 }
 0x1f9   : > { %8326 = vmatprep.mubr.f32.mxu1 %v4406_v25  ;;  %8317 = vmatpush3.msra.mxu1 %v9967_v4  ;;  %v5149_v25 = vsub.f32 %v10258_v35, %v10285_v52 }
 0x1fa   : > { %8318 = vmatprep.subr.mxu1 %v9969_v37  ;;  %8261 = vmatmul.mubr.f32.vlgmr.msra.gmra.mxu0 %v4418_v49  ;;  %v4428_v33 = vand.u32 4294901760, %v4427_v2  ;;  %v4436_v11 = vand.u32 4294901760, %v10192_v16 }
 0x1fb   : > { %8289 = vmatpush3.msra.mxu0 %v9884_v63  ;;  %8319 = vmatpush3.msra.mxu1 %v9969_v37  ;;  %v11303_v63 = vld [vmem:[#allocation9_spill] sm:$0xff]  ;;  %v5150_v59 = vand.u32 4294901760, %v5149_v25 }
 0x1fc   : > { %8263 = vmatprep.mubr.f32.mxu0 %v4428_v33  ;;  %8290 = vmatprep.subr.mxu0 %v9887_v41  ;;  %v4437_v40 = vsub.f32 %v10192_v16, %v4436_v11 }
 0x1fd   : > { %8320 = vmatprep.subr.mxu1 %v11300_v18  ;;  %8291 = vmatpush3.msra.mxu0 %v9887_v41  ;;  %v11305_v41 = vld [vmem:[#allocation11_spill] sm:$0xff] }
 0x1fe   : > { %8321 = vmatpush3.msra.mxu1 %v11300_v18  ;;  %8292 = vmatprep.subr.mxu0 %v11301_v34  ;;  %v4438_v43 = vand.u32 4294901760, %v4437_v40  ;;  %v11316_v40 = vld [vmem:[#allocation23_spill] sm:$0xff] }
 0x1ff   : > { %8322 = vmatprep.subr.mxu1 %v11302_v21  ;;  %8293 = vmatpush3.msra.mxu0 %v11301_v34 }
 0x200   : > { %8264 = vmatmul.mubr.f32.gmra.mxu0 %v4438_v43  ;;  %8323 = vmatpush3.msra.mxu1 %v11302_v21 }
 0x201   : > { %8294 = vmatprep.subr.mxu0 %v11303_v63  ;;  %8304 = vmatprep.mubr.f32.mxu0 %v4405_v19 }
 0x202   : > { %8324 = vmatprep.subr.mxu1 %v11304_v48  ;;  %8295 = vmatpush3.msra.mxu0 %v11303_v63 }
 0x203   : > { %8325 = vmatpush3.msra.mxu1 %v11304_v48  ;;  %8296 = vmatprep.subr.mxu0 %v11305_v41 }
 0x204   : > { %8327 = vmatmul.mubr.f32.vlgmr.msra.gmra.mxu1 %v4416_v42  ;;  %8354 = vmatprep.subr.mxu1 %v9871_v58  ;;  %v10333_v42 = vsub.f32 %v4303_v12, %v10307_v6 }
 0x205   : > { %8297 = vmatpush3.msra.mxu0 %v11305_v41  ;;  %8329 = vmatprep.mubr.f32.mxu1 %v4426_v36  ;;  %v10342_v36 = vand.u32 4294901760, %v10319_v56 }
 0x206   : > { %8355 = vmatpush3.msra.mxu1 %v9871_v58  ;;  %8298 = vmatprep.subr.mxu0 %v11306_v17  ;;  %v4307_v58 = vld [vmem:[%s11188_s3 + $0x28] sm:$0xff] }
 0x207   : > { %8356 = vmatprep.subr.mxu1 %v9873_v8  ;;  %8299 = vmatpush3.msra.mxu0 %v11306_v17  ;;  %v10248_v9 = vand.u32 4294901760, %v4307_v58  ;;  %v5177_v34 = vsub.f32 %v10319_v56, %v10342_v36 }
 0x208   : > { %8357 = vmatpush3.msra.mxu1 %v9873_v8  ;;  %8300 = vmatprep.subr.mxu0 %v11307_v3  ;;  %v4306_v8 = vld [vmem:[%s11188_s3 + $0x20] sm:$0xff] }
 0x209   : > { %8330 = vmatmul.mubr.f32.gmra.mxu1 %v4436_v11  ;;  %8358 = vmatprep.subr.mxu1 %v9875_v7  ;;  %v10260_v20 = vand.u32 4294901760, %v4306_v8  ;;  %v10352_v11 = vand.u32 4294901760, %v10333_v42 }
 0x20a   : > { %8301 = vmatpush3.msra.mxu0 %v11307_v3  ;;  %8359 = vmatpush3.msra.mxu1 %v9875_v7  ;;  %v4305_v7 = vld [vmem:[%s11188_s3 + $0x18] sm:$0xff] }
 0x20b   : > { %8370 = vmatprep.mubr.f32.mxu1 %v10160_v28  ;;  %8302 = vmatprep.subr.mxu0 %v11308_v55  ;;  %v10275_v23 = vand.u32 4294901760, %v4305_v7  ;;  %v10288_v27 = vsub.f32 %v4306_v8, %v10260_v20  ;;  %v5184_v63 = vsub.f32 %v10333_v42, %v10352_v11 }
 0x20c   : > { %8360 = vmatprep.subr.mxu1 %v9967_v4  ;;  %8303 = vmatpush3.msra.mxu0 %v11308_v55 }
 0x20d   : > { %8361 = vmatpush3.msra.mxu1 %v9967_v4  ;;  %8305 = vmatmul.mubr.f32.vlgmr.msra.gmra.mxu0 %v10173_v54  ;;  %v10273_v4 = vsub.f32 %v4307_v58, %v10248_v9  ;;  %v10305_v31 = vsub.f32 %v4305_v7, %v10275_v23  ;;  %v10316_v39 = vand.u32 4294901760, %v10288_v27  ;;  %v10321_v54 = vand.u32 4294901760, %v4302_v53 }
 0x20e   : > { %8332 = vmatprep.subr.mxu0 %v11309_v13  ;;  %8362 = vmatprep.subr.mxu1 %v9969_v37 }
 0x20f   : > { %8307 = vmatprep.mubr.f32.mxu0 %v10178_v57  ;;  %8333 = vmatpush3.msra.mxu0 %v11309_v13  ;;  %v10302_v19 = vand.u32 4294901760, %v10273_v4  ;;  %v10330_v57 = vand.u32 4294901760, %v10305_v31  ;;  %v5163_v29 = vsub.f32 %v10288_v27, %v10316_v39  ;;  %v10345_v49 = vsub.f32 %v4302_v53, %v10321_v54 }
 0x210   : > { %8363 = vmatpush3.msra.mxu1 %v9969_v37  ;;  %8334 = vmatprep.subr.mxu0 %v11310_v45  ;;  %v5142_v37 = vsub.f32 %v10241_v32, %v10265_v47 }
 0x211   : > { %8364 = vmatprep.subr.mxu1 %v11300_v18  ;;  %8335 = vmatpush3.msra.mxu0 %v11310_v45  ;;  %v5156_v14 = vsub.f32 %v10273_v4, %v10302_v19  ;;  %v5170_v33 = vsub.f32 %v10305_v31, %v10330_v57  ;;  %v10360_v43 = vand.u32 4294901760, %v10345_v49 }
 0x212   : > { %8365 = vmatpush3.msra.mxu1 %v11300_v18  ;;  %8308 = vmatmul.mubr.f32.gmra.mxu0 %v10192_v16  ;;  %v11315_v16 = vld [vmem:[#allocation21_spill] sm:$0xff]  ;;  %v5164_v18 = vand.u32 4294901760, %v5163_v29 }
 0x213   : > { %8336 = vmatprep.subr.mxu0 %v11311_v44  ;;  %8366 = vmatprep.subr.mxu1 %v11302_v21  ;;  %v5157_v2 = vand.u32 4294901760, %v5156_v14  ;;  %v5191_v41 = vsub.f32 %v10345_v49, %v10360_v43 }
 0x214   : > { %8337 = vmatpush3.msra.mxu0 %v11311_v44  ;;  %8348 = vmatprep.mubr.f32.mxu0 %v10160_v28  ;;  %v5143_v28 = vand.u32 4294901760, %v5142_v37 }
 0x215   : > { %8367 = vmatpush3.msra.mxu1 %v11302_v21  ;;  %8338 = vmatprep.subr.mxu0 %v11312_v38  ;;  %v5171_v21 = vand.u32 4294901760, %v5170_v33 }
 0x216   : > { %8368 = vmatprep.subr.mxu1 %v11304_v48  ;;  %8339 = vmatpush3.msra.mxu0 %v11312_v38 }
 0x217   : > { %8369 = vmatpush3.msra.mxu1 %v11304_v48  ;;  %8340 = vmatprep.subr.mxu0 %v11313_v30  ;;  %v5178_v48 = vand.u32 4294901760, %v5177_v34 }
 0x218   : > { %8371 = vmatmul.mubr.f32.vlgmr.msra.gmra.mxu1 %v10166_v26  ;;  %8341 = vmatpush3.msra.mxu0 %v11313_v30 }
 0x219   : > { %8373 = vmatprep.mubr.f32.mxu1 %v10170_v60  ;;  %8342 = vmatprep.subr.mxu0 %v11314_v0 }
 0x21a   : > { %8343 = vmatpush3.msra.mxu0 %v11314_v0  ;;  %8398 = vmatprep.subr.mxu1 %v5143_v28 }
 0x21b   : > { %8344 = vmatprep.subr.mxu0 %v11315_v16  ;;  %8399 = vmatpush3.msra.mxu1 %v5143_v28 }
 0x21c   : > { %8374 = vmatmul.mubr.f32.gmra.mxu1 %v10186_v15  ;;  %8345 = vmatpush3.msra.mxu0 %v11315_v16 }
 0x21d   : > { %8346 = vmatprep.subr.mxu0 %v11316_v40  ;;  %8400 = vmatprep.subr.mxu1 %v5150_v59 }
 0x21e   : > { %8347 = vmatpush3.msra.mxu0 %v11316_v40  ;;  %8401 = vmatpush3.msra.mxu1 %v5150_v59 }
 0x21f   : > { %8349 = vmatmul.mubr.f32.vlgmr.msra.gmra.mxu0 %v10166_v26  ;;  %8402 = vmatprep.subr.mxu1 %v5157_v2  ;;  %v5185_v26 = vand.u32 4294901760, %v5184_v63 }
 0x220   : > { %8351 = vmatprep.mubr.f32.mxu0 %v10170_v60  ;;  %8403 = vmatpush3.msra.mxu1 %v5157_v2  ;;  %v5192_v60 = vand.u32 4294901760, %v5191_v41 }
 0x221   : > { %8404 = vmatprep.subr.mxu1 %v5164_v18  ;;  %8376 = vmatprep.subr.mxu0 %v10223_v24 }
 0x222   : > { %8405 = vmatpush3.msra.mxu1 %v5164_v18  ;;  %8377 = vmatpush3.msra.mxu0 %v10223_v24 }
 0x223   : > { %8352 = vmatmul.mubr.f32.gmra.mxu0 %v10186_v15  ;;  %8406 = vmatprep.subr.mxu1 %v5171_v21  ;;  %v4229_v15 = vlaneseq }
 0x224   : > { %8407 = vmatpush3.msra.mxu1 %v5171_v21  ;;  %8378 = vmatprep.subr.mxu0 %v10236_v50 }
 0x225   : > { %8408 = vmatprep.subr.mxu1 %v5178_v48  ;;  %8379 = vmatpush3.msra.mxu0 %v10236_v50  ;;  %v4230_v17 = vshrl.u32 %v4229_v15, 7 }
 0x226   : > { %8409 = vmatpush3.msra.mxu1 %v5178_v48  ;;  %8380 = vmatprep.subr.mxu0 %v10248_v9 }
 0x227   : > { %8410 = vmatprep.subr.mxu1 %v5185_v26  ;;  %8381 = vmatpush3.msra.mxu0 %v10248_v9  ;;  %v4231_v7 = vadd.s32 8, %v4230_v17  ;;  %v4238_v12 = vand.u32 3, %v4230_v17  ;;  %v4232_v53 = vadd.s32 16, %v4230_v17  ;;  %v4233_v44 = vadd.s32 24, %v4230_v17 }
 0x228   : > { %8411 = vmatpush3.msra.mxu1 %v5185_v26  ;;  %8382 = vmatprep.subr.mxu0 %v10260_v20 }
 0x229   : > { %8412 = vmatprep.subr.mxu1 %v5192_v60  ;;  %8383 = vmatpush3.msra.mxu0 %v10260_v20  ;;  %v4245_v37 = vand.u32 3, %v4231_v7  ;;  %vm4282_vm4 = vcmp.eq.s32.totalorder %v4238_v12, 0  ;;  %v4252_v38 = vand.u32 3, %v4232_v53  ;;  %v4259_v25 = vand.u32 3, %v4233_v44 }
 0x22a   : > { %8413 = vmatpush3.msra.mxu1 %v5192_v60  ;;  %8384 = vmatprep.subr.mxu0 %v10275_v23 }
 0x22b   : > { %8442 = vmatprep.subr.mxu1 %v10223_v24  ;;  %8385 = vmatpush3.msra.mxu0 %v10275_v23  ;;  %vm4283_vm5 = vcmp.eq.s32.totalorder %v4245_v37, 0  ;;  %vm4284_vm6 = vcmp.eq.s32.totalorder %v4252_v38, 0  ;;  %vm4285_vm7 = vcmp.eq.s32.totalorder %v4259_v25, 0 }
 0x22c   : > { %8386 = vmatprep.subr.mxu0 %v10290_v5 }
 0x22d   : > { %8387 = vmatpush3.msra.mxu0 %v10290_v5 }
 0x22e   : > { %8388 = vmatprep.subr.mxu0 %v10307_v6 }
 0x22f   : > { %8389 = vmatpush3.msra.mxu0 %v10307_v6 }
 0x230   : > { %8390 = vmatprep.subr.mxu0 %v10321_v54 }
 0x231   : > { %8391 = vmatpush3.msra.mxu0 %v10321_v54 }
 0x232   : > { %8420 = vmatprep.subr.mxu0 %v10241_v32 }
 0x23e   : > { %v4205_v62 = vpop.permute.xlu1 %4204 }
 0x23f   : > { %v10389_v51 = vmul.f32 %v4205_v62, %v10137_v61 }
 0x240   : > { %v4203_v3 = vpop.permute.xlu0 %4202 }
 0x241   : > { %v4219_v58 = vmax.f32 %v10389_v51, 0.0  ;;  %v10393_v8 = vmul.f32 %v4203_v3, %v10142_v46 }
 0x242   : > { %v4209_v55 = vpop.permute.xlu1 %4208 }
 0x243   : > { %4226 = vst.msk [vmem:[#allocation2 + $0x9] sm:$0xff] %vm4224_vm3, %v4219_v58  ;;  %v4218_v13 = vmax.f32 %v10393_v8, 0.0  ;;  %v10400_v10 = vmul.f32 %v4209_v55, %v10146_v22 }
 0x244   : > { %v4207_v45 = vpop.permute.xlu0 %4206 }
 0x245   : > { %4225 = vst.msk [vmem:[#allocation2 + $0x1] sm:$0xff] %vm4224_vm3, %v4218_v13  ;;  %v4221_v61 = vmax.f32 %v10400_v10, 0.0  ;;  %v10407_v46 = vmul.f32 %v4207_v45, %v10150_v1 }
 0x247   : > { %4228 = vst.msk [vmem:[#allocation2 + $0x19] sm:$0xff] %vm4224_vm3, %v4221_v61  ;;  %v4220_v22 = vmax.f32 %v10407_v46, 0.0  ;;  %v5694_v46 = vsel %vm4224_vm3, %v4221_v61, 0 }
 0x249   : > { %4227 = vst.msk [vmem:[#allocation2 + $0x11] sm:$0xff] %vm4224_vm3, %v4220_v22 }
 0x24c   : > { %v4286_v1 = vld [vmem:[#allocation2] sm:$0xff]  ;;  %v4287_v28 = vld [vmem:[#allocation2 + $0x8] sm:$0xff] }
 0x24d   : > { %v4298_v30 = vsel %vm4282_vm4, 0.0, %v4286_v1  ;;  %v4299_v14 = vsel %vm4283_vm5, 0.0, %v4287_v28  ;;  %v7255_v28 = vld [vmem:[%s11188_s3 + $0xa0] sm:$0xff] }
 0x24e   : > { %v4998_v0 = vsel %vm4224_vm3, %v4298_v30, 0  ;;  %v5001_v59 = vsel %vm4224_vm3, %v4299_v14, 0 }
 0x24f   : > { %v10418_v29 = vand.u32 4294901760, %v4998_v0  ;;  %v10420_v16 = vand.u32 4294901760, %v5001_v59 }
 0x250   : > { %v4288_v2 = vld [vmem:[#allocation2 + $0x10] sm:$0xff]  ;;  %v4289_v33 = vld [vmem:[#allocation2 + $0x18] sm:$0xff] }
 0x251   : > { %8414 = vmatprep.mubr.f32.mxu1 %v10418_v29  ;;  %v10424_v40 = vsub.f32 %v5001_v59, %v10420_v16  ;;  %v4300_v18 = vsel %vm4284_vm6, 0.0, %v4288_v2  ;;  %v4301_v34 = vsel %vm4285_vm7, 0.0, %v4289_v33  ;;  %v5083_v21 = vsub.f32 %v4998_v0, %v10418_v29  ;;  %v7252_v2 = vld [vmem:[%s11188_s3 + $0x88] sm:$0xff] }
 0x252   : > { %8415 = vmatmul.mubr.f32.vlgmr.msra.gmra.mxu1 %v10420_v16  ;;  %v5004_v63 = vsel %vm4224_vm3, %v4300_v18, 0  ;;  %v5007_v48 = vsel %vm4224_vm3, %v4301_v34, 0  ;;  %v10564_v18 = vand.u32 4294901760, %v7252_v2 }
 0x253   : > { %8443 = vmatpush3.msra.mxu1 %v10223_v24  ;;  %v10431_v41 = vand.u32 4294901760, %v5004_v63  ;;  %v10433_v26 = vand.u32 4294901760, %v5007_v48  ;;  %v5084_v60 = vand.u32 4294901760, %v5083_v21  ;;  %v5094_v15 = vand.u32 4294901760, %v10424_v40 }
 0x254   : > { %8444 = vmatprep.subr.mxu1 %v10236_v50 }
 0x255   : > { %8445 = vmatpush3.msra.mxu1 %v10236_v50  ;;  %8417 = vmatprep.mubr.f32.mxu1 %v10431_v41  ;;  %v5085_v62 = vsub.f32 %v5083_v21, %v5084_v60  ;;  %v5095_v17 = vsub.f32 %v10424_v40, %v5094_v15  ;;  %v10441_v3 = vsub.f32 %v5004_v63, %v10431_v41 }
 0x256   : > { %8446 = vmatprep.subr.mxu1 %v10248_v9  ;;  %8418 = vmatmul.mubr.f32.gmra.mxu1 %v10433_v26  ;;  %v10446_v55 = vsub.f32 %v5007_v48, %v10433_v26  ;;  %v10593_v48 = vsub.f32 %v7252_v2, %v10564_v18 }
 0x257   : > { %8447 = vmatpush3.msra.mxu1 %v10248_v9  ;;  %8458 = vmatprep.mubr.f32.mxu1 %v5084_v60  ;;  %v5086_v7 = vand.u32 4294901760, %v5085_v62  ;;  %v5096_v45 = vand.u32 4294901760, %v5095_v17  ;;  %v5104_v12 = vand.u32 4294901760, %v10441_v3 }
 0x258   : > { %8448 = vmatprep.subr.mxu1 %v10260_v20  ;;  %v5114_v37 = vand.u32 4294901760, %v10446_v55 }
 0x259   : > { %8449 = vmatpush3.msra.mxu1 %v10260_v20  ;;  %8392 = vmatprep.mubr.f32.mxu0 %v5086_v7  ;;  %v5105_v53 = vsub.f32 %v10441_v3, %v5104_v12 }
 0x25a   : > { %8450 = vmatprep.subr.mxu1 %v10275_v23  ;;  %8393 = vmatmul.mubr.f32.vlgmr.msra.gmra.mxu0 %v5096_v45  ;;  %v5115_v44 = vsub.f32 %v10446_v55, %v5114_v37 }
 0x25b   : > { %8421 = vmatpush3.msra.mxu0 %v10241_v32  ;;  %8451 = vmatpush3.msra.mxu1 %v10275_v23  ;;  %v5106_v38 = vand.u32 4294901760, %v5105_v53  ;;  %v7258_v32 = vld [vmem:[%s11188_s3 + $0xb8] sm:$0xff]  ;;  %v5691_v53 = vsel %vm4224_vm3, %v4220_v22, 0 }
 0x25c   : > { %8422 = vmatprep.subr.mxu0 %v10258_v35  ;;  %8452 = vmatprep.subr.mxu1 %v10290_v5  ;;  %v5116_v25 = vand.u32 4294901760, %v5115_v44  ;;  %v10651_v22 = vand.u32 4294901760, %v5691_v53 }
 0x25d   : > { %8423 = vmatpush3.msra.mxu0 %v10258_v35  ;;  %8453 = vmatpush3.msra.mxu1 %v10290_v5  ;;  %v10475_v35 = vand.u32 4294901760, %v7258_v32 }
 0x25e   : > { %8395 = vmatprep.mubr.f32.mxu0 %v5106_v38  ;;  %8424 = vmatprep.subr.mxu0 %v10273_v4  ;;  %v10663_v10 = vsub.f32 %v5691_v53, %v10651_v22 }
 0x25f   : > { %8454 = vmatprep.subr.mxu1 %v10307_v6  ;;  %8396 = vmatmul.mubr.f32.gmra.mxu0 %v5116_v25  ;;  %v10659_v25 = vand.u32 4294901760, %v5694_v46 }
 0x260   : > { %8425 = vmatpush3.msra.mxu0 %v10273_v4  ;;  %8455 = vmatpush3.msra.mxu1 %v10307_v6  ;;  %v7257_v4 = vld [vmem:[%s11188_s3 + $0xb0] sm:$0xff] }
 0x261   : > { %8426 = vmatprep.subr.mxu0 %v10288_v27  ;;  %8436 = vmatprep.mubr.f32.mxu0 %v5083_v21  ;;  %v10488_v1 = vand.u32 4294901760, %v7257_v4 }
 0x262   : > { %8456 = vmatprep.subr.mxu1 %v10321_v54  ;;  %8427 = vmatpush3.msra.mxu0 %v10288_v27  ;;  %v7256_v27 = vld [vmem:[%s11188_s3 + $0xa8] sm:$0xff] }
 0x263   : > { %8457 = vmatpush3.msra.mxu1 %v10321_v54  ;;  %8428 = vmatprep.subr.mxu0 %v10305_v31 }
 0x264   : > { %8459 = vmatmul.mubr.f32.vlgmr.msra.gmra.mxu1 %v5094_v15  ;;  %8486 = vmatprep.subr.mxu1 %v10223_v24 }
 0x265   : > { %8429 = vmatpush3.msra.mxu0 %v10305_v31  ;;  %8461 = vmatprep.mubr.f32.mxu1 %v5104_v12  ;;  %v10493_v31 = vsub.f32 %v7258_v32, %v10475_v35  ;;  %v5791_v32 = vand.u32 4294901760, %v10663_v10 }
 0x266   : > { %8487 = vmatpush3.msra.mxu1 %v10223_v24  ;;  %8430 = vmatprep.subr.mxu0 %v10319_v56  ;;  %v10496_v24 = vand.u32 4294901760, %v7256_v27 }
 0x267   : > { %8488 = vmatprep.subr.mxu1 %v10236_v50  ;;  %8431 = vmatpush3.msra.mxu0 %v10319_v56  ;;  %v7254_v56 = vld [vmem:[%s11188_s3 + $0x98] sm:$0xff]  ;;  %v10514_v30 = vand.u32 4294901760, %v10493_v31 }
 0x268   : > { %8489 = vmatpush3.msra.mxu1 %v10236_v50  ;;  %8432 = vmatprep.subr.mxu0 %v10333_v42  ;;  %v10506_v50 = vsub.f32 %v7257_v4, %v10488_v1  ;;  %v10525_v14 = vand.u32 4294901760, %v7254_v56 }
 0x269   : > { %8462 = vmatmul.mubr.f32.gmra.mxu1 %v5114_v37  ;;  %8490 = vmatprep.subr.mxu1 %v10248_v9  ;;  %v5829_v0 = vsub.f32 %v10493_v31, %v10514_v30  ;;  %v5688_v37 = vsel %vm4224_vm3, %v4219_v58, 0 }
 0x26a   : > { %8433 = vmatpush3.msra.mxu0 %v10333_v42  ;;  %8491 = vmatpush3.msra.mxu1 %v10248_v9  ;;  %v10516_v42 = vand.u32 4294901760, %v7255_v28  ;;  %v10521_v9 = vsub.f32 %v7256_v27, %v10496_v24  ;;  %v10555_v33 = vsub.f32 %v7254_v56, %v10525_v14  ;;  %v10643_v44 = vand.u32 4294901760, %v5688_v37 }
 0x26b   : > { %8502 = vmatprep.mubr.f32.mxu1 %v10418_v29  ;;  %8434 = vmatprep.subr.mxu0 %v10345_v49  ;;  %v5830_v8 = vand.u32 4294901760, %v5829_v0 }
 0x26c   : > { %8492 = vmatprep.subr.mxu1 %v10260_v20  ;;  %8435 = vmatpush3.msra.mxu0 %v10345_v49  ;;  %v7253_v49 = vld [vmem:[%s11188_s3 + $0x90] sm:$0xff]  ;;  %v10540_v59 = vsub.f32 %v7255_v28, %v10516_v42  ;;  %v10656_v38 = vsub.f32 %v5688_v37, %v10643_v44  ;;  %v5792_v28 = vsub.f32 %v10663_v10, %v5791_v32 }
 0x26d   : > { %8493 = vmatpush3.msra.mxu1 %v10260_v20  ;;  %8437 = vmatmul.mubr.f32.vlgmr.msra.gmra.mxu0 %v10424_v40  ;;  %v10533_v20 = vand.u32 4294901760, %v10506_v50  ;;  %v5685_v40 = vsel %vm4224_vm3, %v4218_v13, 0 }
 0x26e   : > { %8464 = vmatprep.subr.mxu0 %v10265_v47  ;;  %8494 = vmatprep.subr.mxu1 %v10275_v23  ;;  %v10572_v13 = vand.u32 4294901760, %v10540_v59  ;;  %v10581_v63 = vand.u32 4294901760, %v5685_v40  ;;  %v5781_v61 = vand.u32 4294901760, %v10656_v38  ;;  %v5793_v0 = vand.u32 4294901760, %v5792_v28 }
 0x26f   : > { %8439 = vmatprep.mubr.f32.mxu0 %v10441_v3  ;;  %8465 = vmatpush3.msra.mxu0 %v10265_v47  ;;  %v10548_v47 = vand.u32 4294901760, %v10521_v9 }
 0x270   : > { %8495 = vmatpush3.msra.mxu1 %v10275_v23  ;;  %8466 = vmatprep.subr.mxu0 %v10285_v52  ;;  %v10550_v23 = vand.u32 4294901760, %v7253_v49  ;;  %v5850_v60 = vsub.f32 %v10540_v59, %v10572_v13  ;;  %v5782_v4 = vsub.f32 %v10656_v38, %v5781_v61 }
 0x271   : > { %8496 = vmatprep.subr.mxu1 %v10290_v5  ;;  %8467 = vmatpush3.msra.mxu0 %v10285_v52  ;;  %v5836_v52 = vsub.f32 %v10506_v50, %v10533_v20  ;;  %v5843_v34 = vsub.f32 %v10521_v9, %v10548_v47 }
 0x272   : > { %8497 = vmatpush3.msra.mxu1 %v10290_v5  ;;  %8440 = vmatmul.mubr.f32.gmra.mxu0 %v10446_v55  ;;  %v7251_v5 = vld [vmem:[%s11188_s3 + $0x80] sm:$0xff]  ;;  %v10579_v21 = vsub.f32 %v7253_v49, %v10550_v23  ;;  %v5851_v3 = vand.u32 4294901760, %v5850_v60  ;;  %v5783_v56 = vand.u32 4294901760, %v5782_v4 }
 0x273   : > { %8468 = vmatprep.subr.mxu0 %v10302_v19  ;;  %8498 = vmatprep.subr.mxu1 %v10307_v6  ;;  %v6429_v60 = vld [vmem:[%s11190_s5 + $0x20] sm:$0xff] }
 0x274   : > { %8469 = vmatpush3.msra.mxu0 %v10302_v19  ;;  %8480 = vmatprep.mubr.f32.mxu0 %v10418_v29  ;;  %v10586_v19 = vand.u32 4294901760, %v10555_v33  ;;  %v10588_v29 = vand.u32 4294901760, %v7251_v5  ;;  %v10601_v15 = vand.u32 4294901760, %v10579_v21 }
 0x275   : > { %8499 = vmatpush3.msra.mxu1 %v10307_v6  ;;  %8470 = vmatprep.subr.mxu0 %v10316_v39  ;;  %v5837_v6 = vand.u32 4294901760, %v5836_v52 }
 0x276   : > { %8500 = vmatprep.subr.mxu1 %v10321_v54  ;;  %8471 = vmatpush3.msra.mxu0 %v10316_v39  ;;  %v5844_v39 = vand.u32 4294901760, %v5843_v34  ;;  %v5857_v62 = vsub.f32 %v10555_v33, %v10586_v19  ;;  %v10610_v17 = vsub.f32 %v7251_v5, %v10588_v29  ;;  %v5864_v55 = vsub.f32 %v10579_v21, %v10601_v15  ;;  %v6431_v34 = vld [vmem:[%s11190_s5 + $0x30] sm:$0xff] }
 0x277   : > { %8501 = vmatpush3.msra.mxu1 %v10321_v54  ;;  %8472 = vmatprep.subr.mxu0 %v10330_v57  ;;  %v10604_v54 = vsub.f32 %v5685_v40, %v10581_v63 }
 0x278   : > { %8503 = vmatmul.mubr.f32.vlgmr.msra.gmra.mxu1 %v10420_v16  ;;  %8530 = vmatprep.subr.mxu1 %v5830_v8  ;;  %v5858_v7 = vand.u32 4294901760, %v5857_v62 }
 0x279   : > { %8473 = vmatpush3.msra.mxu0 %v10330_v57  ;;  %8505 = vmatprep.mubr.f32.mxu1 %v10431_v41  ;;  %v10614_v57 = vand.u32 4294901760, %v10593_v48  ;;  %v5771_v45 = vand.u32 4294901760, %v10604_v54 }
 0x27a   : > { %8531 = vmatpush3.msra.mxu1 %v5830_v8  ;;  %8474 = vmatprep.subr.mxu0 %v10342_v36 }
 0x27b   : > { %8532 = vmatprep.subr.mxu1 %v5837_v6  ;;  %8475 = vmatpush3.msra.mxu0 %v10342_v36  ;;  %v10623_v36 = vand.u32 4294901760, %v10610_v17  ;;  %v5871_v12 = vsub.f32 %v10593_v48, %v10614_v57  ;;  %v5772_v51 = vsub.f32 %v10604_v54, %v5771_v45 }
 0x27c   : > { %8533 = vmatpush3.msra.mxu1 %v5837_v6  ;;  %8476 = vmatprep.subr.mxu0 %v10352_v11  ;;  %v10818_v6 = vand.u32 4294901760, %v6431_v34 }
 0x27d   : > { %8506 = vmatmul.mubr.f32.gmra.mxu1 %v10433_v26  ;;  %8534 = vmatprep.subr.mxu1 %v5844_v39  ;;  %v5878_v58 = vsub.f32 %v10610_v17, %v10623_v36 }
 0x27e   : > { %8477 = vmatpush3.msra.mxu0 %v10352_v11  ;;  %8535 = vmatpush3.msra.mxu1 %v5844_v39  ;;  %v5865_v11 = vand.u32 4294901760, %v5864_v55  ;;  %v10825_v39 = vand.u32 4294901760, %v6429_v60 }
 0x27f   : > { %8546 = vmatprep.mubr.f32.mxu1 %v10581_v63  ;;  %8478 = vmatprep.subr.mxu0 %v10360_v43 }
 0x280   : > { %8536 = vmatprep.subr.mxu1 %v5851_v3  ;;  %8479 = vmatpush3.msra.mxu0 %v10360_v43  ;;  %v5872_v43 = vand.u32 4294901760, %v5871_v12  ;;  %11318 = vst [vmem:[#allocation14_spill] sm:$0xff] %v10825_v39 }
 0x281   : > { %8537 = vmatpush3.msra.mxu1 %v5851_v3  ;;  %8481 = vmatmul.mubr.f32.vlgmr.msra.gmra.mxu0 %v10420_v16  ;;  %v5773_v16 = vand.u32 4294901760, %v5772_v51 }
 0x282   : > { %8508 = vmatprep.subr.mxu0 %v10475_v35  ;;  %8538 = vmatprep.subr.mxu1 %v5858_v7 }
 0x283   : > { %8483 = vmatprep.mubr.f32.mxu0 %v10431_v41  ;;  %8509 = vmatpush3.msra.mxu0 %v10475_v35  ;;  %v5879_v41 = vand.u32 4294901760, %v5878_v58 }
 0x284   : > { %8539 = vmatpush3.msra.mxu1 %v5858_v7  ;;  %8510 = vmatprep.subr.mxu0 %v10488_v1 }
 0x285   : > { %8540 = vmatprep.subr.mxu1 %v5865_v11  ;;  %8511 = vmatpush3.msra.mxu0 %v10488_v1 }
 0x286   : > { %8541 = vmatpush3.msra.mxu1 %v5865_v11  ;;  %8484 = vmatmul.mubr.f32.gmra.mxu0 %v10433_v26  ;;  %v10670_v26 = vsub.f32 %v5694_v46, %v10659_v25 }
 0x287   : > { %8512 = vmatprep.subr.mxu0 %v10496_v24  ;;  %8542 = vmatprep.subr.mxu1 %v5872_v43 }
 0x288   : > { %8513 = vmatpush3.msra.mxu0 %v10496_v24  ;;  %8524 = vmatprep.mubr.f32.mxu0 %v5773_v16  ;;  %v5801_v27 = vand.u32 4294901760, %v10670_v26 }
 0x289   : > { %8543 = vmatpush3.msra.mxu1 %v5872_v43  ;;  %8514 = vmatprep.subr.mxu0 %v10516_v42 }
 0x28a   : > { %8544 = vmatprep.subr.mxu1 %v5879_v41  ;;  %8515 = vmatpush3.msra.mxu0 %v10516_v42  ;;  %v5802_v49 = vsub.f32 %v10670_v26, %v5801_v27 }
 0x28b   : > { %8545 = vmatpush3.msra.mxu1 %v5879_v41  ;;  %8516 = vmatprep.subr.mxu0 %v10525_v14 }
 0x28c   : > { %8547 = vmatmul.mubr.f32.vlgmr.msra.gmra.mxu1 %v10643_v44  ;;  %8574 = vmatprep.subr.mxu1 %v10475_v35  ;;  %v5803_v2 = vand.u32 4294901760, %v5802_v49 }
 0x28d   : > { %8517 = vmatpush3.msra.mxu0 %v10525_v14  ;;  %8549 = vmatprep.mubr.f32.mxu1 %v10651_v22 }
 0x28e   : > { %8575 = vmatpush3.msra.mxu1 %v10475_v35  ;;  %8518 = vmatprep.subr.mxu0 %v10550_v23 }
 0x28f   : > { %8576 = vmatprep.subr.mxu1 %v10488_v1  ;;  %8519 = vmatpush3.msra.mxu0 %v10550_v23 }
 0x290   : > { %8577 = vmatpush3.msra.mxu1 %v10488_v1  ;;  %8520 = vmatprep.subr.mxu0 %v10564_v18 }
 0x291   : > { %8550 = vmatmul.mubr.f32.gmra.mxu1 %v10659_v25  ;;  %8578 = vmatprep.subr.mxu1 %v10496_v24 }
 0x292   : > { %8521 = vmatpush3.msra.mxu0 %v10564_v18  ;;  %8579 = vmatpush3.msra.mxu1 %v10496_v24 }
 0x293   : > { %8590 = vmatprep.mubr.f32.mxu1 %v5771_v45  ;;  %8522 = vmatprep.subr.mxu0 %v10588_v29 }
 0x294   : > { %8580 = vmatprep.subr.mxu1 %v10516_v42  ;;  %8523 = vmatpush3.msra.mxu0 %v10588_v29 }
 0x295   : > { %8581 = vmatpush3.msra.mxu1 %v10516_v42  ;;  %8525 = vmatmul.mubr.f32.vlgmr.msra.gmra.mxu0 %v5783_v56 }
 0x296   : > { %8552 = vmatprep.subr.mxu0 %v10493_v31  ;;  %8582 = vmatprep.subr.mxu1 %v10525_v14 }
 0x297   : > { %8527 = vmatprep.mubr.f32.mxu0 %v5793_v0  ;;  %8553 = vmatpush3.msra.mxu0 %v10493_v31 }
 0x298   : > { %8583 = vmatpush3.msra.mxu1 %v10525_v14  ;;  %8554 = vmatprep.subr.mxu0 %v10506_v50 }
 0x299   : > { %8584 = vmatprep.subr.mxu1 %v10550_v23  ;;  %8555 = vmatpush3.msra.mxu0 %v10506_v50 }
 0x29a   : > { %8585 = vmatpush3.msra.mxu1 %v10550_v23  ;;  %8528 = vmatmul.mubr.f32.gmra.mxu0 %v5803_v2 }
 0x29b   : > { %8556 = vmatprep.subr.mxu0 %v10521_v9  ;;  %8586 = vmatprep.subr.mxu1 %v10564_v18 }
 0x29c   : > { %8557 = vmatpush3.msra.mxu0 %v10521_v9  ;;  %8568 = vmatprep.mubr.f32.mxu0 %v10604_v54  ;;  %v10831_v54 = vsub.f32 %v6431_v34, %v10818_v6 }
 0x29d   : > { %8587 = vmatpush3.msra.mxu1 %v10564_v18  ;;  %8558 = vmatprep.subr.mxu0 %v10540_v59 }
 0x29e   : > { %8588 = vmatprep.subr.mxu1 %v10588_v29  ;;  %8559 = vmatpush3.msra.mxu0 %v10540_v59  ;;  %11319 = vst [vmem:[#allocation17_spill] sm:$0xff] %v10831_v54  ;;  %v10849_v7 = vand.u32 4294901760, %v10831_v54 }
 0x29f   : > { %8589 = vmatpush3.msra.mxu1 %v10588_v29  ;;  %8560 = vmatprep.subr.mxu0 %v10555_v33 }
 0x2a0   : > { %8591 = vmatmul.mubr.f32.vlgmr.msra.gmra.mxu1 %v5781_v61  ;;  %8618 = vmatprep.subr.mxu1 %v10475_v35  ;;  %11323 = vst [vmem:[#allocation16_spill] sm:$0xff] %v10849_v7  ;;  %v6592_v11 = vsub.f32 %v10831_v54, %v10849_v7 }
 0x2a1   : > { %8561 = vmatpush3.msra.mxu0 %v10555_v33  ;;  %8593 = vmatprep.mubr.f32.mxu1 %v5791_v32 }
 0x2a2   : > { %8619 = vmatpush3.msra.mxu1 %v10475_v35  ;;  %8562 = vmatprep.subr.mxu0 %v10579_v21 }
 0x2a3   : > { %8620 = vmatprep.subr.mxu1 %v10488_v1  ;;  %8563 = vmatpush3.msra.mxu0 %v10579_v21  ;;  %v6430_v21 = vld [vmem:[%s11190_s5 + $0x28] sm:$0xff] }
 0x2a4   : > { %8621 = vmatpush3.msra.mxu1 %v10488_v1  ;;  %8564 = vmatprep.subr.mxu0 %v10593_v48 }
 0x2a5   : > { %8594 = vmatmul.mubr.f32.gmra.mxu1 %v5801_v27  ;;  %8622 = vmatprep.subr.mxu1 %v10496_v24 }
 0x2a6   : > { %8565 = vmatpush3.msra.mxu0 %v10593_v48  ;;  %8623 = vmatpush3.msra.mxu1 %v10496_v24  ;;  %v10820_v48 = vand.u32 4294901760, %v6430_v21 }
 0x2a7   : > { %8634 = vmatprep.mubr.f32.mxu1 %v10581_v63  ;;  %8566 = vmatprep.subr.mxu0 %v10610_v17 }
 0x2a8   : > { %8624 = vmatprep.subr.mxu1 %v10516_v42  ;;  %8567 = vmatpush3.msra.mxu0 %v10610_v17  ;;  %11317 = vst [vmem:[#allocation13_spill] sm:$0xff] %v10820_v48  ;;  %v10834_v62 = vsub.f32 %v6430_v21, %v10820_v48  ;;  %v10838_v17 = vsub.f32 %v6429_v60, %v10825_v39 }
 0x2a9   : > { %8625 = vmatpush3.msra.mxu1 %v10516_v42  ;;  %8569 = vmatmul.mubr.f32.vlgmr.msra.gmra.mxu0 %v10656_v38 }
 0x2aa   : > { %8596 = vmatprep.subr.mxu0 %v10514_v30  ;;  %8626 = vmatprep.subr.mxu1 %v10525_v14  ;;  %11320 = vst [vmem:[#allocation9_spill] sm:$0xff] %v10834_v62  ;;  %11321 = vst [vmem:[#allocation20_spill] sm:$0xff] %v10838_v17  ;;  %v10852_v45 = vand.u32 4294901760, %v10834_v62 }
 0x2ab   : > { %8571 = vmatprep.mubr.f32.mxu0 %v10663_v10  ;;  %8597 = vmatpush3.msra.mxu0 %v10514_v30 }
 0x2ac   : > { %8627 = vmatpush3.msra.mxu1 %v10525_v14  ;;  %8598 = vmatprep.subr.mxu0 %v10533_v20  ;;  %11324 = vst [vmem:[#allocation19_spill] sm:$0xff] %v10852_v45  ;;  %v6599_v53 = vsub.f32 %v10834_v62, %v10852_v45 }
 0x2ad   : > { %8628 = vmatprep.subr.mxu1 %v10550_v23  ;;  %8599 = vmatpush3.msra.mxu0 %v10533_v20 }
 0x2ae   : > { %8629 = vmatpush3.msra.mxu1 %v10550_v23  ;;  %8572 = vmatmul.mubr.f32.gmra.mxu0 %v10670_v26  ;;  %v6600_v16 = vand.u32 4294901760, %v6599_v53 }
 0x2af   : > { %8600 = vmatprep.subr.mxu0 %v10548_v47  ;;  %8630 = vmatprep.subr.mxu1 %v10564_v18 }
 0x2b0   : > { %8601 = vmatpush3.msra.mxu0 %v10548_v47  ;;  %8612 = vmatprep.mubr.f32.mxu0 %v10581_v63 }
 0x2b1   : > { %8631 = vmatpush3.msra.mxu1 %v10564_v18  ;;  %8602 = vmatprep.subr.mxu0 %v10572_v13 }
 0x2b2   : > { %8632 = vmatprep.subr.mxu1 %v10588_v29  ;;  %8603 = vmatpush3.msra.mxu0 %v10572_v13  ;;  %v10765_v35 = vpop.f32.mrf.mxu1  ;;  %v6432_v13 = vld [vmem:[%s11190_s5 + $0x38] sm:$0xff] }
 0x2b3   : > { %8633 = vmatpush3.msra.mxu1 %v10588_v29  ;;  %8604 = vmatprep.subr.mxu0 %v10586_v19  ;;  %v10816_v29 = vand.u32 4294901760, %v6432_v13 }
 0x2b4   : > { %8635 = vmatmul.mubr.f32.vlgmr.msra.gmra.mxu1 %v10643_v44  ;;  %8605 = vmatpush3.msra.mxu0 %v10586_v19  ;;  %v10767_v1 = vpop.f32.mrf.mxu1 }
 0x2b5   : > { %8637 = vmatprep.mubr.f32.mxu1 %v10651_v22  ;;  %8606 = vmatprep.subr.mxu0 %v10601_v15 }
 0x2b6   : > { %8607 = vmatpush3.msra.mxu0 %v10601_v15  ;;  %v10828_v15 = vsub.f32 %v6432_v13, %v10816_v29 }
 0x2b7   : > { %8608 = vmatprep.subr.mxu0 %v10614_v57 }
 0x2b8   : > { %8638 = vmatmul.mubr.f32.gmra.mxu1 %v10659_v25  ;;  %8609 = vmatpush3.msra.mxu0 %v10614_v57  ;;  %v10771_v24 = vpop.f32.mrf.mxu1  ;;  %v10846_v55 = vand.u32 4294901760, %v10828_v15 }
 0x2b9   : > { %8610 = vmatprep.subr.mxu0 %v10623_v36 }
 0x2ba   : > { %8611 = vmatpush3.msra.mxu0 %v10623_v36  ;;  %v10769_v31 = vpop.f32.mrf.mxu0  ;;  %v10775_v30 = vpop.f32.mrf.mxu1  ;;  %11322 = vst [vmem:[#allocation11_spill] sm:$0xff] %v10846_v55  ;;  %v10856_v36 = vand.u32 4294901760, %v10838_v17  ;;  %v6585_v37 = vsub.f32 %v10828_v15, %v10846_v55 }
 0x2bb   : > { %8613 = vmatmul.mubr.f32.vlgmr.msra.gmra.mxu0 %v10643_v44  ;;  %8640 = vmatprep.subr.mxu0 %v10816_v29  ;;  %v6593_v44 = vand.u32 4294901760, %v6592_v11 }
 0x2bc   : > { %8615 = vmatprep.mubr.f32.mxu0 %v10651_v22  ;;  %v10773_v50 = vpop.f32.mrf.mxu0  ;;  %8641 = vmatpush3.msra.mxu0 %v10816_v29  ;;  %11325 = vst [vmem:[#allocation22_spill] sm:$0xff] %v10856_v36  ;;  %v6586_v58 = vand.u32 4294901760, %v6585_v37  ;;  %v6606_v43 = vsub.f32 %v10838_v17, %v10856_v36 }
 0x2bd   : > { %8642 = vmatprep.subr.mxu0 %v10818_v6  ;;  %v4552_v36 = vadd.f32 %v10767_v1, %v10773_v50 }
 0x2be   : > { %8643 = vmatpush3.msra.mxu0 %v10818_v6  ;;  %8662 = vmatprep.subr.mxu1 %v6586_v58  ;;  %v6607_v41 = vand.u32 4294901760, %v6606_v43 }
 0x2bf   : > { %8616 = vmatmul.mubr.f32.gmra.mxu0 %v10659_v25  ;;  %8644 = vmatprep.subr.mxu0 %v10820_v48 }
 0x2c0   : > { %v10777_v42 = vpop.f32.mrf.mxu0  ;;  %8645 = vmatpush3.msra.mxu0 %v10820_v48  ;;  %8663 = vmatpush3.msra.mxu1 %v6586_v58 }
 0x2c1   : > { %8646 = vmatprep.subr.mxu0 %v10825_v39  ;;  %8664 = vmatprep.subr.mxu1 %v6593_v44  ;;  %v4570_v7 = vadd.f32 %v10771_v24, %v10777_v42 }
 0x2c2   : > { %v10781_v14 = vpop.f32.mrf.mxu0  ;;  %8647 = vmatpush3.msra.mxu0 %v10825_v39  ;;  %8665 = vmatpush3.msra.mxu1 %v6593_v44 }
 0x2c3   : > { %8666 = vmatprep.subr.mxu1 %v6600_v16  ;;  %v4564_v54 = vadd.f32 %v10775_v30, %v10781_v14 }
 0x2c4   : > { %v10779_v9 = vpop.f32.mrf.mxu1  ;;  %8667 = vmatpush3.msra.mxu1 %v6600_v16 }
 0x2c5   : > { %8668 = vmatprep.subr.mxu1 %v6607_v41 }
 0x2c6   : > { %v10783_v20 = vpop.f32.mrf.mxu1  ;;  %8669 = vmatpush3.msra.mxu1 %v6607_v41  ;;  %v4558_v41 = vadd.f32 %v10765_v35, %v10769_v31 }
 0x2c9   : > { %v10787_v47 = vpop.f32.mrf.mxu1 }
 0x2cb   : > { %v10791_v33 = vpop.f32.mrf.mxu1 }
 0x2cd   : > { %v10785_v59 = vpop.f32.mrf.mxu0 }
 0x2ce   : > { %v4665_v45 = vadd.f32 %v10785_v59, %v4558_v41 }
 0x2cf   : > { %v10789_v23 = vpop.f32.mrf.mxu0 }
 0x2d0   : > { %v4658_v55 = vadd.f32 %v10789_v23, %v4552_v36  ;;  %v4768_v48 = vadd.f32 %v10779_v9, %v4665_v45 }
 0x2d2   : > { %v10793_v40 = vpop.f32.mrf.mxu0  ;;  %v4760_v1 = vadd.f32 %v10783_v20, %v4658_v55 }
 0x2d3   : > { %v4679_v39 = vadd.f32 %v10793_v40, %v4570_v7 }
 0x2d4   : > { %v10797_v18 = vpop.f32.mrf.mxu0 }
 0x2d5   : > { %v4672_v35 = vadd.f32 %v10797_v18, %v4564_v54  ;;  %v4784_v42 = vadd.f32 %v10787_v47, %v4679_v39 }
 0x2d7   : > { %v4776_v30 = vadd.f32 %v10791_v33, %v4672_v35 }
 0x2d8   : > { %v10795_v52 = vpop.f32.mrf.mxu1 }
 0x2da   : > { %v10799_v5 = vpop.f32.mrf.mxu1 }
 0x2dc   : > { %v10812_v63 = vpop.f32.mrf.mxu1 }
 0x2de   : > { %v10841_v57 = vpop.f32.mrf.mxu1 }
 0x2df   : > { %v10801_v8 = vpop.f32.mrf.mxu0 }
 0x2e0   : > { %v4885_v59 = vadd.f32 %v10801_v8, %v4768_v48 }
 0x2e1   : > { %v10814_v19 = vpop.f32.mrf.mxu0 }
 0x2e2   : > { %v4879_v24 = vadd.f32 %v10814_v19, %v4760_v1  ;;  %v4982_v9 = vadd.f32 %v10795_v52, %v4885_v59 }
 0x2e3   : > { %v10843_v3 = vpop.f32.mrf.mxu0 }
 0x2e4   : > { %v4897_v36 = vadd.f32 %v10843_v3, %v4784_v42  ;;  %v4976_v20 = vadd.f32 %v10799_v5, %v4879_v24 }
 0x2e5   : > { %v10869_v51 = vpop.f32.mrf.mxu0 }
 0x2e6   : > { %v4891_v40 = vadd.f32 %v10869_v51, %v4776_v30  ;;  %v4994_v19 = vadd.f32 %v10812_v63, %v4897_v36 }
 0x2e8   : > { %v4988_v47 = vadd.f32 %v10841_v57, %v4891_v40 }
 0x312   : > { %v10859_v12 = vpop.f32.mrf.mxu1 }
 0x314   : > { %v10875_v46 = vpop.f32.mrf.mxu1 }
 0x316   : > { %v10877_v38 = vpop.f32.mrf.mxu1 }
 0x318   : > { %v10879_v10 = vpop.f32.mrf.mxu1 }
 0x31a   : > { %v8394_v22 = vpop.f32.mrf.mxu0 }
 0x31b   : > { %v5099_v55 = vadd.f32 %v8394_v22, %v4982_v9 }
 0x31c   : > { %v5088_v25 = vpop.f32.mrf.mxu0 }
 0x31d   : > { %v5089_v8 = vadd.f32 %v5088_v25, %v4976_v20  ;;  %v5236_v33 = vadd.f32 %v10859_v12, %v5099_v55 }
 0x31f   : > { %v8397_v61 = vpop.f32.mrf.mxu0  ;;  %v5230_v52 = vadd.f32 %v10875_v46, %v5089_v8 }
 0x320   : > { %v5119_v48 = vadd.f32 %v8397_v61, %v4994_v19 }
 0x321   : > { %v5108_v32 = vpop.f32.mrf.mxu0 }
 0x322   : > { %v5109_v7 = vadd.f32 %v5108_v32, %v4988_v47  ;;  %v5248_v5 = vadd.f32 %v10877_v38, %v5119_v48 }
 0x324   : > { %v10881_v26 = vpop.f32.mrf.mxu1  ;;  %v5242_v61 = vadd.f32 %v10879_v10, %v5109_v7 }
 0x326   : > { %v10883_v4 = vpop.f32.mrf.mxu1 }
 0x329   : > { %v10885_v28 = vpop.f32.mrf.mxu1 }
 0x32b   : > { %v10887_v49 = vpop.f32.mrf.mxu1 }
 0x32d   : > { %v8438_v27 = vpop.f32.mrf.mxu0 }
 0x32e   : > { %v5343_v45 = vadd.f32 %v8438_v27, %v5236_v33 }
 0x32f   : > { %v5335_v56 = vpop.f32.mrf.mxu0 }
 0x330   : > { %v5336_v41 = vadd.f32 %v5335_v56, %v5230_v52  ;;  %v5446_v59 = vadd.f32 %v10881_v26, %v5343_v45 }
 0x332   : > { %v8441_v0 = vpop.f32.mrf.mxu0  ;;  %v5438_v46 = vadd.f32 %v10883_v4, %v5336_v41 }
 0x333   : > { %v5357_v63 = vadd.f32 %v8441_v0, %v5248_v5  ;;  %v6427_v5 = vld [vmem:[%s11190_s5 + $0x10] sm:$0xff] }
 0x334   : > { %v5349_v13 = vpop.f32.mrf.mxu0 }
 0x335   : > { %v5350_v32 = vadd.f32 %v5349_v13, %v5242_v61 }
 0x337   : > { %v5454_v26 = vadd.f32 %v10887_v49, %v5350_v32 }
 0x338   : > { %v10889_v2 = vpop.f32.mrf.mxu1 }
 0x33a   : > { %v10891_v34 = vpop.f32.mrf.mxu1 }
 0x33d   : > { %v10893_v60 = vpop.f32.mrf.mxu1 }
 0x33f   : > { %v10897_v11 = vpop.f32.mrf.mxu1 }
 0x341   : > { %v8482_v21 = vpop.f32.mrf.mxu0 }
 0x343   : > { %v10895_v37 = vpop.f32.mrf.mxu0 }
 0x344   : > { %v5557_v42 = vadd.f32 %v10895_v37, %v5438_v46 }
 0x346   : > { %v10899_v53 = vpop.f32.mrf.mxu0 }
 0x348   : > { %v10901_v44 = vpop.f32.mrf.mxu0 }
 0x349   : > { %v5569_v37 = vadd.f32 %v10901_v44, %v5454_v26 }
 0x34b   : > { %v5666_v44 = vadd.f32 %v10897_v11, %v5569_v37 }
 0x34c   : > { %v8548_v58 = vpop.f32.mrf.mxu1 }
 0x34e   : > { %v5916_v43 = vpop.f32.mrf.mxu1 }
 0x351   : > { %v8551_v17 = vpop.f32.mrf.mxu1 }
 0x353   : > { %v5928_v31 = vpop.f32.mrf.mxu1 }
 0x355   : > { %v8526_v16 = vpop.f32.mrf.mxu0 }
 0x356   : > { %v5923_v51 = vadd.f32 %v8548_v58, %v8526_v16  ;;  %v5563_v58 = vadd.f32 %v8482_v21, %v5446_v59 }
 0x357   : > { %v5775_v62 = vpop.f32.mrf.mxu0 }
 0x358   : > { %v5917_v25 = vadd.f32 %v5916_v43, %v5775_v62  ;;  %v5462_v62 = vadd.f32 %v10885_v28, %v5357_v63  ;;  %v5660_v4 = vadd.f32 %v10889_v2, %v5563_v58 }
 0x35a   : > { %v8529_v50 = vpop.f32.mrf.mxu0 }
 0x35b   : > { %v5935_v24 = vadd.f32 %v8551_v17, %v8529_v50  ;;  %v5575_v17 = vadd.f32 %v10899_v53, %v5462_v62 }
 0x35c   : > { %v5795_v14 = vpop.f32.mrf.mxu0 }
 0x35d   : > { %v5929_v56 = vadd.f32 %v5928_v31, %v5795_v14  ;;  %v7259_v14 = vld [vmem:[%s11189_s4] ss:$0 sm:$0xff] }
 0x360   : > { %v8592_v23 = vpop.f32.mrf.mxu1 }
 0x362   : > { %v6124_v18 = vpop.f32.mrf.mxu1 }
 0x365   : > { %v8595_v39 = vpop.f32.mrf.mxu1 }
 0x367   : > { %v6140_v35 = vpop.f32.mrf.mxu1 }
 0x369   : > { %v8570_v54 = vpop.f32.mrf.mxu0 }
 0x36a   : > { %v6030_v1 = vadd.f32 %v8570_v54, %v5923_v51  ;;  %v6428_v51 = vld [vmem:[%s11190_s5 + $0x18] sm:$0xff] }
 0x36b   : > { %v6022_v3 = vpop.f32.mrf.mxu0  ;;  %v10960_v41 = vand.u32 4294901760, %v6428_v51 }
 0x36c   : > { %v6023_v12 = vadd.f32 %v6022_v3, %v5917_v25  ;;  %v6133_v38 = vadd.f32 %v8592_v23, %v6030_v1  ;;  %v5654_v23 = vadd.f32 %v10891_v34, %v5557_v42  ;;  %v6426_v25 = vld [vmem:[%s11190_s5 + $0x8] sm:$0xff] }
 0x36d   : > { %8648 = vmatprep.subr.mxu0 %v10960_v41 }
 0x36e   : > { %v8573_v22 = vpop.f32.mrf.mxu0  ;;  %v6125_v30 = vadd.f32 %v6124_v18, %v6023_v12  ;;  %v5672_v18 = vadd.f32 %v10893_v60, %v5575_v17  ;;  %8649 = vmatpush3.msra.mxu0 %v10960_v41 }
 0x36f   : > { %v6044_v16 = vadd.f32 %v8573_v22, %v5935_v24  ;;  %v10968_v22 = vand.u32 4294901760, %v6427_v5  ;;  %v6425_v24 = vld [vmem:[%s11190_s5] sm:$0xff] }
 0x370   : > { %v6036_v27 = vpop.f32.mrf.mxu0  ;;  %v10996_v58 = vand.u32 4294901760, %v6425_v24 }
 0x371   : > { %v6037_v10 = vadd.f32 %v6036_v27, %v5929_v56  ;;  %v6149_v50 = vadd.f32 %v8595_v39, %v6044_v16  ;;  %v10979_v61 = vsub.f32 %v6427_v5, %v10968_v22  ;;  %8650 = vmatprep.subr.mxu0 %v10968_v22 }
 0x372   : > { %8651 = vmatpush3.msra.mxu0 %v10968_v22 }
 0x373   : > { %v6141_v49 = vadd.f32 %v6140_v35, %v6037_v10  ;;  %v10966_v35 = vsub.f32 %v6428_v51, %v10960_v41  ;;  %v10991_v46 = vand.u32 4294901760, %v10979_v61 }
 0x374   : > { %v8636_v57 = vpop.f32.mrf.mxu1 }
 0x375   : > { %v10976_v63 = vand.u32 4294901760, %v10966_v35  ;;  %v6620_v42 = vsub.f32 %v10979_v61, %v10991_v46 }
 0x376   : > { %v6340_v0 = vpop.f32.mrf.mxu1 }
 0x377   : > { %v6613_v32 = vsub.f32 %v10966_v35, %v10976_v63 }
 0x378   : > { %v8639_v28 = vpop.f32.mrf.mxu1 }
 0x37a   : > { %v6352_v19 = vpop.f32.mrf.mxu1 }
 0x37b   : > { %v8614_v43 = vpop.f32.mrf.mxu0 }
 0x37c   : > { %v6250_v36 = vadd.f32 %v8614_v43, %v6133_v38  ;;  %v6614_v38 = vand.u32 4294901760, %v6613_v32 }
 0x37d   : > { %v6243_v13 = vpop.f32.mrf.mxu0 }
 0x37e   : > { %v6347_v21 = vadd.f32 %v8636_v57, %v6250_v36  ;;  %v6244_v31 = vadd.f32 %v6243_v13, %v6125_v30  ;;  %v10981_v57 = vand.u32 4294901760, %v6426_v25  ;;  %8670 = vmatprep.subr.mxu1 %v6614_v38  ;;  %v6621_v36 = vand.u32 4294901760, %v6620_v42 }
 0x37f   : > { %v8617_v9 = vpop.f32.mrf.mxu0  ;;  %8671 = vmatpush3.msra.mxu1 %v6614_v38 }
 0x380   : > { %v6363_v40 = vadd.f32 %v6347_v21, %v5660_v4  ;;  %v6341_v53 = vadd.f32 %v6340_v0, %v6244_v31  ;;  %v6262_v20 = vadd.f32 %v8617_v9, %v6149_v50  ;;  %v10994_v27 = vsub.f32 %v6426_v25, %v10981_v57  ;;  %8652 = vmatprep.subr.mxu0 %v10981_v57 }
 0x381   : > { %v6255_v2 = vpop.f32.mrf.mxu0  ;;  %8653 = vmatpush3.msra.mxu0 %v10981_v57  ;;  %v11006_v0 = vsub.f32 %v6425_v24, %v10996_v58  ;;  %8672 = vmatprep.subr.mxu1 %v6621_v36 }
 0x382   : > { %v10944_v54 = vadd.f32 %v7259_v14, %v6363_v40  ;;  %v6362_v55 = vadd.f32 %v6341_v53, %v5654_v23  ;;  %v6359_v8 = vadd.f32 %v8639_v28, %v6262_v20  ;;  %v6256_v34 = vadd.f32 %v6255_v2, %v6141_v49  ;;  %8654 = vmatprep.subr.mxu0 %v10996_v58 }
 0x383   : > { %v11003_v62 = vand.u32 4294901760, %v10994_v27  ;;  %8655 = vmatpush3.msra.mxu0 %v10996_v58  ;;  %v11013_v17 = vand.u32 4294901760, %v11006_v0  ;;  %8673 = vmatpush3.msra.mxu1 %v6621_v36  ;;  %v11329_v36 = vld [vmem:[#allocation9_spill] sm:$0xff] }
 0x384   : > { %v7261_v48 = vmul.f32 -1.442695, %v10944_v54  ;;  %v10948_v47 = vadd.f32 %v7259_v14, %v6362_v55  ;;  %v6365_v39 = vadd.f32 %v6359_v8, %v5672_v18  ;;  %v6353_v3 = vadd.f32 %v6352_v19, %v6256_v34  ;;  %8684 = vmatprep.subr.mxu0 %v10828_v15 }
 0x385   : > { %v6627_v30 = vsub.f32 %v10994_v27, %v11003_v62  ;;  %v6634_v4 = vsub.f32 %v11006_v0, %v11013_v17 }
 0x386   : > { %8849 = vpow2.f32 %v7261_v48  ;;  %v7260_v33 = vmul.f32 -1.442695, %v10948_v47  ;;  %v10951_v7 = vadd.f32 %v7259_v14, %v6365_v39  ;;  %v6364_v60 = vadd.f32 %v6353_v3, %v5666_v44 }
 0x387   : > { %v6628_v13 = vand.u32 4294901760, %v6627_v30  ;;  %v6635_v21 = vand.u32 4294901760, %v6634_v4 }
 0x388   : > { %8851 = vpow2.f32 %v7260_v33  ;;  %v7263_v52 = vmul.f32 -1.442695, %v10951_v7  ;;  %v10954_v45 = vadd.f32 %v7259_v14, %v6364_v60 }
 0x389   : > { %8674 = vmatprep.subr.mxu1 %v6628_v13 }
 0x38a   : > { %8853 = vpow2.f32 %v7263_v52  ;;  %v7262_v11 = vmul.f32 -1.442695, %v10954_v45  ;;  %8675 = vmatpush3.msra.mxu1 %v6628_v13 }
 0x38b   : > { %8676 = vmatprep.subr.mxu1 %v6635_v21 }
 0x38c   : > { %8855 = vpow2.f32 %v7262_v11  ;;  %8677 = vmatpush3.msra.mxu1 %v6635_v21 }
 0x38d   : > { %8706 = vmatprep.subr.mxu1 %v10816_v29 }
 0x393   : > { %v8850_v1 = vpop.eup %8849 }
 0x394   : > { %v6390_v59 = vadd.f32 1.0, %v8850_v1 }
 0x395   : > { %v8852_v12 = vpop.eup %8851 }
 0x396   : > { %8857 = vrcp.f32 %v6390_v59  ;;  %v6389_v56 = vadd.f32 1.0, %v8852_v12  ;;  %v11326_v59 = vld [vmem:[#allocation13_spill] sm:$0xff] }
 0x397   : > { %v8854_v16 = vpop.eup %8853 }
 0x398   : > { %8859 = vrcp.f32 %v6389_v56  ;;  %v6392_v43 = vadd.f32 1.0, %v8854_v16  ;;  %v11327_v56 = vld [vmem:[#allocation14_spill] sm:$0xff] }
 0x399   : > { %v8856_v10 = vpop.eup %8855 }
 0x39a   : > { %8861 = vrcp.f32 %v6392_v43  ;;  %v6391_v26 = vadd.f32 1.0, %v8856_v10  ;;  %v11328_v43 = vld [vmem:[#allocation17_spill] sm:$0xff] }
 0x39c   : > { %8863 = vrcp.f32 %v6391_v26 }
 0x3a3   : > { %v8858_v31 = vpop.eup %8857 }
 0x3a4   : > { %6407 = vrot.lane.b32.xlu1 %v8858_v31, %s8927_s15 }
 0x3a5   : > { %v8860_v50 = vpop.eup %8859 }
 0x3a6   : > { %6405 = vrot.lane.b32.xlu0 %v8860_v50, %s8927_s15 }
 0x3a7   : > { %v8862_v23 = vpop.eup %8861 }
 0x3a8   : > { %6411 = vrot.lane.b32.xlu1 %v8862_v23, %s8927_s15 }
 0x3a9   : > { %v8864_v37 = vpop.eup %8863 }
 0x3aa   : > { %6409 = vrot.lane.b32.xlu0 %v8864_v37, %s8927_s15 }
 0x416   : > { %v6408_v28 = vpop.permute.xlu1 %6407 }
 0x417   : > { %v6418_v14 = vmul.f32 %v6408_v28, %v10944_v54 }
 0x418   : > { %v6406_v9 = vpop.permute.xlu0 %6405 }
 0x419   : > { %v6422_v40 = vmax.f32 %v6418_v14, 0.0  ;;  %v6417_v53 = vmul.f32 %v6406_v9, %v10948_v47 }
 0x41a   : > { %v6412_v20 = vpop.permute.xlu1 %6411 }
 0x41b   : > { %v6444_v49 = vsel %vm4224_vm3, %v6422_v40, 0  ;;  %v6421_v18 = vmax.f32 %v6417_v53, 0.0  ;;  %v6420_v2 = vmul.f32 %v6412_v20, %v10951_v7 }
 0x41c   : > { %v11027_v55 = vand.u32 4294901760, %v6444_v49  ;;  %v6410_v8 = vpop.permute.xlu0 %6409 }
 0x41d   : > { %v6441_v34 = vsel %vm4224_vm3, %v6421_v18, 0  ;;  %v6424_v44 = vmax.f32 %v6420_v2, 0.0  ;;  %v6419_v19 = vmul.f32 %v6410_v8, %v10954_v45 }
 0x41e   : > { %v11032_v54 = vsub.f32 %v6444_v49, %v11027_v55  ;;  %v11034_v48 = vand.u32 4294901760, %v6441_v34 }
 0x41f   : > { %v6450_v47 = vsel %vm4224_vm3, %v6424_v44, 0  ;;  %v6423_v39 = vmax.f32 %v6419_v19, 0.0 }
 0x420   : > { %v6537_v3 = vand.u32 4294901760, %v11032_v54  ;;  %v6526_v33 = vsub.f32 %v6441_v34, %v11034_v48  ;;  %v11039_v7 = vand.u32 4294901760, %v6450_v47  ;;  %8678 = vmatprep.mubr.f32.mxu1 %v11034_v48 }
 0x421   : > { %v6447_v60 = vsel %vm4224_vm3, %v6423_v39, 0  ;;  %8679 = vmatmul.mubr.f32.vlgmr.msra.gmra.mxu1 %v11027_v55 }
 0x422   : > { %v11045_v52 = vsub.f32 %v6450_v47, %v11039_v7  ;;  %v11047_v45 = vand.u32 4294901760, %v6447_v60  ;;  %8707 = vmatpush3.msra.mxu1 %v10816_v29  ;;  %v6527_v11 = vand.u32 4294901760, %v6526_v33  ;;  %v6538_v51 = vsub.f32 %v11032_v54, %v6537_v3 }
 0x423   : > { %8708 = vmatprep.subr.mxu1 %v10818_v6 }
 0x424   : > { %v6546_v5 = vsub.f32 %v6447_v60, %v11047_v45  ;;  %8709 = vmatpush3.msra.mxu1 %v10818_v6  ;;  %8681 = vmatprep.mubr.f32.mxu1 %v11047_v45  ;;  %v6528_v25 = vsub.f32 %v6526_v33, %v6527_v11  ;;  %v6557_v1 = vand.u32 4294901760, %v11045_v52  ;;  %v6539_v32 = vand.u32 4294901760, %v6538_v51 }
 0x425   : > { %8710 = vmatprep.subr.mxu1 %v11326_v59  ;;  %8682 = vmatmul.mubr.f32.gmra.mxu1 %v11039_v7 }
 0x426   : > { %8711 = vmatpush3.msra.mxu1 %v11326_v59  ;;  %8722 = vmatprep.mubr.f32.mxu1 %v6527_v11  ;;  %v6529_v24 = vand.u32 4294901760, %v6528_v25  ;;  %v6547_v12 = vand.u32 4294901760, %v6546_v5  ;;  %v6558_v38 = vsub.f32 %v11045_v52, %v6557_v1 }
 0x427   : > { %8712 = vmatprep.subr.mxu1 %v11327_v56 }
 0x428   : > { %8713 = vmatpush3.msra.mxu1 %v11327_v56  ;;  %8656 = vmatprep.mubr.f32.mxu0 %v6529_v24  ;;  %v6548_v16 = vsub.f32 %v6546_v5, %v6547_v12  ;;  %v6559_v10 = vand.u32 4294901760, %v6558_v38 }
 0x429   : > { %8714 = vmatprep.subr.mxu1 %v10960_v41  ;;  %8657 = vmatmul.mubr.f32.vlgmr.msra.gmra.mxu0 %v6539_v32 }
 0x42a   : > { %8685 = vmatpush3.msra.mxu0 %v10828_v15  ;;  %8715 = vmatpush3.msra.mxu1 %v10960_v41  ;;  %v6549_v42 = vand.u32 4294901760, %v6548_v16  ;;  %v11330_v15 = vld [vmem:[#allocation20_spill] sm:$0xff] }
 0x42b   : > { %8686 = vmatprep.subr.mxu0 %v11328_v43  ;;  %8716 = vmatprep.subr.mxu1 %v10968_v22 }
 0x42c   : > { %8687 = vmatpush3.msra.mxu0 %v11328_v43  ;;  %8717 = vmatpush3.msra.mxu1 %v10968_v22 }
 0x42d   : > { %8659 = vmatprep.mubr.f32.mxu0 %v6549_v42  ;;  %8688 = vmatprep.subr.mxu0 %v11329_v36 }
 0x42e   : > { %8718 = vmatprep.subr.mxu1 %v10981_v57  ;;  %8660 = vmatmul.mubr.f32.gmra.mxu0 %v6559_v10 }
 0x42f   : > { %8689 = vmatpush3.msra.mxu0 %v11329_v36  ;;  %8719 = vmatpush3.msra.mxu1 %v10981_v57 }
 0x430   : > { %8690 = vmatprep.subr.mxu0 %v11330_v15  ;;  %8700 = vmatprep.mubr.f32.mxu0 %v6526_v33 }
 0x431   : > { %8720 = vmatprep.subr.mxu1 %v10996_v58  ;;  %8691 = vmatpush3.msra.mxu0 %v11330_v15 }
 0x432   : > { %8721 = vmatpush3.msra.mxu1 %v10996_v58  ;;  %8692 = vmatprep.subr.mxu0 %v10966_v35 }
 0x433   : > { %8723 = vmatmul.mubr.f32.vlgmr.msra.gmra.mxu1 %v6537_v3  ;;  %8750 = vmatprep.subr.mxu1 %v10816_v29 }
 0x434   : > { %8693 = vmatpush3.msra.mxu0 %v10966_v35  ;;  %8725 = vmatprep.mubr.f32.mxu1 %v6547_v12  ;;  %v11333_v35 = vld [vmem:[#allocation19_spill] sm:$0xff] }
 0x435   : > { %8751 = vmatpush3.msra.mxu1 %v10816_v29  ;;  %8694 = vmatprep.subr.mxu0 %v10979_v61  ;;  %v11331_v29 = vld [vmem:[#allocation11_spill] sm:$0xff] }
 0x436   : > { %8752 = vmatprep.subr.mxu1 %v10818_v6  ;;  %8695 = vmatpush3.msra.mxu0 %v10979_v61 }
 0x437   : > { %8753 = vmatpush3.msra.mxu1 %v10818_v6  ;;  %8696 = vmatprep.subr.mxu0 %v10994_v27  ;;  %v11332_v6 = vld [vmem:[#allocation16_spill] sm:$0xff] }
 0x438   : > { %8726 = vmatmul.mubr.f32.gmra.mxu1 %v6557_v1  ;;  %8754 = vmatprep.subr.mxu1 %v11326_v59 }
 0x439   : > { %8697 = vmatpush3.msra.mxu0 %v10994_v27  ;;  %8755 = vmatpush3.msra.mxu1 %v11326_v59 }
 0x43a   : > { %8766 = vmatprep.mubr.f32.mxu1 %v11034_v48  ;;  %8698 = vmatprep.subr.mxu0 %v11006_v0 }
 0x43b   : > { %8756 = vmatprep.subr.mxu1 %v11327_v56  ;;  %8699 = vmatpush3.msra.mxu0 %v11006_v0 }
 0x43c   : > { %8757 = vmatpush3.msra.mxu1 %v11327_v56  ;;  %8701 = vmatmul.mubr.f32.vlgmr.msra.gmra.mxu0 %v11032_v54 }
 0x43d   : > { %8728 = vmatprep.subr.mxu0 %v11331_v29  ;;  %8758 = vmatprep.subr.mxu1 %v10960_v41 }
 0x43e   : > { %8703 = vmatprep.mubr.f32.mxu0 %v6546_v5  ;;  %8729 = vmatpush3.msra.mxu0 %v11331_v29 }
 0x43f   : > { %8759 = vmatpush3.msra.mxu1 %v10960_v41  ;;  %8730 = vmatprep.subr.mxu0 %v11332_v6  ;;  %v11334_v41 = vld [vmem:[#allocation22_spill] sm:$0xff] }
 0x440   : > { %8760 = vmatprep.subr.mxu1 %v10968_v22  ;;  %8731 = vmatpush3.msra.mxu0 %v11332_v6 }
 0x441   : > { %8761 = vmatpush3.msra.mxu1 %v10968_v22  ;;  %8704 = vmatmul.mubr.f32.gmra.mxu0 %v11045_v52 }
 0x442   : > { %8732 = vmatprep.subr.mxu0 %v11333_v35  ;;  %8762 = vmatprep.subr.mxu1 %v10981_v57 }
 0x443   : > { %8733 = vmatpush3.msra.mxu0 %v11333_v35  ;;  %8744 = vmatprep.mubr.f32.mxu0 %v11034_v48 }
 0x444   : > { %8763 = vmatpush3.msra.mxu1 %v10981_v57  ;;  %8734 = vmatprep.subr.mxu0 %v11334_v41 }
 0x445   : > { %8764 = vmatprep.subr.mxu1 %v10996_v58  ;;  %8735 = vmatpush3.msra.mxu0 %v11334_v41 }
 0x446   : > { %8765 = vmatpush3.msra.mxu1 %v10996_v58  ;;  %8736 = vmatprep.subr.mxu0 %v10976_v63 }
 0x447   : > { %8767 = vmatmul.mubr.f32.vlgmr.msra.gmra.mxu1 %v11027_v55  ;;  %8737 = vmatpush3.msra.mxu0 %v10976_v63 }
 0x448   : > { %8769 = vmatprep.mubr.f32.mxu1 %v11047_v45  ;;  %8738 = vmatprep.subr.mxu0 %v10991_v46 }
 0x449   : > { %8739 = vmatpush3.msra.mxu0 %v10991_v46 }
 0x44a   : > { %8740 = vmatprep.subr.mxu0 %v11003_v62 }
 0x44b   : > { %8770 = vmatmul.mubr.f32.gmra.mxu1 %v11039_v7  ;;  %8741 = vmatpush3.msra.mxu0 %v11003_v62  ;;  %v7264_v62 = vld [vmem:[%s11191_s6] ss:$0 sm:$0xff] }
 0x44c   : > { %8742 = vmatprep.subr.mxu0 %v11013_v17 }
 0x44d   : > { %8743 = vmatpush3.msra.mxu0 %v11013_v17 }
 0x44e   : > { %8745 = vmatmul.mubr.f32.vlgmr.msra.gmra.mxu0 %v11027_v55 }
 0x44f   : > { %8747 = vmatprep.mubr.f32.mxu0 %v11047_v45 }
 0x452   : > { %8748 = vmatmul.mubr.f32.gmra.mxu0 %v11039_v7 }
 0x4e1   : > { %v8680_v22 = vpop.f32.mrf.mxu1 }
 0x4e3   : > { %v6672_v63 = vpop.f32.mrf.mxu1 }
 0x4e5   : > { %v8683_v57 = vpop.f32.mrf.mxu1 }
 0x4e7   : > { %v6684_v27 = vpop.f32.mrf.mxu1 }
 0x4e9   : > { %v8658_v61 = vpop.f32.mrf.mxu0 }
 0x4ea   : > { %v6542_v13 = vadd.f32 %v8658_v61, %v7264_v62 }
 0x4eb   : > { %v6531_v46 = vpop.f32.mrf.mxu0 }
 0x4ec   : > { %v6532_v31 = vadd.f32 %v7264_v62, %v6531_v46  ;;  %v6679_v23 = vadd.f32 %v8680_v22, %v6542_v13 }
 0x4ee   : > { %v8661_v58 = vpop.f32.mrf.mxu0  ;;  %v6673_v40 = vadd.f32 %v6672_v63, %v6532_v31 }
 0x4ef   : > { %v6562_v50 = vadd.f32 %v8661_v58, %v7264_v62 }
 0x4f0   : > { %v6551_v30 = vpop.f32.mrf.mxu0 }
 0x4f1   : > { %v6552_v14 = vadd.f32 %v7264_v62, %v6551_v30  ;;  %v6691_v49 = vadd.f32 %v8683_v57, %v6562_v50 }
 0x4f3   : > { %v8724_v0 = vpop.f32.mrf.mxu1  ;;  %v6685_v55 = vadd.f32 %v6684_v27, %v6552_v14 }
 0x4f5   : > { %v6880_v17 = vpop.f32.mrf.mxu1 }
 0x4f8   : > { %v8727_v4 = vpop.f32.mrf.mxu1 }
 0x4fa   : > { %v6896_v37 = vpop.f32.mrf.mxu1 }
 0x4fc   : > { %v8702_v26 = vpop.f32.mrf.mxu0 }
 0x4fd   : > { %v6786_v9 = vadd.f32 %v8702_v26, %v6679_v23 }
 0x4fe   : > { %v6778_v21 = vpop.f32.mrf.mxu0 }
 0x4ff   : > { %v6779_v20 = vadd.f32 %v6778_v21, %v6673_v40  ;;  %v6889_v8 = vadd.f32 %v8724_v0, %v6786_v9 }
 0x501   : > { %v8705_v28 = vpop.f32.mrf.mxu0  ;;  %v6881_v48 = vadd.f32 %v6880_v17, %v6779_v20 }
 0x502   : > { %v6800_v2 = vadd.f32 %v8705_v28, %v6691_v49 }
 0x503   : > { %v6792_v18 = vpop.f32.mrf.mxu0 }
 0x504   : > { %v6793_v19 = vadd.f32 %v6792_v18, %v6685_v55  ;;  %v6905_v33 = vadd.f32 %v8727_v4, %v6800_v2 }
 0x506   : > { %v6897_v11 = vadd.f32 %v6896_v37, %v6793_v19 }
 0x507   : > { %v8768_v53 = vpop.f32.mrf.mxu1 }
 0x509   : > { %v7096_v34 = vpop.f32.mrf.mxu1 }
 0x50b   : > { %v8771_v7 = vpop.f32.mrf.mxu1 }
 0x50d   : > { %v7108_v1 = vpop.f32.mrf.mxu1 }
 0x50e   : > { %v8746_v44 = vpop.f32.mrf.mxu0 }
 0x50f   : > { %v7006_v54 = vadd.f32 %v8746_v44, %v6889_v8 }
 0x510   : > { %v6999_v47 = vpop.f32.mrf.mxu0 }
 0x511   : > { %v7103_v39 = vadd.f32 %v8768_v53, %v7006_v54  ;;  %v7000_v3 = vadd.f32 %v6999_v47, %v6881_v48 }
 0x512   : > { %v8749_v60 = vpop.f32.mrf.mxu0 }
 0x513   : > { %7120 = vst.msk [vmem:[%s388_s29 + $0x8] sm:$0xff] %vm7118_vm8, %v7103_v39  ;;  %v7097_v52 = vadd.f32 %v7096_v34, %v7000_v3  ;;  %v7018_v45 = vadd.f32 %v8749_v60, %v6905_v33 }
 0x514   : > { %v7011_v51 = vpop.f32.mrf.mxu0 }
 0x515   : > { %7119 = vst.msk [vmem:[%s388_s29] sm:$0xff] %vm7118_vm8, %v7097_v52  ;;  %v7115_v5 = vadd.f32 %v8771_v7, %v7018_v45  ;;  %v7012_v25 = vadd.f32 %v7011_v51, %v6897_v11 }
 0x517   : > { %7122 = vst.msk [vmem:[%s388_s29 + $0x18] sm:$0xff] %vm7118_vm8, %v7115_v5  ;;  %v7109_v59 = vadd.f32 %v7108_v1, %v7012_v25 }
 0x519   : > { %7121 = vst.msk [vmem:[%s388_s29 + $0x10] sm:$0xff] %vm7118_vm8, %v7109_v59 }
 0x51a   : > { %8878 = shalt.err (!%p8875_p5)
}
 0x51b   : > { %s8879_s15 = scalar_lea.hbm %s11138_s17, 512  ;;  %s8883_s29 = scalar_lea.hbm %s11192_s7, 1024 }
 0x51c   : > { %p8880_p7 = scmp.ne.s32.totalorder %s11138_s17, %s8879_s15  ;;  %p8884_p12 = scmp.lt.s32.totalorder %s11138_s17, %s11192_s7 }
 0x51d   : > { %p8885_p13 = scmp.lt.s32.totalorder %s8883_s29, %s8879_s15 }
 0x51e   : > { %p8881_p10 = pnand %p8880_p7, %p9010_p6 }
 0x51f   : > { %p8886_p0 = por %p8885_p13, %p8884_p12 }
 0x520   : > { %p8882_p11 = pneg %p8881_p10 }
 0x522   : > { %p8887_p1 = pnand %p8886_p0, %p8882_p11 }
 0x524   : > { %8890 = shalt.err (!%p8887_p1)
}
 0x525   : > { %s8930_s16 = smov 128   ;;  %s8931_s18 = smov 8  }
 0x526   : > { %8774 = dma.vmem_to_hbm [thread:$0]  (%p9010_p6), %s11140_s8, 512, %s11138_s17, %s7124_s28, %s8930_s16, %s8930_s16, %s8931_s18  }
 0x527 PF: > { %s7152_s19 = sand.u32 1, %s8913_s24   ;;  %p8777_p2 = pnand %p7207_p9, %p9014_p8 }
 0x528   : > { %s7153_s20 = scalar_lea.sflag [#allocation5], %s7152_s19 }
 0x529   : > { %p8778_p3 = pneg %p8777_p2 }
 0x52b   : > { %8908 = dma.done.wait (%p8778_p3), %s7153_s20, 512  }
 0x52c   : > { %8910 = vsyncadd (%p8778_p3), %s7153_s20, 4294966784  ;;  %p17_p4 = scmp.ge.s32.totalorder %s8995_s30, 4   ;;  %s11335_s24 = smov %s8917_s25 }
 0x52d   : > { %s11336_s25 = smov %s8921_s26  ;;  %s11337_s26 = smov %s9008_s10 }
 0x52e   : > { %s11338_s27 = smov %s8995_s30  ;;  %19 = sbr.rel (!%p17_p4) target bundleno = 3 (0x3), region = 134 }
 0x533   :  { %7158 = vsyncpa [#allocation5], 1 }
 0x534   :  { %7160 = vsyncpa [#allocation5 + $0x1], 1 }

</bundles_post_ra>
